<compile_context>
chip_gen: v7x
topology: tpu7x:2x2x1
jax: 0.10.0
libtpu: 0.0.40
codegen_flags: <defaults>
</compile_context>

<pallas_src>
import functools

import numpy as np

import jax
import jax.numpy as jnp
from jax import lax
from jax.experimental import pallas as pl
from jax.experimental.pallas import tpu as pltpu


_ROW0 = 8  # sublane-aligned start row of the image inside the halo scratch


# --------------------------------------------------------------------------
# Host-side weight preprocessing: expand (3,3,Cin,Cout) HWIO weights into
# per-(row-tap, lane-shift) lane vectors for the lane-flattened (H, W*C) layout.
#
# For output lane l = w*C + co, the conv contribution of tap (kh, kw, ci) comes
# from source lane l + delta with delta = (kw-1)*C + ci - co.  So
#     out[h, l] = b[co] + sum_{kh, delta} x_pad[h+kh, l+delta] * Wl[kh, delta, l]
# Boundary taps (w + kw - 1 outside [0, W)) get weight 0, which also neutralizes
# the circular wrap of the in-kernel lane roll.
# --------------------------------------------------------------------------
def _make_lane_weights(w_hwio, C, Wdim):
    KH, KW = 3, 3
    WC = Wdim * C
    NS = 4 * C - 1                      # delta in [-(2C-1), 2C-1]
    rows = KH * NS
    rows_padded = ((rows + 7) // 8) * 8  # keep the sublane dim a multiple of 8
    out = np.zeros((rows_padded, WC), np.float32)
    w = np.asarray(w_hwio, np.float32)
    for kh in range(KH):
        for kw in range(KW):
            for ci in range(C):
                for co in range(C):
                    s = (kw - 1) * C + ci - co + (2 * C - 1)
                    for wp in range(Wdim):
                        if 0 <= wp + kw - 1 < Wdim:
                            out[kh * NS + s, wp * C + co] = w[kh, kw, ci, co]
    return out


# --------------------------------------------------------------------------
# Fused kernel: one batch element per grid step, everything VMEM-resident.
# --------------------------------------------------------------------------
def _fused_block_kernel(x_ref, w1_ref, b1_ref, w2_ref, b2_ref, o_ref, xp_ref,
                        *, H, W, C):
    WC = W * C
    NS = 4 * C - 1

    def conv3x3(w_ref, b_ref):
        """3x3 'SAME' conv of the image staged in xp_ref rows [_ROW0, _ROW0+H)."""
        parts = []
        for kh in range(3):                       # vertical tap: source row h + kh - 1
            x_kh = xp_ref[_ROW0 - 1 + kh:_ROW0 - 1 + kh + H, :]     # (H, WC)
            acc = jnp.zeros((H, WC), jnp.float32)
            for s in range(NS):                   # lane shift covers (kw, ci, co) mixing
                delta = s - (2 * C - 1)
                shifted = x_kh if delta == 0 else pltpu.roll(
                    x_kh, shift=(-delta) % WC, axis=1)
                acc = acc + shifted * w_ref[pl.ds(kh * NS + s, 1), :]
            parts.append(acc)
        return parts[0] + parts[1] + parts[2] + b_ref[...]

    # Stage the input with zero row-halo (column halo handled by zeroed weights).
    xp_ref[...] = jnp.zeros_like(xp_ref)
    xp_ref[_ROW0:_ROW0 + H, :] = x_ref[...].astype(jnp.float32)

    t0 = conv3x3(w1_ref, b1_ref)                  # conv1, pre-ReLU  == traces[0]
    xp_ref[_ROW0:_ROW0 + H, :] = jnp.maximum(t0, 0.0)   # relu(t0) staged for conv2
    t2 = conv3x3(w2_ref, b2_ref)                  # conv2
    # ResidualBlock(trace=1): relu(conv2_out + pre-ReLU conv1 output).
    o_ref[...] = jnp.maximum(t2 + t0, 0.0).astype(o_ref.dtype)


def fused_block_forward(x_nhwc, w1, b1, w2, b2):
    """Pure function: the whole Block forward as a single pallas_call."""
    N, H, W, C = x_nhwc.shape
    WC = W * C
    NS = 4 * C - 1

    w1l = jnp.asarray(_make_lane_weights(w1, C, W))
    w2l = jnp.asarray(_make_lane_weights(w2, C, W))
    wrows = w1l.shape[0]
    b1l = jnp.tile(jnp.asarray(b1, jnp.float32), W).reshape(1, WC)
    b2l = jnp.tile(jnp.asarray(b2, jnp.float32), W).reshape(1, WC)

    x_flat = x_nhwc.reshape(N, H, WC)             # lane-dense: last dim = W*C

    kernel = functools.partial(_fused_block_kernel, H=H, W=W, C=C)
    out_flat = pl.pallas_call(
        kernel,
        out_shape=jax.ShapeDtypeStruct((N, H, WC), x_nhwc.dtype),
        grid=(N,),
        in_specs=[
            pl.BlockSpec((None, H, WC), lambda n: (n, 0, 0)),
            pl.BlockSpec((wrows, WC), lambda n: (0, 0)),
            pl.BlockSpec((1, WC), lambda n: (0, 0)),
            pl.BlockSpec((wrows, WC), lambda n: (0, 0)),
            pl.BlockSpec((1, WC), lambda n: (0, 0)),
        ],
        out_specs=pl.BlockSpec((None, H, WC), lambda n: (n, 0, 0)),
        scratch_shapes=[pltpu.VMEM((H + 16, WC), jnp.float32)],
        compiler_params=pltpu.CompilerParams(
            dimension_semantics=("parallel",)),
    )(x_flat, w1l, b1l, w2l, b2l)
    return out_flat.reshape(N, H, W, C)


# --------------------------------------------------------------------------
# Layer / container classes mirroring the PyTorch module structure
# --------------------------------------------------------------------------
class Conv2dLayer:
    """3x3, stride-1, pad-1 conv; weights in HWIO (kh, kw, cin, cout) layout."""

    def __init__(self, w_hwio, bias):
        self.w = w_hwio
        self.b = bias


class ReLULayer:
    pass


class ResidualBlock:
    """out = relu(x + traces[trace - 1]) (1-based trace index)."""

    def __init__(self, trace):
        self.trace = trace


class Block:
    """Pallas port of the PyTorch `Block` container.

    The generic container runs layers sequentially, recording every output in
    `traces` and feeding traces[k-1] into any ResidualBlock(trace=k).  Here the
    concrete layer list [Conv2d, ReLU, Conv2d, ResidualBlock(trace=1)] is fused
    into a single Pallas kernel; the residual consumes the pre-ReLU conv1
    output (traces[0]), kept in VMEM rather than replayed through HBM.
    """
    # TODO(synk): arbitrary layer lists are not supported by the fused kernel;
    # only the Conv-ReLU-Conv-ResidualBlock(trace=1) pattern is handled here.

    def __init__(self, layer_list):
        self.layer_list = list(layer_list)
        conv1, act, conv2, res = self.layer_list
        assert isinstance(conv1, Conv2dLayer) and isinstance(act, ReLULayer)
        assert isinstance(conv2, Conv2dLayer) and isinstance(res, ResidualBlock)
        assert res.trace == 1
        self._conv1, self._conv2 = conv1, conv2

    def __call__(self, x_nchw):
        # NCHW -> NHWC (channels on the lane axis) at the wrapper boundary.
        x_nhwc = jnp.transpose(x_nchw, (0, 2, 3, 1))
        out_nhwc = fused_block_forward(
            x_nhwc, self._conv1.w, self._conv1.b, self._conv2.w, self._conv2.b)
        return jnp.transpose(out_nhwc, (0, 3, 1, 2))


# --------------------------------------------------------------------------
# Plain-JAX reference for verification
# --------------------------------------------------------------------------
def _ref_conv(x, w, b):
    y = lax.conv_general_dilated(
        x, w, window_strides=(1, 1), padding="SAME",
        dimension_numbers=("NHWC", "HWIO", "NHWC"))
    return y + b[None, None, None, :]


def _ref_block(x_nhwc, w1, b1, w2, b2):
    t0 = _ref_conv(x_nhwc, w1, b1)        # conv1 (traces[0], pre-ReLU)
    t1 = jnp.maximum(t0, 0.0)             # relu
    t2 = _ref_conv(t1, w2, b2)            # conv2
    return jnp.maximum(t2 + t0, 0.0)      # ResidualBlock(trace=1)


# --------------------------------------------------------------------------
if __name__ == "__main__":
    N, C, H, W = 2, 8, 16, 16             # W * C == 128 -> fully lane-dense rows

    key = jax.random.PRNGKey(0)
    k_x, k_w1, k_b1, k_w2, k_b2 = jax.random.split(key, 5)

    # PyTorch-style NCHW input.
    x_nchw = jax.random.normal(k_x, (N, C, H, W), dtype=jnp.float32)

    w1 = jax.random.normal(k_w1, (3, 3, C, C), dtype=jnp.float32) * 0.1
    b1 = jax.random.normal(k_b1, (C,), dtype=jnp.float32) * 0.1
    w2 = jax.random.normal(k_w2, (3, 3, C, C), dtype=jnp.float32) * 0.1
    b2 = jax.random.normal(k_b2, (C,), dtype=jnp.float32) * 0.1

    block = Block([
        Conv2dLayer(w1, b1),      # layer 1 -> traces[0]
        ReLULayer(),              # layer 2 -> traces[1]
        Conv2dLayer(w2, b2),      # layer 3 -> traces[2]
        ResidualBlock(trace=1),   # layer 4: relu(x + traces[0])
    ])

    out_nchw = block(x_nchw)
    jax.block_until_ready(out_nchw)

    # Verify against the plain-JAX reference.
    x_nhwc = jnp.transpose(x_nchw, (0, 2, 3, 1))
    ref_nchw = jnp.transpose(_ref_block(x_nhwc, w1, b1, w2, b2), (0, 3, 1, 2))
    assert out_nchw.shape == (N, C, H, W)
    assert jnp.allclose(out_nchw, ref_nchw, atol=1e-3, rtol=1e-3), \
        "mismatch vs reference"

    print("KERNEL_OK")
</pallas_src>

<mosaic_0001>
module attributes {stable_mosaic.version = 11 : i64} {
  func.func @_fused_block_kernel(%arg0: i32, %arg1: memref<1x16x128xf32, #tpu.memory_space<vmem>>, %arg2: memref<96x128xf32, #tpu.memory_space<vmem>>, %arg3: memref<1x128xf32, #tpu.memory_space<vmem>>, %arg4: memref<96x128xf32, #tpu.memory_space<vmem>>, %arg5: memref<1x128xf32, #tpu.memory_space<vmem>>, %arg6: memref<1x16x128xf32, #tpu.memory_space<vmem>>, %arg7: memref<32x128xf32, #tpu.memory_space<vmem>>) attributes {dimension_semantics = [#tpu.dimension_semantics<parallel>], iteration_bounds = array<i64: 2>, scalar_prefetch = 0 : i64, scratch_operands = 1 : i64, tpu.core_type = #tpu.core_type<tc>, window_params = [{transform_indices = @transform_0, window_bounds = array<i64: 1, 16, 128>}, {pipeline_mode = #tpu.pipeline_mode<synchronous>, transform_indices = @transform_1, window_bounds = array<i64: 96, 128>}, {pipeline_mode = #tpu.pipeline_mode<synchronous>, transform_indices = @transform_2, window_bounds = array<i64: 1, 128>}, {pipeline_mode = #tpu.pipeline_mode<synchronous>, transform_indices = @transform_3, window_bounds = array<i64: 96, 128>}, {pipeline_mode = #tpu.pipeline_mode<synchronous>, transform_indices = @transform_4, window_bounds = array<i64: 1, 128>}, {transform_indices = @transform_5, window_bounds = array<i64: 1, 16, 128>}]} {
    %cst = arith.constant 0.000000e+00 : f32
    %0 = vector.broadcast %cst : f32 to vector<32x128xf32>
    %c0 = arith.constant 0 : index
    %c0_0 = arith.constant 0 : index
    %1 = vector.load %arg7[%c0, %c0_0] : memref<32x128xf32, #tpu.memory_space<vmem>>, vector<32x128xf32>
    tpu.vector_store %arg7[%c0, %c0_0], %0 {strides = array<i32>} : memref<32x128xf32, #tpu.memory_space<vmem>>, vector<32x128xf32>,
    %c0_1 = arith.constant 0 : index
    %c0_2 = arith.constant 0 : index
    %c0_3 = arith.constant 0 : index
    %2 = vector.load %arg1[%c0_1, %c0_2, %c0_3] : memref<1x16x128xf32, #tpu.memory_space<vmem>>, vector<1x16x128xf32>
    %3 = vector.shape_cast %2 : vector<1x16x128xf32> to vector<16x128xf32>
    %c8 = arith.constant 8 : index
    %c0_4 = arith.constant 0 : index
    %4 = vector.load %arg7[%c8, %c0_4] : memref<32x128xf32, #tpu.memory_space<vmem>>, vector<16x128xf32>
    tpu.vector_store %arg7[%c8, %c0_4], %3 {strides = array<i32>} : memref<32x128xf32, #tpu.memory_space<vmem>>, vector<16x128xf32>,
    %c7 = arith.constant 7 : index
    %c0_5 = arith.constant 0 : index
    %5 = vector.load %arg7[%c7, %c0_5] : memref<32x128xf32, #tpu.memory_space<vmem>>, vector<16x128xf32>
    %cst_6 = arith.constant 0.000000e+00 : f32
    %6 = vector.broadcast %cst_6 : f32 to vector<16x128xf32>
    %c15_i32 = arith.constant 15 : i32
    %7 = tpu.dynamic_rotate %5 by %c15_i32 dim 1 : vector<16x128xf32>, i32 -> vector<16x128xf32>
    %c0_7 = arith.constant 0 : index
    %c0_8 = arith.constant 0 : index
    %8 = vector.load %arg2[%c0_7, %c0_8] : memref<96x128xf32, #tpu.memory_space<vmem>>, vector<1x128xf32>
    %9 = vector.broadcast %8 : vector<1x128xf32> to vector<16x128xf32>
    %10 = arith.mulf %7, %9 : vector<16x128xf32>
    %11 = arith.addf %6, %10 : vector<16x128xf32>
    %c14_i32 = arith.constant 14 : i32
    %12 = tpu.dynamic_rotate %5 by %c14_i32 dim 1 : vector<16x128xf32>, i32 -> vector<16x128xf32>
    %c1 = arith.constant 1 : index
    %c0_9 = arith.constant 0 : index
    %13 = vector.load %arg2[%c1, %c0_9] : memref<96x128xf32, #tpu.memory_space<vmem>>, vector<1x128xf32>
    %14 = vector.broadcast %13 : vector<1x128xf32> to vector<16x128xf32>
    %15 = arith.mulf %12, %14 : vector<16x128xf32>
    %16 = arith.addf %11, %15 : vector<16x128xf32>
    %c13_i32 = arith.constant 13 : i32
    %17 = tpu.dynamic_rotate %5 by %c13_i32 dim 1 : vector<16x128xf32>, i32 -> vector<16x128xf32>
    %c2 = arith.constant 2 : index
    %c0_10 = arith.constant 0 : index
    %18 = vector.load %arg2[%c2, %c0_10] : memref<96x128xf32, #tpu.memory_space<vmem>>, vector<1x128xf32>
    %19 = vector.broadcast %18 : vector<1x128xf32> to vector<16x128xf32>
    %20 = arith.mulf %17, %19 : vector<16x128xf32>
    %21 = arith.addf %16, %20 : vector<16x128xf32>
    %c12_i32 = arith.constant 12 : i32
    %22 = tpu.dynamic_rotate %5 by %c12_i32 dim 1 : vector<16x128xf32>, i32 -> vector<16x128xf32>
    %c3 = arith.constant 3 : index
    %c0_11 = arith.constant 0 : index
    %23 = vector.load %arg2[%c3, %c0_11] : memref<96x128xf32, #tpu.memory_space<vmem>>, vector<1x128xf32>
    %24 = vector.broadcast %23 : vector<1x128xf32> to vector<16x128xf32>
    %25 = arith.mulf %22, %24 : vector<16x128xf32>
    %26 = arith.addf %21, %25 : vector<16x128xf32>
    %c11_i32 = arith.constant 11 : i32
    %27 = tpu.dynamic_rotate %5 by %c11_i32 dim 1 : vector<16x128xf32>, i32 -> vector<16x128xf32>
    %c4 = arith.constant 4 : index
    %c0_12 = arith.constant 0 : index
    %28 = vector.load %arg2[%c4, %c0_12] : memref<96x128xf32, #tpu.memory_space<vmem>>, vector<1x128xf32>
    %29 = vector.broadcast %28 : vector<1x128xf32> to vector<16x128xf32>
    %30 = arith.mulf %27, %29 : vector<16x128xf32>
    %31 = arith.addf %26, %30 : vector<16x128xf32>
    %c10_i32 = arith.constant 10 : i32
    %32 = tpu.dynamic_rotate %5 by %c10_i32 dim 1 : vector<16x128xf32>, i32 -> vector<16x128xf32>
    %c5 = arith.constant 5 : index
    %c0_13 = arith.constant 0 : index
    %33 = vector.load %arg2[%c5, %c0_13] : memref<96x128xf32, #tpu.memory_space<vmem>>, vector<1x128xf32>
    %34 = vector.broadcast %33 : vector<1x128xf32> to vector<16x128xf32>
    %35 = arith.mulf %32, %34 : vector<16x128xf32>
    %36 = arith.addf %31, %35 : vector<16x128xf32>
    %c9_i32 = arith.constant 9 : i32
    %37 = tpu.dynamic_rotate %5 by %c9_i32 dim 1 : vector<16x128xf32>, i32 -> vector<16x128xf32>
    %c6 = arith.constant 6 : index
    %c0_14 = arith.constant 0 : index
    %38 = vector.load %arg2[%c6, %c0_14] : memref<96x128xf32, #tpu.memory_space<vmem>>, vector<1x128xf32>
    %39 = vector.broadcast %38 : vector<1x128xf32> to vector<16x128xf32>
    %40 = arith.mulf %37, %39 : vector<16x128xf32>
    %41 = arith.addf %36, %40 : vector<16x128xf32>
    %c8_i32 = arith.constant 8 : i32
    %42 = tpu.dynamic_rotate %5 by %c8_i32 dim 1 : vector<16x128xf32>, i32 -> vector<16x128xf32>
    %c7_15 = arith.constant 7 : index
    %c0_16 = arith.constant 0 : index
    %43 = vector.load %arg2[%c7_15, %c0_16] : memref<96x128xf32, #tpu.memory_space<vmem>>, vector<1x128xf32>
    %44 = vector.broadcast %43 : vector<1x128xf32> to vector<16x128xf32>
    %45 = arith.mulf %42, %44 : vector<16x128xf32>
    %46 = arith.addf %41, %45 : vector<16x128xf32>
    %c7_i32 = arith.constant 7 : i32
    %47 = tpu.dynamic_rotate %5 by %c7_i32 dim 1 : vector<16x128xf32>, i32 -> vector<16x128xf32>
    %c8_17 = arith.constant 8 : index
    %c0_18 = arith.constant 0 : index
    %48 = vector.load %arg2[%c8_17, %c0_18] : memref<96x128xf32, #tpu.memory_space<vmem>>, vector<1x128xf32>
    %49 = vector.broadcast %48 : vector<1x128xf32> to vector<16x128xf32>
    %50 = arith.mulf %47, %49 : vector<16x128xf32>
    %51 = arith.addf %46, %50 : vector<16x128xf32>
    %c6_i32 = arith.constant 6 : i32
    %52 = tpu.dynamic_rotate %5 by %c6_i32 dim 1 : vector<16x128xf32>, i32 -> vector<16x128xf32>
    %c9 = arith.constant 9 : index
    %c0_19 = arith.constant 0 : index
    %53 = vector.load %arg2[%c9, %c0_19] : memref<96x128xf32, #tpu.memory_space<vmem>>, vector<1x128xf32>
    %54 = vector.broadcast %53 : vector<1x128xf32> to vector<16x128xf32>
    %55 = arith.mulf %52, %54 : vector<16x128xf32>
    %56 = arith.addf %51, %55 : vector<16x128xf32>
    %c5_i32 = arith.constant 5 : i32
    %57 = tpu.dynamic_rotate %5 by %c5_i32 dim 1 : vector<16x128xf32>, i32 -> vector<16x128xf32>
    %c10 = arith.constant 10 : index
    %c0_20 = arith.constant 0 : index
    %58 = vector.load %arg2[%c10, %c0_20] : memref<96x128xf32, #tpu.memory_space<vmem>>, vector<1x128xf32>
    %59 = vector.broadcast %58 : vector<1x128xf32> to vector<16x128xf32>
    %60 = arith.mulf %57, %59 : vector<16x128xf32>
    %61 = arith.addf %56, %60 : vector<16x128xf32>
    %c4_i32 = arith.constant 4 : i32
    %62 = tpu.dynamic_rotate %5 by %c4_i32 dim 1 : vector<16x128xf32>, i32 -> vector<16x128xf32>
    %c11 = arith.constant 11 : index
    %c0_21 = arith.constant 0 : index
    %63 = vector.load %arg2[%c11, %c0_21] : memref<96x128xf32, #tpu.memory_space<vmem>>, vector<1x128xf32>
    %64 = vector.broadcast %63 : vector<1x128xf32> to vector<16x128xf32>
    %65 = arith.mulf %62, %64 : vector<16x128xf32>
    %66 = arith.addf %61, %65 : vector<16x128xf32>
    %c3_i32 = arith.constant 3 : i32
    %67 = tpu.dynamic_rotate %5 by %c3_i32 dim 1 : vector<16x128xf32>, i32 -> vector<16x128xf32>
    %c12 = arith.constant 12 : index
    %c0_22 = arith.constant 0 : index
    %68 = vector.load %arg2[%c12, %c0_22] : memref<96x128xf32, #tpu.memory_space<vmem>>, vector<1x128xf32>
    %69 = vector.broadcast %68 : vector<1x128xf32> to vector<16x128xf32>
    %70 = arith.mulf %67, %69 : vector<16x128xf32>
    %71 = arith.addf %66, %70 : vector<16x128xf32>
    %c2_i32 = arith.constant 2 : i32
    %72 = tpu.dynamic_rotate %5 by %c2_i32 dim 1 : vector<16x128xf32>, i32 -> vector<16x128xf32>
    %c13 = arith.constant 13 : index
    %c0_23 = arith.constant 0 : index
    %73 = vector.load %arg2[%c13, %c0_23] : memref<96x128xf32, #tpu.memory_space<vmem>>, vector<1x128xf32>
    %74 = vector.broadcast %73 : vector<1x128xf32> to vector<16x128xf32>
    %75 = arith.mulf %72, %74 : vector<16x128xf32>
    %76 = arith.addf %71, %75 : vector<16x128xf32>
    %c1_i32 = arith.constant 1 : i32
    %77 = tpu.dynamic_rotate %5 by %c1_i32 dim 1 : vector<16x128xf32>, i32 -> vector<16x128xf32>
    %c14 = arith.constant 14 : index
    %c0_24 = arith.constant 0 : index
    %78 = vector.load %arg2[%c14, %c0_24] : memref<96x128xf32, #tpu.memory_space<vmem>>, vector<1x128xf32>
    %79 = vector.broadcast %78 : vector<1x128xf32> to vector<16x128xf32>
    %80 = arith.mulf %77, %79 : vector<16x128xf32>
    %81 = arith.addf %76, %80 : vector<16x128xf32>
    %c15 = arith.constant 15 : index
    %c0_25 = arith.constant 0 : index
    %82 = vector.load %arg2[%c15, %c0_25] : memref<96x128xf32, #tpu.memory_space<vmem>>, vector<1x128xf32>
    %83 = vector.broadcast %82 : vector<1x128xf32> to vector<16x128xf32>
    %84 = arith.mulf %5, %83 : vector<16x128xf32>
    %85 = arith.addf %81, %84 : vector<16x128xf32>
    %c127_i32 = arith.constant 127 : i32
    %86 = tpu.dynamic_rotate %5 by %c127_i32 dim 1 : vector<16x128xf32>, i32 -> vector<16x128xf32>
    %c16 = arith.constant 16 : index
    %c0_26 = arith.constant 0 : index
    %87 = vector.load %arg2[%c16, %c0_26] : memref<96x128xf32, #tpu.memory_space<vmem>>, vector<1x128xf32>
    %88 = vector.broadcast %87 : vector<1x128xf32> to vector<16x128xf32>
    %89 = arith.mulf %86, %88 : vector<16x128xf32>
    %90 = arith.addf %85, %89 : vector<16x128xf32>
    %c126_i32 = arith.constant 126 : i32
    %91 = tpu.dynamic_rotate %5 by %c126_i32 dim 1 : vector<16x128xf32>, i32 -> vector<16x128xf32>
    %c17 = arith.constant 17 : index
    %c0_27 = arith.constant 0 : index
    %92 = vector.load %arg2[%c17, %c0_27] : memref<96x128xf32, #tpu.memory_space<vmem>>, vector<1x128xf32>
    %93 = vector.broadcast %92 : vector<1x128xf32> to vector<16x128xf32>
    %94 = arith.mulf %91, %93 : vector<16x128xf32>
    %95 = arith.addf %90, %94 : vector<16x128xf32>
    %c125_i32 = arith.constant 125 : i32
    %96 = tpu.dynamic_rotate %5 by %c125_i32 dim 1 : vector<16x128xf32>, i32 -> vector<16x128xf32>
    %c18 = arith.constant 18 : index
    %c0_28 = arith.constant 0 : index
    %97 = vector.load %arg2[%c18, %c0_28] : memref<96x128xf32, #tpu.memory_space<vmem>>, vector<1x128xf32>
    %98 = vector.broadcast %97 : vector<1x128xf32> to vector<16x128xf32>
    %99 = arith.mulf %96, %98 : vector<16x128xf32>
    %100 = arith.addf %95, %99 : vector<16x128xf32>
    %c124_i32 = arith.constant 124 : i32
    %101 = tpu.dynamic_rotate %5 by %c124_i32 dim 1 : vector<16x128xf32>, i32 -> vector<16x128xf32>
    %c19 = arith.constant 19 : index
    %c0_29 = arith.constant 0 : index
    %102 = vector.load %arg2[%c19, %c0_29] : memref<96x128xf32, #tpu.memory_space<vmem>>, vector<1x128xf32>
    %103 = vector.broadcast %102 : vector<1x128xf32> to vector<16x128xf32>
    %104 = arith.mulf %101, %103 : vector<16x128xf32>
    %105 = arith.addf %100, %104 : vector<16x128xf32>
    %c123_i32 = arith.constant 123 : i32
    %106 = tpu.dynamic_rotate %5 by %c123_i32 dim 1 : vector<16x128xf32>, i32 -> vector<16x128xf32>
    %c20 = arith.constant 20 : index
    %c0_30 = arith.constant 0 : index
    %107 = vector.load %arg2[%c20, %c0_30] : memref<96x128xf32, #tpu.memory_space<vmem>>, vector<1x128xf32>
    %108 = vector.broadcast %107 : vector<1x128xf32> to vector<16x128xf32>
    %109 = arith.mulf %106, %108 : vector<16x128xf32>
    %110 = arith.addf %105, %109 : vector<16x128xf32>
    %c122_i32 = arith.constant 122 : i32
    %111 = tpu.dynamic_rotate %5 by %c122_i32 dim 1 : vector<16x128xf32>, i32 -> vector<16x128xf32>
    %c21 = arith.constant 21 : index
    %c0_31 = arith.constant 0 : index
    %112 = vector.load %arg2[%c21, %c0_31] : memref<96x128xf32, #tpu.memory_space<vmem>>, vector<1x128xf32>
    %113 = vector.broadcast %112 : vector<1x128xf32> to vector<16x128xf32>
    %114 = arith.mulf %111, %113 : vector<16x128xf32>
    %115 = arith.addf %110, %114 : vector<16x128xf32>
    %c121_i32 = arith.constant 121 : i32
    %116 = tpu.dynamic_rotate %5 by %c121_i32 dim 1 : vector<16x128xf32>, i32 -> vector<16x128xf32>
    %c22 = arith.constant 22 : index
    %c0_32 = arith.constant 0 : index
    %117 = vector.load %arg2[%c22, %c0_32] : memref<96x128xf32, #tpu.memory_space<vmem>>, vector<1x128xf32>
    %118 = vector.broadcast %117 : vector<1x128xf32> to vector<16x128xf32>
    %119 = arith.mulf %116, %118 : vector<16x128xf32>
    %120 = arith.addf %115, %119 : vector<16x128xf32>
    %c120_i32 = arith.constant 120 : i32
    %121 = tpu.dynamic_rotate %5 by %c120_i32 dim 1 : vector<16x128xf32>, i32 -> vector<16x128xf32>
    %c23 = arith.constant 23 : index
    %c0_33 = arith.constant 0 : index
    %122 = vector.load %arg2[%c23, %c0_33] : memref<96x128xf32, #tpu.memory_space<vmem>>, vector<1x128xf32>
    %123 = vector.broadcast %122 : vector<1x128xf32> to vector<16x128xf32>
    %124 = arith.mulf %121, %123 : vector<16x128xf32>
    %125 = arith.addf %120, %124 : vector<16x128xf32>
    %c119_i32 = arith.constant 119 : i32
    %126 = tpu.dynamic_rotate %5 by %c119_i32 dim 1 : vector<16x128xf32>, i32 -> vector<16x128xf32>
    %c24 = arith.constant 24 : index
    %c0_34 = arith.constant 0 : index
    %127 = vector.load %arg2[%c24, %c0_34] : memref<96x128xf32, #tpu.memory_space<vmem>>, vector<1x128xf32>
    %128 = vector.broadcast %127 : vector<1x128xf32> to vector<16x128xf32>
    %129 = arith.mulf %126, %128 : vector<16x128xf32>
    %130 = arith.addf %125, %129 : vector<16x128xf32>
    %c118_i32 = arith.constant 118 : i32
    %131 = tpu.dynamic_rotate %5 by %c118_i32 dim 1 : vector<16x128xf32>, i32 -> vector<16x128xf32>
    %c25 = arith.constant 25 : index
    %c0_35 = arith.constant 0 : index
    %132 = vector.load %arg2[%c25, %c0_35] : memref<96x128xf32, #tpu.memory_space<vmem>>, vector<1x128xf32>
    %133 = vector.broadcast %132 : vector<1x128xf32> to vector<16x128xf32>
    %134 = arith.mulf %131, %133 : vector<16x128xf32>
    %135 = arith.addf %130, %134 : vector<16x128xf32>
    %c117_i32 = arith.constant 117 : i32
    %136 = tpu.dynamic_rotate %5 by %c117_i32 dim 1 : vector<16x128xf32>, i32 -> vector<16x128xf32>
    %c26 = arith.constant 26 : index
    %c0_36 = arith.constant 0 : index
    %137 = vector.load %arg2[%c26, %c0_36] : memref<96x128xf32, #tpu.memory_space<vmem>>, vector<1x128xf32>
    %138 = vector.broadcast %137 : vector<1x128xf32> to vector<16x128xf32>
    %139 = arith.mulf %136, %138 : vector<16x128xf32>
    %140 = arith.addf %135, %139 : vector<16x128xf32>
    %c116_i32 = arith.constant 116 : i32
    %141 = tpu.dynamic_rotate %5 by %c116_i32 dim 1 : vector<16x128xf32>, i32 -> vector<16x128xf32>
    %c27 = arith.constant 27 : index
    %c0_37 = arith.constant 0 : index
    %142 = vector.load %arg2[%c27, %c0_37] : memref<96x128xf32, #tpu.memory_space<vmem>>, vector<1x128xf32>
    %143 = vector.broadcast %142 : vector<1x128xf32> to vector<16x128xf32>
    %144 = arith.mulf %141, %143 : vector<16x128xf32>
    %145 = arith.addf %140, %144 : vector<16x128xf32>
    %c115_i32 = arith.constant 115 : i32
    %146 = tpu.dynamic_rotate %5 by %c115_i32 dim 1 : vector<16x128xf32>, i32 -> vector<16x128xf32>
    %c28 = arith.constant 28 : index
    %c0_38 = arith.constant 0 : index
    %147 = vector.load %arg2[%c28, %c0_38] : memref<96x128xf32, #tpu.memory_space<vmem>>, vector<1x128xf32>
    %148 = vector.broadcast %147 : vector<1x128xf32> to vector<16x128xf32>
    %149 = arith.mulf %146, %148 : vector<16x128xf32>
    %150 = arith.addf %145, %149 : vector<16x128xf32>
    %c114_i32 = arith.constant 114 : i32
    %151 = tpu.dynamic_rotate %5 by %c114_i32 dim 1 : vector<16x128xf32>, i32 -> vector<16x128xf32>
    %c29 = arith.constant 29 : index
    %c0_39 = arith.constant 0 : index
    %152 = vector.load %arg2[%c29, %c0_39] : memref<96x128xf32, #tpu.memory_space<vmem>>, vector<1x128xf32>
    %153 = vector.broadcast %152 : vector<1x128xf32> to vector<16x128xf32>
    %154 = arith.mulf %151, %153 : vector<16x128xf32>
    %155 = arith.addf %150, %154 : vector<16x128xf32>
    %c113_i32 = arith.constant 113 : i32
    %156 = tpu.dynamic_rotate %5 by %c113_i32 dim 1 : vector<16x128xf32>, i32 -> vector<16x128xf32>
    %c30 = arith.constant 30 : index
    %c0_40 = arith.constant 0 : index
    %157 = vector.load %arg2[%c30, %c0_40] : memref<96x128xf32, #tpu.memory_space<vmem>>, vector<1x128xf32>
    %158 = vector.broadcast %157 : vector<1x128xf32> to vector<16x128xf32>
    %159 = arith.mulf %156, %158 : vector<16x128xf32>
    %160 = arith.addf %155, %159 : vector<16x128xf32>
    %c8_41 = arith.constant 8 : index
    %c0_42 = arith.constant 0 : index
    %161 = vector.load %arg7[%c8_41, %c0_42] : memref<32x128xf32, #tpu.memory_space<vmem>>, vector<16x128xf32>
    %cst_43 = arith.constant 0.000000e+00 : f32
    %162 = vector.broadcast %cst_43 : f32 to vector<16x128xf32>
    %c15_i32_44 = arith.constant 15 : i32
    %163 = tpu.dynamic_rotate %161 by %c15_i32_44 dim 1 : vector<16x128xf32>, i32 -> vector<16x128xf32>
    %c31 = arith.constant 31 : index
    %c0_45 = arith.constant 0 : index
    %164 = vector.load %arg2[%c31, %c0_45] : memref<96x128xf32, #tpu.memory_space<vmem>>, vector<1x128xf32>
    %165 = vector.broadcast %164 : vector<1x128xf32> to vector<16x128xf32>
    %166 = arith.mulf %163, %165 : vector<16x128xf32>
    %167 = arith.addf %162, %166 : vector<16x128xf32>
    %c14_i32_46 = arith.constant 14 : i32
    %168 = tpu.dynamic_rotate %161 by %c14_i32_46 dim 1 : vector<16x128xf32>, i32 -> vector<16x128xf32>
    %c32 = arith.constant 32 : index
    %c0_47 = arith.constant 0 : index
    %169 = vector.load %arg2[%c32, %c0_47] : memref<96x128xf32, #tpu.memory_space<vmem>>, vector<1x128xf32>
    %170 = vector.broadcast %169 : vector<1x128xf32> to vector<16x128xf32>
    %171 = arith.mulf %168, %170 : vector<16x128xf32>
    %172 = arith.addf %167, %171 : vector<16x128xf32>
    %c13_i32_48 = arith.constant 13 : i32
    %173 = tpu.dynamic_rotate %161 by %c13_i32_48 dim 1 : vector<16x128xf32>, i32 -> vector<16x128xf32>
    %c33 = arith.constant 33 : index
    %c0_49 = arith.constant 0 : index
    %174 = vector.load %arg2[%c33, %c0_49] : memref<96x128xf32, #tpu.memory_space<vmem>>, vector<1x128xf32>
    %175 = vector.broadcast %174 : vector<1x128xf32> to vector<16x128xf32>
    %176 = arith.mulf %173, %175 : vector<16x128xf32>
    %177 = arith.addf %172, %176 : vector<16x128xf32>
    %c12_i32_50 = arith.constant 12 : i32
    %178 = tpu.dynamic_rotate %161 by %c12_i32_50 dim 1 : vector<16x128xf32>, i32 -> vector<16x128xf32>
    %c34 = arith.constant 34 : index
    %c0_51 = arith.constant 0 : index
    %179 = vector.load %arg2[%c34, %c0_51] : memref<96x128xf32, #tpu.memory_space<vmem>>, vector<1x128xf32>
    %180 = vector.broadcast %179 : vector<1x128xf32> to vector<16x128xf32>
    %181 = arith.mulf %178, %180 : vector<16x128xf32>
    %182 = arith.addf %177, %181 : vector<16x128xf32>
    %c11_i32_52 = arith.constant 11 : i32
    %183 = tpu.dynamic_rotate %161 by %c11_i32_52 dim 1 : vector<16x128xf32>, i32 -> vector<16x128xf32>
    %c35 = arith.constant 35 : index
    %c0_53 = arith.constant 0 : index
    %184 = vector.load %arg2[%c35, %c0_53] : memref<96x128xf32, #tpu.memory_space<vmem>>, vector<1x128xf32>
    %185 = vector.broadcast %184 : vector<1x128xf32> to vector<16x128xf32>
    %186 = arith.mulf %183, %185 : vector<16x128xf32>
    %187 = arith.addf %182, %186 : vector<16x128xf32>
    %c10_i32_54 = arith.constant 10 : i32
    %188 = tpu.dynamic_rotate %161 by %c10_i32_54 dim 1 : vector<16x128xf32>, i32 -> vector<16x128xf32>
    %c36 = arith.constant 36 : index
    %c0_55 = arith.constant 0 : index
    %189 = vector.load %arg2[%c36, %c0_55] : memref<96x128xf32, #tpu.memory_space<vmem>>, vector<1x128xf32>
    %190 = vector.broadcast %189 : vector<1x128xf32> to vector<16x128xf32>
    %191 = arith.mulf %188, %190 : vector<16x128xf32>
    %192 = arith.addf %187, %191 : vector<16x128xf32>
    %c9_i32_56 = arith.constant 9 : i32
    %193 = tpu.dynamic_rotate %161 by %c9_i32_56 dim 1 : vector<16x128xf32>, i32 -> vector<16x128xf32>
    %c37 = arith.constant 37 : index
    %c0_57 = arith.constant 0 : index
    %194 = vector.load %arg2[%c37, %c0_57] : memref<96x128xf32, #tpu.memory_space<vmem>>, vector<1x128xf32>
    %195 = vector.broadcast %194 : vector<1x128xf32> to vector<16x128xf32>
    %196 = arith.mulf %193, %195 : vector<16x128xf32>
    %197 = arith.addf %192, %196 : vector<16x128xf32>
    %c8_i32_58 = arith.constant 8 : i32
    %198 = tpu.dynamic_rotate %161 by %c8_i32_58 dim 1 : vector<16x128xf32>, i32 -> vector<16x128xf32>
    %c38 = arith.constant 38 : index
    %c0_59 = arith.constant 0 : index
    %199 = vector.load %arg2[%c38, %c0_59] : memref<96x128xf32, #tpu.memory_space<vmem>>, vector<1x128xf32>
    %200 = vector.broadcast %199 : vector<1x128xf32> to vector<16x128xf32>
    %201 = arith.mulf %198, %200 : vector<16x128xf32>
    %202 = arith.addf %197, %201 : vector<16x128xf32>
    %c7_i32_60 = arith.constant 7 : i32
    %203 = tpu.dynamic_rotate %161 by %c7_i32_60 dim 1 : vector<16x128xf32>, i32 -> vector<16x128xf32>
    %c39 = arith.constant 39 : index
    %c0_61 = arith.constant 0 : index
    %204 = vector.load %arg2[%c39, %c0_61] : memref<96x128xf32, #tpu.memory_space<vmem>>, vector<1x128xf32>
    %205 = vector.broadcast %204 : vector<1x128xf32> to vector<16x128xf32>
    %206 = arith.mulf %203, %205 : vector<16x128xf32>
    %207 = arith.addf %202, %206 : vector<16x128xf32>
    %c6_i32_62 = arith.constant 6 : i32
    %208 = tpu.dynamic_rotate %161 by %c6_i32_62 dim 1 : vector<16x128xf32>, i32 -> vector<16x128xf32>
    %c40 = arith.constant 40 : index
    %c0_63 = arith.constant 0 : index
    %209 = vector.load %arg2[%c40, %c0_63] : memref<96x128xf32, #tpu.memory_space<vmem>>, vector<1x128xf32>
    %210 = vector.broadcast %209 : vector<1x128xf32> to vector<16x128xf32>
    %211 = arith.mulf %208, %210 : vector<16x128xf32>
    %212 = arith.addf %207, %211 : vector<16x128xf32>
    %c5_i32_64 = arith.constant 5 : i32
    %213 = tpu.dynamic_rotate %161 by %c5_i32_64 dim 1 : vector<16x128xf32>, i32 -> vector<16x128xf32>
    %c41 = arith.constant 41 : index
    %c0_65 = arith.constant 0 : index
    %214 = vector.load %arg2[%c41, %c0_65] : memref<96x128xf32, #tpu.memory_space<vmem>>, vector<1x128xf32>
    %215 = vector.broadcast %214 : vector<1x128xf32> to vector<16x128xf32>
    %216 = arith.mulf %213, %215 : vector<16x128xf32>
    %217 = arith.addf %212, %216 : vector<16x128xf32>
    %c4_i32_66 = arith.constant 4 : i32
    %218 = tpu.dynamic_rotate %161 by %c4_i32_66 dim 1 : vector<16x128xf32>, i32 -> vector<16x128xf32>
    %c42 = arith.constant 42 : index
    %c0_67 = arith.constant 0 : index
    %219 = vector.load %arg2[%c42, %c0_67] : memref<96x128xf32, #tpu.memory_space<vmem>>, vector<1x128xf32>
    %220 = vector.broadcast %219 : vector<1x128xf32> to vector<16x128xf32>
    %221 = arith.mulf %218, %220 : vector<16x128xf32>
    %222 = arith.addf %217, %221 : vector<16x128xf32>
    %c3_i32_68 = arith.constant 3 : i32
    %223 = tpu.dynamic_rotate %161 by %c3_i32_68 dim 1 : vector<16x128xf32>, i32 -> vector<16x128xf32>
    %c43 = arith.constant 43 : index
    %c0_69 = arith.constant 0 : index
    %224 = vector.load %arg2[%c43, %c0_69] : memref<96x128xf32, #tpu.memory_space<vmem>>, vector<1x128xf32>
    %225 = vector.broadcast %224 : vector<1x128xf32> to vector<16x128xf32>
    %226 = arith.mulf %223, %225 : vector<16x128xf32>
    %227 = arith.addf %222, %226 : vector<16x128xf32>
    %c2_i32_70 = arith.constant 2 : i32
    %228 = tpu.dynamic_rotate %161 by %c2_i32_70 dim 1 : vector<16x128xf32>, i32 -> vector<16x128xf32>
    %c44 = arith.constant 44 : index
    %c0_71 = arith.constant 0 : index
    %229 = vector.load %arg2[%c44, %c0_71] : memref<96x128xf32, #tpu.memory_space<vmem>>, vector<1x128xf32>
    %230 = vector.broadcast %229 : vector<1x128xf32> to vector<16x128xf32>
    %231 = arith.mulf %228, %230 : vector<16x128xf32>
    %232 = arith.addf %227, %231 : vector<16x128xf32>
    %c1_i32_72 = arith.constant 1 : i32
    %233 = tpu.dynamic_rotate %161 by %c1_i32_72 dim 1 : vector<16x128xf32>, i32 -> vector<16x128xf32>
    %c45 = arith.constant 45 : index
    %c0_73 = arith.constant 0 : index
    %234 = vector.load %arg2[%c45, %c0_73] : memref<96x128xf32, #tpu.memory_space<vmem>>, vector<1x128xf32>
    %235 = vector.broadcast %234 : vector<1x128xf32> to vector<16x128xf32>
    %236 = arith.mulf %233, %235 : vector<16x128xf32>
    %237 = arith.addf %232, %236 : vector<16x128xf32>
    %c46 = arith.constant 46 : index
    %c0_74 = arith.constant 0 : index
    %238 = vector.load %arg2[%c46, %c0_74] : memref<96x128xf32, #tpu.memory_space<vmem>>, vector<1x128xf32>
    %239 = vector.broadcast %238 : vector<1x128xf32> to vector<16x128xf32>
    %240 = arith.mulf %161, %239 : vector<16x128xf32>
    %241 = arith.addf %237, %240 : vector<16x128xf32>
    %c127_i32_75 = arith.constant 127 : i32
    %242 = tpu.dynamic_rotate %161 by %c127_i32_75 dim 1 : vector<16x128xf32>, i32 -> vector<16x128xf32>
    %c47 = arith.constant 47 : index
    %c0_76 = arith.constant 0 : index
    %243 = vector.load %arg2[%c47, %c0_76] : memref<96x128xf32, #tpu.memory_space<vmem>>, vector<1x128xf32>
    %244 = vector.broadcast %243 : vector<1x128xf32> to vector<16x128xf32>
    %245 = arith.mulf %242, %244 : vector<16x128xf32>
    %246 = arith.addf %241, %245 : vector<16x128xf32>
    %c126_i32_77 = arith.constant 126 : i32
    %247 = tpu.dynamic_rotate %161 by %c126_i32_77 dim 1 : vector<16x128xf32>, i32 -> vector<16x128xf32>
    %c48 = arith.constant 48 : index
    %c0_78 = arith.constant 0 : index
    %248 = vector.load %arg2[%c48, %c0_78] : memref<96x128xf32, #tpu.memory_space<vmem>>, vector<1x128xf32>
    %249 = vector.broadcast %248 : vector<1x128xf32> to vector<16x128xf32>
    %250 = arith.mulf %247, %249 : vector<16x128xf32>
    %251 = arith.addf %246, %250 : vector<16x128xf32>
    %c125_i32_79 = arith.constant 125 : i32
    %252 = tpu.dynamic_rotate %161 by %c125_i32_79 dim 1 : vector<16x128xf32>, i32 -> vector<16x128xf32>
    %c49 = arith.constant 49 : index
    %c0_80 = arith.constant 0 : index
    %253 = vector.load %arg2[%c49, %c0_80] : memref<96x128xf32, #tpu.memory_space<vmem>>, vector<1x128xf32>
    %254 = vector.broadcast %253 : vector<1x128xf32> to vector<16x128xf32>
    %255 = arith.mulf %252, %254 : vector<16x128xf32>
    %256 = arith.addf %251, %255 : vector<16x128xf32>
    %c124_i32_81 = arith.constant 124 : i32
    %257 = tpu.dynamic_rotate %161 by %c124_i32_81 dim 1 : vector<16x128xf32>, i32 -> vector<16x128xf32>
    %c50 = arith.constant 50 : index
    %c0_82 = arith.constant 0 : index
    %258 = vector.load %arg2[%c50, %c0_82] : memref<96x128xf32, #tpu.memory_space<vmem>>, vector<1x128xf32>
    %259 = vector.broadcast %258 : vector<1x128xf32> to vector<16x128xf32>
    %260 = arith.mulf %257, %259 : vector<16x128xf32>
    %261 = arith.addf %256, %260 : vector<16x128xf32>
    %c123_i32_83 = arith.constant 123 : i32
    %262 = tpu.dynamic_rotate %161 by %c123_i32_83 dim 1 : vector<16x128xf32>, i32 -> vector<16x128xf32>
    %c51 = arith.constant 51 : index
    %c0_84 = arith.constant 0 : index
    %263 = vector.load %arg2[%c51, %c0_84] : memref<96x128xf32, #tpu.memory_space<vmem>>, vector<1x128xf32>
    %264 = vector.broadcast %263 : vector<1x128xf32> to vector<16x128xf32>
    %265 = arith.mulf %262, %264 : vector<16x128xf32>
    %266 = arith.addf %261, %265 : vector<16x128xf32>
    %c122_i32_85 = arith.constant 122 : i32
    %267 = tpu.dynamic_rotate %161 by %c122_i32_85 dim 1 : vector<16x128xf32>, i32 -> vector<16x128xf32>
    %c52 = arith.constant 52 : index
    %c0_86 = arith.constant 0 : index
    %268 = vector.load %arg2[%c52, %c0_86] : memref<96x128xf32, #tpu.memory_space<vmem>>, vector<1x128xf32>
    %269 = vector.broadcast %268 : vector<1x128xf32> to vector<16x128xf32>
    %270 = arith.mulf %267, %269 : vector<16x128xf32>
    %271 = arith.addf %266, %270 : vector<16x128xf32>
    %c121_i32_87 = arith.constant 121 : i32
    %272 = tpu.dynamic_rotate %161 by %c121_i32_87 dim 1 : vector<16x128xf32>, i32 -> vector<16x128xf32>
    %c53 = arith.constant 53 : index
    %c0_88 = arith.constant 0 : index
    %273 = vector.load %arg2[%c53, %c0_88] : memref<96x128xf32, #tpu.memory_space<vmem>>, vector<1x128xf32>
    %274 = vector.broadcast %273 : vector<1x128xf32> to vector<16x128xf32>
    %275 = arith.mulf %272, %274 : vector<16x128xf32>
    %276 = arith.addf %271, %275 : vector<16x128xf32>
    %c120_i32_89 = arith.constant 120 : i32
    %277 = tpu.dynamic_rotate %161 by %c120_i32_89 dim 1 : vector<16x128xf32>, i32 -> vector<16x128xf32>
    %c54 = arith.constant 54 : index
    %c0_90 = arith.constant 0 : index
    %278 = vector.load %arg2[%c54, %c0_90] : memref<96x128xf32, #tpu.memory_space<vmem>>, vector<1x128xf32>
    %279 = vector.broadcast %278 : vector<1x128xf32> to vector<16x128xf32>
    %280 = arith.mulf %277, %279 : vector<16x128xf32>
    %281 = arith.addf %276, %280 : vector<16x128xf32>
    %c119_i32_91 = arith.constant 119 : i32
    %282 = tpu.dynamic_rotate %161 by %c119_i32_91 dim 1 : vector<16x128xf32>, i32 -> vector<16x128xf32>
    %c55 = arith.constant 55 : index
    %c0_92 = arith.constant 0 : index
    %283 = vector.load %arg2[%c55, %c0_92] : memref<96x128xf32, #tpu.memory_space<vmem>>, vector<1x128xf32>
    %284 = vector.broadcast %283 : vector<1x128xf32> to vector<16x128xf32>
    %285 = arith.mulf %282, %284 : vector<16x128xf32>
    %286 = arith.addf %281, %285 : vector<16x128xf32>
    %c118_i32_93 = arith.constant 118 : i32
    %287 = tpu.dynamic_rotate %161 by %c118_i32_93 dim 1 : vector<16x128xf32>, i32 -> vector<16x128xf32>
    %c56 = arith.constant 56 : index
    %c0_94 = arith.constant 0 : index
    %288 = vector.load %arg2[%c56, %c0_94] : memref<96x128xf32, #tpu.memory_space<vmem>>, vector<1x128xf32>
    %289 = vector.broadcast %288 : vector<1x128xf32> to vector<16x128xf32>
    %290 = arith.mulf %287, %289 : vector<16x128xf32>
    %291 = arith.addf %286, %290 : vector<16x128xf32>
    %c117_i32_95 = arith.constant 117 : i32
    %292 = tpu.dynamic_rotate %161 by %c117_i32_95 dim 1 : vector<16x128xf32>, i32 -> vector<16x128xf32>
    %c57 = arith.constant 57 : index
    %c0_96 = arith.constant 0 : index
    %293 = vector.load %arg2[%c57, %c0_96] : memref<96x128xf32, #tpu.memory_space<vmem>>, vector<1x128xf32>
    %294 = vector.broadcast %293 : vector<1x128xf32> to vector<16x128xf32>
    %295 = arith.mulf %292, %294 : vector<16x128xf32>
    %296 = arith.addf %291, %295 : vector<16x128xf32>
    %c116_i32_97 = arith.constant 116 : i32
    %297 = tpu.dynamic_rotate %161 by %c116_i32_97 dim 1 : vector<16x128xf32>, i32 -> vector<16x128xf32>
    %c58 = arith.constant 58 : index
    %c0_98 = arith.constant 0 : index
    %298 = vector.load %arg2[%c58, %c0_98] : memref<96x128xf32, #tpu.memory_space<vmem>>, vector<1x128xf32>
    %299 = vector.broadcast %298 : vector<1x128xf32> to vector<16x128xf32>
    %300 = arith.mulf %297, %299 : vector<16x128xf32>
    %301 = arith.addf %296, %300 : vector<16x128xf32>
    %c115_i32_99 = arith.constant 115 : i32
    %302 = tpu.dynamic_rotate %161 by %c115_i32_99 dim 1 : vector<16x128xf32>, i32 -> vector<16x128xf32>
    %c59 = arith.constant 59 : index
    %c0_100 = arith.constant 0 : index
    %303 = vector.load %arg2[%c59, %c0_100] : memref<96x128xf32, #tpu.memory_space<vmem>>, vector<1x128xf32>
    %304 = vector.broadcast %303 : vector<1x128xf32> to vector<16x128xf32>
    %305 = arith.mulf %302, %304 : vector<16x128xf32>
    %306 = arith.addf %301, %305 : vector<16x128xf32>
    %c114_i32_101 = arith.constant 114 : i32
    %307 = tpu.dynamic_rotate %161 by %c114_i32_101 dim 1 : vector<16x128xf32>, i32 -> vector<16x128xf32>
    %c60 = arith.constant 60 : index
    %c0_102 = arith.constant 0 : index
    %308 = vector.load %arg2[%c60, %c0_102] : memref<96x128xf32, #tpu.memory_space<vmem>>, vector<1x128xf32>
    %309 = vector.broadcast %308 : vector<1x128xf32> to vector<16x128xf32>
    %310 = arith.mulf %307, %309 : vector<16x128xf32>
    %311 = arith.addf %306, %310 : vector<16x128xf32>
    %c113_i32_103 = arith.constant 113 : i32
    %312 = tpu.dynamic_rotate %161 by %c113_i32_103 dim 1 : vector<16x128xf32>, i32 -> vector<16x128xf32>
    %c61 = arith.constant 61 : index
    %c0_104 = arith.constant 0 : index
    %313 = vector.load %arg2[%c61, %c0_104] : memref<96x128xf32, #tpu.memory_space<vmem>>, vector<1x128xf32>
    %314 = vector.broadcast %313 : vector<1x128xf32> to vector<16x128xf32>
    %315 = arith.mulf %312, %314 : vector<16x128xf32>
    %316 = arith.addf %311, %315 : vector<16x128xf32>
    %c9_105 = arith.constant 9 : index
    %c0_106 = arith.constant 0 : index
    %317 = vector.load %arg7[%c9_105, %c0_106] : memref<32x128xf32, #tpu.memory_space<vmem>>, vector<16x128xf32>
    %cst_107 = arith.constant 0.000000e+00 : f32
    %318 = vector.broadcast %cst_107 : f32 to vector<16x128xf32>
    %c15_i32_108 = arith.constant 15 : i32
    %319 = tpu.dynamic_rotate %317 by %c15_i32_108 dim 1 : vector<16x128xf32>, i32 -> vector<16x128xf32>
    %c62 = arith.constant 62 : index
    %c0_109 = arith.constant 0 : index
    %320 = vector.load %arg2[%c62, %c0_109] : memref<96x128xf32, #tpu.memory_space<vmem>>, vector<1x128xf32>
    %321 = vector.broadcast %320 : vector<1x128xf32> to vector<16x128xf32>
    %322 = arith.mulf %319, %321 : vector<16x128xf32>
    %323 = arith.addf %318, %322 : vector<16x128xf32>
    %c14_i32_110 = arith.constant 14 : i32
    %324 = tpu.dynamic_rotate %317 by %c14_i32_110 dim 1 : vector<16x128xf32>, i32 -> vector<16x128xf32>
    %c63 = arith.constant 63 : index
    %c0_111 = arith.constant 0 : index
    %325 = vector.load %arg2[%c63, %c0_111] : memref<96x128xf32, #tpu.memory_space<vmem>>, vector<1x128xf32>
    %326 = vector.broadcast %325 : vector<1x128xf32> to vector<16x128xf32>
    %327 = arith.mulf %324, %326 : vector<16x128xf32>
    %328 = arith.addf %323, %327 : vector<16x128xf32>
    %c13_i32_112 = arith.constant 13 : i32
    %329 = tpu.dynamic_rotate %317 by %c13_i32_112 dim 1 : vector<16x128xf32>, i32 -> vector<16x128xf32>
    %c64 = arith.constant 64 : index
    %c0_113 = arith.constant 0 : index
    %330 = vector.load %arg2[%c64, %c0_113] : memref<96x128xf32, #tpu.memory_space<vmem>>, vector<1x128xf32>
    %331 = vector.broadcast %330 : vector<1x128xf32> to vector<16x128xf32>
    %332 = arith.mulf %329, %331 : vector<16x128xf32>
    %333 = arith.addf %328, %332 : vector<16x128xf32>
    %c12_i32_114 = arith.constant 12 : i32
    %334 = tpu.dynamic_rotate %317 by %c12_i32_114 dim 1 : vector<16x128xf32>, i32 -> vector<16x128xf32>
    %c65 = arith.constant 65 : index
    %c0_115 = arith.constant 0 : index
    %335 = vector.load %arg2[%c65, %c0_115] : memref<96x128xf32, #tpu.memory_space<vmem>>, vector<1x128xf32>
    %336 = vector.broadcast %335 : vector<1x128xf32> to vector<16x128xf32>
    %337 = arith.mulf %334, %336 : vector<16x128xf32>
    %338 = arith.addf %333, %337 : vector<16x128xf32>
    %c11_i32_116 = arith.constant 11 : i32
    %339 = tpu.dynamic_rotate %317 by %c11_i32_116 dim 1 : vector<16x128xf32>, i32 -> vector<16x128xf32>
    %c66 = arith.constant 66 : index
    %c0_117 = arith.constant 0 : index
    %340 = vector.load %arg2[%c66, %c0_117] : memref<96x128xf32, #tpu.memory_space<vmem>>, vector<1x128xf32>
    %341 = vector.broadcast %340 : vector<1x128xf32> to vector<16x128xf32>
    %342 = arith.mulf %339, %341 : vector<16x128xf32>
    %343 = arith.addf %338, %342 : vector<16x128xf32>
    %c10_i32_118 = arith.constant 10 : i32
    %344 = tpu.dynamic_rotate %317 by %c10_i32_118 dim 1 : vector<16x128xf32>, i32 -> vector<16x128xf32>
    %c67 = arith.constant 67 : index
    %c0_119 = arith.constant 0 : index
    %345 = vector.load %arg2[%c67, %c0_119] : memref<96x128xf32, #tpu.memory_space<vmem>>, vector<1x128xf32>
    %346 = vector.broadcast %345 : vector<1x128xf32> to vector<16x128xf32>
    %347 = arith.mulf %344, %346 : vector<16x128xf32>
    %348 = arith.addf %343, %347 : vector<16x128xf32>
    %c9_i32_120 = arith.constant 9 : i32
    %349 = tpu.dynamic_rotate %317 by %c9_i32_120 dim 1 : vector<16x128xf32>, i32 -> vector<16x128xf32>
    %c68 = arith.constant 68 : index
    %c0_121 = arith.constant 0 : index
    %350 = vector.load %arg2[%c68, %c0_121] : memref<96x128xf32, #tpu.memory_space<vmem>>, vector<1x128xf32>
    %351 = vector.broadcast %350 : vector<1x128xf32> to vector<16x128xf32>
    %352 = arith.mulf %349, %351 : vector<16x128xf32>
    %353 = arith.addf %348, %352 : vector<16x128xf32>
    %c8_i32_122 = arith.constant 8 : i32
    %354 = tpu.dynamic_rotate %317 by %c8_i32_122 dim 1 : vector<16x128xf32>, i32 -> vector<16x128xf32>
    %c69 = arith.constant 69 : index
    %c0_123 = arith.constant 0 : index
    %355 = vector.load %arg2[%c69, %c0_123] : memref<96x128xf32, #tpu.memory_space<vmem>>, vector<1x128xf32>
    %356 = vector.broadcast %355 : vector<1x128xf32> to vector<16x128xf32>
    %357 = arith.mulf %354, %356 : vector<16x128xf32>
    %358 = arith.addf %353, %357 : vector<16x128xf32>
    %c7_i32_124 = arith.constant 7 : i32
    %359 = tpu.dynamic_rotate %317 by %c7_i32_124 dim 1 : vector<16x128xf32>, i32 -> vector<16x128xf32>
    %c70 = arith.constant 70 : index
    %c0_125 = arith.constant 0 : index
    %360 = vector.load %arg2[%c70, %c0_125] : memref<96x128xf32, #tpu.memory_space<vmem>>, vector<1x128xf32>
    %361 = vector.broadcast %360 : vector<1x128xf32> to vector<16x128xf32>
    %362 = arith.mulf %359, %361 : vector<16x128xf32>
    %363 = arith.addf %358, %362 : vector<16x128xf32>
    %c6_i32_126 = arith.constant 6 : i32
    %364 = tpu.dynamic_rotate %317 by %c6_i32_126 dim 1 : vector<16x128xf32>, i32 -> vector<16x128xf32>
    %c71 = arith.constant 71 : index
    %c0_127 = arith.constant 0 : index
    %365 = vector.load %arg2[%c71, %c0_127] : memref<96x128xf32, #tpu.memory_space<vmem>>, vector<1x128xf32>
    %366 = vector.broadcast %365 : vector<1x128xf32> to vector<16x128xf32>
    %367 = arith.mulf %364, %366 : vector<16x128xf32>
    %368 = arith.addf %363, %367 : vector<16x128xf32>
    %c5_i32_128 = arith.constant 5 : i32
    %369 = tpu.dynamic_rotate %317 by %c5_i32_128 dim 1 : vector<16x128xf32>, i32 -> vector<16x128xf32>
    %c72 = arith.constant 72 : index
    %c0_129 = arith.constant 0 : index
    %370 = vector.load %arg2[%c72, %c0_129] : memref<96x128xf32, #tpu.memory_space<vmem>>, vector<1x128xf32>
    %371 = vector.broadcast %370 : vector<1x128xf32> to vector<16x128xf32>
    %372 = arith.mulf %369, %371 : vector<16x128xf32>
    %373 = arith.addf %368, %372 : vector<16x128xf32>
    %c4_i32_130 = arith.constant 4 : i32
    %374 = tpu.dynamic_rotate %317 by %c4_i32_130 dim 1 : vector<16x128xf32>, i32 -> vector<16x128xf32>
    %c73 = arith.constant 73 : index
    %c0_131 = arith.constant 0 : index
    %375 = vector.load %arg2[%c73, %c0_131] : memref<96x128xf32, #tpu.memory_space<vmem>>, vector<1x128xf32>
    %376 = vector.broadcast %375 : vector<1x128xf32> to vector<16x128xf32>
    %377 = arith.mulf %374, %376 : vector<16x128xf32>
    %378 = arith.addf %373, %377 : vector<16x128xf32>
    %c3_i32_132 = arith.constant 3 : i32
    %379 = tpu.dynamic_rotate %317 by %c3_i32_132 dim 1 : vector<16x128xf32>, i32 -> vector<16x128xf32>
    %c74 = arith.constant 74 : index
    %c0_133 = arith.constant 0 : index
    %380 = vector.load %arg2[%c74, %c0_133] : memref<96x128xf32, #tpu.memory_space<vmem>>, vector<1x128xf32>
    %381 = vector.broadcast %380 : vector<1x128xf32> to vector<16x128xf32>
    %382 = arith.mulf %379, %381 : vector<16x128xf32>
    %383 = arith.addf %378, %382 : vector<16x128xf32>
    %c2_i32_134 = arith.constant 2 : i32
    %384 = tpu.dynamic_rotate %317 by %c2_i32_134 dim 1 : vector<16x128xf32>, i32 -> vector<16x128xf32>
    %c75 = arith.constant 75 : index
    %c0_135 = arith.constant 0 : index
    %385 = vector.load %arg2[%c75, %c0_135] : memref<96x128xf32, #tpu.memory_space<vmem>>, vector<1x128xf32>
    %386 = vector.broadcast %385 : vector<1x128xf32> to vector<16x128xf32>
    %387 = arith.mulf %384, %386 : vector<16x128xf32>
    %388 = arith.addf %383, %387 : vector<16x128xf32>
    %c1_i32_136 = arith.constant 1 : i32
    %389 = tpu.dynamic_rotate %317 by %c1_i32_136 dim 1 : vector<16x128xf32>, i32 -> vector<16x128xf32>
    %c76 = arith.constant 76 : index
    %c0_137 = arith.constant 0 : index
    %390 = vector.load %arg2[%c76, %c0_137] : memref<96x128xf32, #tpu.memory_space<vmem>>, vector<1x128xf32>
    %391 = vector.broadcast %390 : vector<1x128xf32> to vector<16x128xf32>
    %392 = arith.mulf %389, %391 : vector<16x128xf32>
    %393 = arith.addf %388, %392 : vector<16x128xf32>
    %c77 = arith.constant 77 : index
    %c0_138 = arith.constant 0 : index
    %394 = vector.load %arg2[%c77, %c0_138] : memref<96x128xf32, #tpu.memory_space<vmem>>, vector<1x128xf32>
    %395 = vector.broadcast %394 : vector<1x128xf32> to vector<16x128xf32>
    %396 = arith.mulf %317, %395 : vector<16x128xf32>
    %397 = arith.addf %393, %396 : vector<16x128xf32>
    %c127_i32_139 = arith.constant 127 : i32
    %398 = tpu.dynamic_rotate %317 by %c127_i32_139 dim 1 : vector<16x128xf32>, i32 -> vector<16x128xf32>
    %c78 = arith.constant 78 : index
    %c0_140 = arith.constant 0 : index
    %399 = vector.load %arg2[%c78, %c0_140] : memref<96x128xf32, #tpu.memory_space<vmem>>, vector<1x128xf32>
    %400 = vector.broadcast %399 : vector<1x128xf32> to vector<16x128xf32>
    %401 = arith.mulf %398, %400 : vector<16x128xf32>
    %402 = arith.addf %397, %401 : vector<16x128xf32>
    %c126_i32_141 = arith.constant 126 : i32
    %403 = tpu.dynamic_rotate %317 by %c126_i32_141 dim 1 : vector<16x128xf32>, i32 -> vector<16x128xf32>
    %c79 = arith.constant 79 : index
    %c0_142 = arith.constant 0 : index
    %404 = vector.load %arg2[%c79, %c0_142] : memref<96x128xf32, #tpu.memory_space<vmem>>, vector<1x128xf32>
    %405 = vector.broadcast %404 : vector<1x128xf32> to vector<16x128xf32>
    %406 = arith.mulf %403, %405 : vector<16x128xf32>
    %407 = arith.addf %402, %406 : vector<16x128xf32>
    %c125_i32_143 = arith.constant 125 : i32
    %408 = tpu.dynamic_rotate %317 by %c125_i32_143 dim 1 : vector<16x128xf32>, i32 -> vector<16x128xf32>
    %c80 = arith.constant 80 : index
    %c0_144 = arith.constant 0 : index
    %409 = vector.load %arg2[%c80, %c0_144] : memref<96x128xf32, #tpu.memory_space<vmem>>, vector<1x128xf32>
    %410 = vector.broadcast %409 : vector<1x128xf32> to vector<16x128xf32>
    %411 = arith.mulf %408, %410 : vector<16x128xf32>
    %412 = arith.addf %407, %411 : vector<16x128xf32>
    %c124_i32_145 = arith.constant 124 : i32
    %413 = tpu.dynamic_rotate %317 by %c124_i32_145 dim 1 : vector<16x128xf32>, i32 -> vector<16x128xf32>
    %c81 = arith.constant 81 : index
    %c0_146 = arith.constant 0 : index
    %414 = vector.load %arg2[%c81, %c0_146] : memref<96x128xf32, #tpu.memory_space<vmem>>, vector<1x128xf32>
    %415 = vector.broadcast %414 : vector<1x128xf32> to vector<16x128xf32>
    %416 = arith.mulf %413, %415 : vector<16x128xf32>
    %417 = arith.addf %412, %416 : vector<16x128xf32>
    %c123_i32_147 = arith.constant 123 : i32
    %418 = tpu.dynamic_rotate %317 by %c123_i32_147 dim 1 : vector<16x128xf32>, i32 -> vector<16x128xf32>
    %c82 = arith.constant 82 : index
    %c0_148 = arith.constant 0 : index
    %419 = vector.load %arg2[%c82, %c0_148] : memref<96x128xf32, #tpu.memory_space<vmem>>, vector<1x128xf32>
    %420 = vector.broadcast %419 : vector<1x128xf32> to vector<16x128xf32>
    %421 = arith.mulf %418, %420 : vector<16x128xf32>
    %422 = arith.addf %417, %421 : vector<16x128xf32>
    %c122_i32_149 = arith.constant 122 : i32
    %423 = tpu.dynamic_rotate %317 by %c122_i32_149 dim 1 : vector<16x128xf32>, i32 -> vector<16x128xf32>
    %c83 = arith.constant 83 : index
    %c0_150 = arith.constant 0 : index
    %424 = vector.load %arg2[%c83, %c0_150] : memref<96x128xf32, #tpu.memory_space<vmem>>, vector<1x128xf32>
    %425 = vector.broadcast %424 : vector<1x128xf32> to vector<16x128xf32>
    %426 = arith.mulf %423, %425 : vector<16x128xf32>
    %427 = arith.addf %422, %426 : vector<16x128xf32>
    %c121_i32_151 = arith.constant 121 : i32
    %428 = tpu.dynamic_rotate %317 by %c121_i32_151 dim 1 : vector<16x128xf32>, i32 -> vector<16x128xf32>
    %c84 = arith.constant 84 : index
    %c0_152 = arith.constant 0 : index
    %429 = vector.load %arg2[%c84, %c0_152] : memref<96x128xf32, #tpu.memory_space<vmem>>, vector<1x128xf32>
    %430 = vector.broadcast %429 : vector<1x128xf32> to vector<16x128xf32>
    %431 = arith.mulf %428, %430 : vector<16x128xf32>
    %432 = arith.addf %427, %431 : vector<16x128xf32>
    %c120_i32_153 = arith.constant 120 : i32
    %433 = tpu.dynamic_rotate %317 by %c120_i32_153 dim 1 : vector<16x128xf32>, i32 -> vector<16x128xf32>
    %c85 = arith.constant 85 : index
    %c0_154 = arith.constant 0 : index
    %434 = vector.load %arg2[%c85, %c0_154] : memref<96x128xf32, #tpu.memory_space<vmem>>, vector<1x128xf32>
    %435 = vector.broadcast %434 : vector<1x128xf32> to vector<16x128xf32>
    %436 = arith.mulf %433, %435 : vector<16x128xf32>
    %437 = arith.addf %432, %436 : vector<16x128xf32>
    %c119_i32_155 = arith.constant 119 : i32
    %438 = tpu.dynamic_rotate %317 by %c119_i32_155 dim 1 : vector<16x128xf32>, i32 -> vector<16x128xf32>
    %c86 = arith.constant 86 : index
    %c0_156 = arith.constant 0 : index
    %439 = vector.load %arg2[%c86, %c0_156] : memref<96x128xf32, #tpu.memory_space<vmem>>, vector<1x128xf32>
    %440 = vector.broadcast %439 : vector<1x128xf32> to vector<16x128xf32>
    %441 = arith.mulf %438, %440 : vector<16x128xf32>
    %442 = arith.addf %437, %441 : vector<16x128xf32>
    %c118_i32_157 = arith.constant 118 : i32
    %443 = tpu.dynamic_rotate %317 by %c118_i32_157 dim 1 : vector<16x128xf32>, i32 -> vector<16x128xf32>
    %c87 = arith.constant 87 : index
    %c0_158 = arith.constant 0 : index
    %444 = vector.load %arg2[%c87, %c0_158] : memref<96x128xf32, #tpu.memory_space<vmem>>, vector<1x128xf32>
    %445 = vector.broadcast %444 : vector<1x128xf32> to vector<16x128xf32>
    %446 = arith.mulf %443, %445 : vector<16x128xf32>
    %447 = arith.addf %442, %446 : vector<16x128xf32>
    %c117_i32_159 = arith.constant 117 : i32
    %448 = tpu.dynamic_rotate %317 by %c117_i32_159 dim 1 : vector<16x128xf32>, i32 -> vector<16x128xf32>
    %c88 = arith.constant 88 : index
    %c0_160 = arith.constant 0 : index
    %449 = vector.load %arg2[%c88, %c0_160] : memref<96x128xf32, #tpu.memory_space<vmem>>, vector<1x128xf32>
    %450 = vector.broadcast %449 : vector<1x128xf32> to vector<16x128xf32>
    %451 = arith.mulf %448, %450 : vector<16x128xf32>
    %452 = arith.addf %447, %451 : vector<16x128xf32>
    %c116_i32_161 = arith.constant 116 : i32
    %453 = tpu.dynamic_rotate %317 by %c116_i32_161 dim 1 : vector<16x128xf32>, i32 -> vector<16x128xf32>
    %c89 = arith.constant 89 : index
    %c0_162 = arith.constant 0 : index
    %454 = vector.load %arg2[%c89, %c0_162] : memref<96x128xf32, #tpu.memory_space<vmem>>, vector<1x128xf32>
    %455 = vector.broadcast %454 : vector<1x128xf32> to vector<16x128xf32>
    %456 = arith.mulf %453, %455 : vector<16x128xf32>
    %457 = arith.addf %452, %456 : vector<16x128xf32>
    %c115_i32_163 = arith.constant 115 : i32
    %458 = tpu.dynamic_rotate %317 by %c115_i32_163 dim 1 : vector<16x128xf32>, i32 -> vector<16x128xf32>
    %c90 = arith.constant 90 : index
    %c0_164 = arith.constant 0 : index
    %459 = vector.load %arg2[%c90, %c0_164] : memref<96x128xf32, #tpu.memory_space<vmem>>, vector<1x128xf32>
    %460 = vector.broadcast %459 : vector<1x128xf32> to vector<16x128xf32>
    %461 = arith.mulf %458, %460 : vector<16x128xf32>
    %462 = arith.addf %457, %461 : vector<16x128xf32>
    %c114_i32_165 = arith.constant 114 : i32
    %463 = tpu.dynamic_rotate %317 by %c114_i32_165 dim 1 : vector<16x128xf32>, i32 -> vector<16x128xf32>
    %c91 = arith.constant 91 : index
    %c0_166 = arith.constant 0 : index
    %464 = vector.load %arg2[%c91, %c0_166] : memref<96x128xf32, #tpu.memory_space<vmem>>, vector<1x128xf32>
    %465 = vector.broadcast %464 : vector<1x128xf32> to vector<16x128xf32>
    %466 = arith.mulf %463, %465 : vector<16x128xf32>
    %467 = arith.addf %462, %466 : vector<16x128xf32>
    %c113_i32_167 = arith.constant 113 : i32
    %468 = tpu.dynamic_rotate %317 by %c113_i32_167 dim 1 : vector<16x128xf32>, i32 -> vector<16x128xf32>
    %c92 = arith.constant 92 : index
    %c0_168 = arith.constant 0 : index
    %469 = vector.load %arg2[%c92, %c0_168] : memref<96x128xf32, #tpu.memory_space<vmem>>, vector<1x128xf32>
    %470 = vector.broadcast %469 : vector<1x128xf32> to vector<16x128xf32>
    %471 = arith.mulf %468, %470 : vector<16x128xf32>
    %472 = arith.addf %467, %471 : vector<16x128xf32>
    %473 = arith.addf %160, %316 : vector<16x128xf32>
    %474 = arith.addf %473, %472 : vector<16x128xf32>
    %c0_169 = arith.constant 0 : index
    %c0_170 = arith.constant 0 : index
    %475 = vector.load %arg3[%c0_169, %c0_170] : memref<1x128xf32, #tpu.memory_space<vmem>>, vector<1x128xf32>
    %476 = vector.broadcast %475 : vector<1x128xf32> to vector<16x128xf32>
    %477 = arith.addf %474, %476 : vector<16x128xf32>
    %cst_171 = arith.constant 0.000000e+00 : f32
    %478 = vector.broadcast %cst_171 : f32 to vector<16x128xf32>
    %479 = arith.maximumf %477, %478 : vector<16x128xf32>
    %c8_172 = arith.constant 8 : index
    %c0_173 = arith.constant 0 : index
    %480 = vector.load %arg7[%c8_172, %c0_173] : memref<32x128xf32, #tpu.memory_space<vmem>>, vector<16x128xf32>
    tpu.vector_store %arg7[%c8_172, %c0_173], %479 {strides = array<i32>} : memref<32x128xf32, #tpu.memory_space<vmem>>, vector<16x128xf32>,
    %c7_174 = arith.constant 7 : index
    %c0_175 = arith.constant 0 : index
    %481 = vector.load %arg7[%c7_174, %c0_175] : memref<32x128xf32, #tpu.memory_space<vmem>>, vector<16x128xf32>
    %cst_176 = arith.constant 0.000000e+00 : f32
    %482 = vector.broadcast %cst_176 : f32 to vector<16x128xf32>
    %c15_i32_177 = arith.constant 15 : i32
    %483 = tpu.dynamic_rotate %481 by %c15_i32_177 dim 1 : vector<16x128xf32>, i32 -> vector<16x128xf32>
    %c0_178 = arith.constant 0 : index
    %c0_179 = arith.constant 0 : index
    %484 = vector.load %arg4[%c0_178, %c0_179] : memref<96x128xf32, #tpu.memory_space<vmem>>, vector<1x128xf32>
    %485 = vector.broadcast %484 : vector<1x128xf32> to vector<16x128xf32>
    %486 = arith.mulf %483, %485 : vector<16x128xf32>
    %487 = arith.addf %482, %486 : vector<16x128xf32>
    %c14_i32_180 = arith.constant 14 : i32
    %488 = tpu.dynamic_rotate %481 by %c14_i32_180 dim 1 : vector<16x128xf32>, i32 -> vector<16x128xf32>
    %c1_181 = arith.constant 1 : index
    %c0_182 = arith.constant 0 : index
    %489 = vector.load %arg4[%c1_181, %c0_182] : memref<96x128xf32, #tpu.memory_space<vmem>>, vector<1x128xf32>
    %490 = vector.broadcast %489 : vector<1x128xf32> to vector<16x128xf32>
    %491 = arith.mulf %488, %490 : vector<16x128xf32>
    %492 = arith.addf %487, %491 : vector<16x128xf32>
    %c13_i32_183 = arith.constant 13 : i32
    %493 = tpu.dynamic_rotate %481 by %c13_i32_183 dim 1 : vector<16x128xf32>, i32 -> vector<16x128xf32>
    %c2_184 = arith.constant 2 : index
    %c0_185 = arith.constant 0 : index
    %494 = vector.load %arg4[%c2_184, %c0_185] : memref<96x128xf32, #tpu.memory_space<vmem>>, vector<1x128xf32>
    %495 = vector.broadcast %494 : vector<1x128xf32> to vector<16x128xf32>
    %496 = arith.mulf %493, %495 : vector<16x128xf32>
    %497 = arith.addf %492, %496 : vector<16x128xf32>
    %c12_i32_186 = arith.constant 12 : i32
    %498 = tpu.dynamic_rotate %481 by %c12_i32_186 dim 1 : vector<16x128xf32>, i32 -> vector<16x128xf32>
    %c3_187 = arith.constant 3 : index
    %c0_188 = arith.constant 0 : index
    %499 = vector.load %arg4[%c3_187, %c0_188] : memref<96x128xf32, #tpu.memory_space<vmem>>, vector<1x128xf32>
    %500 = vector.broadcast %499 : vector<1x128xf32> to vector<16x128xf32>
    %501 = arith.mulf %498, %500 : vector<16x128xf32>
    %502 = arith.addf %497, %501 : vector<16x128xf32>
    %c11_i32_189 = arith.constant 11 : i32
    %503 = tpu.dynamic_rotate %481 by %c11_i32_189 dim 1 : vector<16x128xf32>, i32 -> vector<16x128xf32>
    %c4_190 = arith.constant 4 : index
    %c0_191 = arith.constant 0 : index
    %504 = vector.load %arg4[%c4_190, %c0_191] : memref<96x128xf32, #tpu.memory_space<vmem>>, vector<1x128xf32>
    %505 = vector.broadcast %504 : vector<1x128xf32> to vector<16x128xf32>
    %506 = arith.mulf %503, %505 : vector<16x128xf32>
    %507 = arith.addf %502, %506 : vector<16x128xf32>
    %c10_i32_192 = arith.constant 10 : i32
    %508 = tpu.dynamic_rotate %481 by %c10_i32_192 dim 1 : vector<16x128xf32>, i32 -> vector<16x128xf32>
    %c5_193 = arith.constant 5 : index
    %c0_194 = arith.constant 0 : index
    %509 = vector.load %arg4[%c5_193, %c0_194] : memref<96x128xf32, #tpu.memory_space<vmem>>, vector<1x128xf32>
    %510 = vector.broadcast %509 : vector<1x128xf32> to vector<16x128xf32>
    %511 = arith.mulf %508, %510 : vector<16x128xf32>
    %512 = arith.addf %507, %511 : vector<16x128xf32>
    %c9_i32_195 = arith.constant 9 : i32
    %513 = tpu.dynamic_rotate %481 by %c9_i32_195 dim 1 : vector<16x128xf32>, i32 -> vector<16x128xf32>
    %c6_196 = arith.constant 6 : index
    %c0_197 = arith.constant 0 : index
    %514 = vector.load %arg4[%c6_196, %c0_197] : memref<96x128xf32, #tpu.memory_space<vmem>>, vector<1x128xf32>
    %515 = vector.broadcast %514 : vector<1x128xf32> to vector<16x128xf32>
    %516 = arith.mulf %513, %515 : vector<16x128xf32>
    %517 = arith.addf %512, %516 : vector<16x128xf32>
    %c8_i32_198 = arith.constant 8 : i32
    %518 = tpu.dynamic_rotate %481 by %c8_i32_198 dim 1 : vector<16x128xf32>, i32 -> vector<16x128xf32>
    %c7_199 = arith.constant 7 : index
    %c0_200 = arith.constant 0 : index
    %519 = vector.load %arg4[%c7_199, %c0_200] : memref<96x128xf32, #tpu.memory_space<vmem>>, vector<1x128xf32>
    %520 = vector.broadcast %519 : vector<1x128xf32> to vector<16x128xf32>
    %521 = arith.mulf %518, %520 : vector<16x128xf32>
    %522 = arith.addf %517, %521 : vector<16x128xf32>
    %c7_i32_201 = arith.constant 7 : i32
    %523 = tpu.dynamic_rotate %481 by %c7_i32_201 dim 1 : vector<16x128xf32>, i32 -> vector<16x128xf32>
    %c8_202 = arith.constant 8 : index
    %c0_203 = arith.constant 0 : index
    %524 = vector.load %arg4[%c8_202, %c0_203] : memref<96x128xf32, #tpu.memory_space<vmem>>, vector<1x128xf32>
    %525 = vector.broadcast %524 : vector<1x128xf32> to vector<16x128xf32>
    %526 = arith.mulf %523, %525 : vector<16x128xf32>
    %527 = arith.addf %522, %526 : vector<16x128xf32>
    %c6_i32_204 = arith.constant 6 : i32
    %528 = tpu.dynamic_rotate %481 by %c6_i32_204 dim 1 : vector<16x128xf32>, i32 -> vector<16x128xf32>
    %c9_205 = arith.constant 9 : index
    %c0_206 = arith.constant 0 : index
    %529 = vector.load %arg4[%c9_205, %c0_206] : memref<96x128xf32, #tpu.memory_space<vmem>>, vector<1x128xf32>
    %530 = vector.broadcast %529 : vector<1x128xf32> to vector<16x128xf32>
    %531 = arith.mulf %528, %530 : vector<16x128xf32>
    %532 = arith.addf %527, %531 : vector<16x128xf32>
    %c5_i32_207 = arith.constant 5 : i32
    %533 = tpu.dynamic_rotate %481 by %c5_i32_207 dim 1 : vector<16x128xf32>, i32 -> vector<16x128xf32>
    %c10_208 = arith.constant 10 : index
    %c0_209 = arith.constant 0 : index
    %534 = vector.load %arg4[%c10_208, %c0_209] : memref<96x128xf32, #tpu.memory_space<vmem>>, vector<1x128xf32>
    %535 = vector.broadcast %534 : vector<1x128xf32> to vector<16x128xf32>
    %536 = arith.mulf %533, %535 : vector<16x128xf32>
    %537 = arith.addf %532, %536 : vector<16x128xf32>
    %c4_i32_210 = arith.constant 4 : i32
    %538 = tpu.dynamic_rotate %481 by %c4_i32_210 dim 1 : vector<16x128xf32>, i32 -> vector<16x128xf32>
    %c11_211 = arith.constant 11 : index
    %c0_212 = arith.constant 0 : index
    %539 = vector.load %arg4[%c11_211, %c0_212] : memref<96x128xf32, #tpu.memory_space<vmem>>, vector<1x128xf32>
    %540 = vector.broadcast %539 : vector<1x128xf32> to vector<16x128xf32>
    %541 = arith.mulf %538, %540 : vector<16x128xf32>
    %542 = arith.addf %537, %541 : vector<16x128xf32>
    %c3_i32_213 = arith.constant 3 : i32
    %543 = tpu.dynamic_rotate %481 by %c3_i32_213 dim 1 : vector<16x128xf32>, i32 -> vector<16x128xf32>
    %c12_214 = arith.constant 12 : index
    %c0_215 = arith.constant 0 : index
    %544 = vector.load %arg4[%c12_214, %c0_215] : memref<96x128xf32, #tpu.memory_space<vmem>>, vector<1x128xf32>
    %545 = vector.broadcast %544 : vector<1x128xf32> to vector<16x128xf32>
    %546 = arith.mulf %543, %545 : vector<16x128xf32>
    %547 = arith.addf %542, %546 : vector<16x128xf32>
    %c2_i32_216 = arith.constant 2 : i32
    %548 = tpu.dynamic_rotate %481 by %c2_i32_216 dim 1 : vector<16x128xf32>, i32 -> vector<16x128xf32>
    %c13_217 = arith.constant 13 : index
    %c0_218 = arith.constant 0 : index
    %549 = vector.load %arg4[%c13_217, %c0_218] : memref<96x128xf32, #tpu.memory_space<vmem>>, vector<1x128xf32>
    %550 = vector.broadcast %549 : vector<1x128xf32> to vector<16x128xf32>
    %551 = arith.mulf %548, %550 : vector<16x128xf32>
    %552 = arith.addf %547, %551 : vector<16x128xf32>
    %c1_i32_219 = arith.constant 1 : i32
    %553 = tpu.dynamic_rotate %481 by %c1_i32_219 dim 1 : vector<16x128xf32>, i32 -> vector<16x128xf32>
    %c14_220 = arith.constant 14 : index
    %c0_221 = arith.constant 0 : index
    %554 = vector.load %arg4[%c14_220, %c0_221] : memref<96x128xf32, #tpu.memory_space<vmem>>, vector<1x128xf32>
    %555 = vector.broadcast %554 : vector<1x128xf32> to vector<16x128xf32>
    %556 = arith.mulf %553, %555 : vector<16x128xf32>
    %557 = arith.addf %552, %556 : vector<16x128xf32>
    %c15_222 = arith.constant 15 : index
    %c0_223 = arith.constant 0 : index
    %558 = vector.load %arg4[%c15_222, %c0_223] : memref<96x128xf32, #tpu.memory_space<vmem>>, vector<1x128xf32>
    %559 = vector.broadcast %558 : vector<1x128xf32> to vector<16x128xf32>
    %560 = arith.mulf %481, %559 : vector<16x128xf32>
    %561 = arith.addf %557, %560 : vector<16x128xf32>
    %c127_i32_224 = arith.constant 127 : i32
    %562 = tpu.dynamic_rotate %481 by %c127_i32_224 dim 1 : vector<16x128xf32>, i32 -> vector<16x128xf32>
    %c16_225 = arith.constant 16 : index
    %c0_226 = arith.constant 0 : index
    %563 = vector.load %arg4[%c16_225, %c0_226] : memref<96x128xf32, #tpu.memory_space<vmem>>, vector<1x128xf32>
    %564 = vector.broadcast %563 : vector<1x128xf32> to vector<16x128xf32>
    %565 = arith.mulf %562, %564 : vector<16x128xf32>
    %566 = arith.addf %561, %565 : vector<16x128xf32>
    %c126_i32_227 = arith.constant 126 : i32
    %567 = tpu.dynamic_rotate %481 by %c126_i32_227 dim 1 : vector<16x128xf32>, i32 -> vector<16x128xf32>
    %c17_228 = arith.constant 17 : index
    %c0_229 = arith.constant 0 : index
    %568 = vector.load %arg4[%c17_228, %c0_229] : memref<96x128xf32, #tpu.memory_space<vmem>>, vector<1x128xf32>
    %569 = vector.broadcast %568 : vector<1x128xf32> to vector<16x128xf32>
    %570 = arith.mulf %567, %569 : vector<16x128xf32>
    %571 = arith.addf %566, %570 : vector<16x128xf32>
    %c125_i32_230 = arith.constant 125 : i32
    %572 = tpu.dynamic_rotate %481 by %c125_i32_230 dim 1 : vector<16x128xf32>, i32 -> vector<16x128xf32>
    %c18_231 = arith.constant 18 : index
    %c0_232 = arith.constant 0 : index
    %573 = vector.load %arg4[%c18_231, %c0_232] : memref<96x128xf32, #tpu.memory_space<vmem>>, vector<1x128xf32>
    %574 = vector.broadcast %573 : vector<1x128xf32> to vector<16x128xf32>
    %575 = arith.mulf %572, %574 : vector<16x128xf32>
    %576 = arith.addf %571, %575 : vector<16x128xf32>
    %c124_i32_233 = arith.constant 124 : i32
    %577 = tpu.dynamic_rotate %481 by %c124_i32_233 dim 1 : vector<16x128xf32>, i32 -> vector<16x128xf32>
    %c19_234 = arith.constant 19 : index
    %c0_235 = arith.constant 0 : index
    %578 = vector.load %arg4[%c19_234, %c0_235] : memref<96x128xf32, #tpu.memory_space<vmem>>, vector<1x128xf32>
    %579 = vector.broadcast %578 : vector<1x128xf32> to vector<16x128xf32>
    %580 = arith.mulf %577, %579 : vector<16x128xf32>
    %581 = arith.addf %576, %580 : vector<16x128xf32>
    %c123_i32_236 = arith.constant 123 : i32
    %582 = tpu.dynamic_rotate %481 by %c123_i32_236 dim 1 : vector<16x128xf32>, i32 -> vector<16x128xf32>
    %c20_237 = arith.constant 20 : index
    %c0_238 = arith.constant 0 : index
    %583 = vector.load %arg4[%c20_237, %c0_238] : memref<96x128xf32, #tpu.memory_space<vmem>>, vector<1x128xf32>
    %584 = vector.broadcast %583 : vector<1x128xf32> to vector<16x128xf32>
    %585 = arith.mulf %582, %584 : vector<16x128xf32>
    %586 = arith.addf %581, %585 : vector<16x128xf32>
    %c122_i32_239 = arith.constant 122 : i32
    %587 = tpu.dynamic_rotate %481 by %c122_i32_239 dim 1 : vector<16x128xf32>, i32 -> vector<16x128xf32>
    %c21_240 = arith.constant 21 : index
    %c0_241 = arith.constant 0 : index
    %588 = vector.load %arg4[%c21_240, %c0_241] : memref<96x128xf32, #tpu.memory_space<vmem>>, vector<1x128xf32>
    %589 = vector.broadcast %588 : vector<1x128xf32> to vector<16x128xf32>
    %590 = arith.mulf %587, %589 : vector<16x128xf32>
    %591 = arith.addf %586, %590 : vector<16x128xf32>
    %c121_i32_242 = arith.constant 121 : i32
    %592 = tpu.dynamic_rotate %481 by %c121_i32_242 dim 1 : vector<16x128xf32>, i32 -> vector<16x128xf32>
    %c22_243 = arith.constant 22 : index
    %c0_244 = arith.constant 0 : index
    %593 = vector.load %arg4[%c22_243, %c0_244] : memref<96x128xf32, #tpu.memory_space<vmem>>, vector<1x128xf32>
    %594 = vector.broadcast %593 : vector<1x128xf32> to vector<16x128xf32>
    %595 = arith.mulf %592, %594 : vector<16x128xf32>
    %596 = arith.addf %591, %595 : vector<16x128xf32>
    %c120_i32_245 = arith.constant 120 : i32
    %597 = tpu.dynamic_rotate %481 by %c120_i32_245 dim 1 : vector<16x128xf32>, i32 -> vector<16x128xf32>
    %c23_246 = arith.constant 23 : index
    %c0_247 = arith.constant 0 : index
    %598 = vector.load %arg4[%c23_246, %c0_247] : memref<96x128xf32, #tpu.memory_space<vmem>>, vector<1x128xf32>
    %599 = vector.broadcast %598 : vector<1x128xf32> to vector<16x128xf32>
    %600 = arith.mulf %597, %599 : vector<16x128xf32>
    %601 = arith.addf %596, %600 : vector<16x128xf32>
    %c119_i32_248 = arith.constant 119 : i32
    %602 = tpu.dynamic_rotate %481 by %c119_i32_248 dim 1 : vector<16x128xf32>, i32 -> vector<16x128xf32>
    %c24_249 = arith.constant 24 : index
    %c0_250 = arith.constant 0 : index
    %603 = vector.load %arg4[%c24_249, %c0_250] : memref<96x128xf32, #tpu.memory_space<vmem>>, vector<1x128xf32>
    %604 = vector.broadcast %603 : vector<1x128xf32> to vector<16x128xf32>
    %605 = arith.mulf %602, %604 : vector<16x128xf32>
    %606 = arith.addf %601, %605 : vector<16x128xf32>
    %c118_i32_251 = arith.constant 118 : i32
    %607 = tpu.dynamic_rotate %481 by %c118_i32_251 dim 1 : vector<16x128xf32>, i32 -> vector<16x128xf32>
    %c25_252 = arith.constant 25 : index
    %c0_253 = arith.constant 0 : index
    %608 = vector.load %arg4[%c25_252, %c0_253] : memref<96x128xf32, #tpu.memory_space<vmem>>, vector<1x128xf32>
    %609 = vector.broadcast %608 : vector<1x128xf32> to vector<16x128xf32>
    %610 = arith.mulf %607, %609 : vector<16x128xf32>
    %611 = arith.addf %606, %610 : vector<16x128xf32>
    %c117_i32_254 = arith.constant 117 : i32
    %612 = tpu.dynamic_rotate %481 by %c117_i32_254 dim 1 : vector<16x128xf32>, i32 -> vector<16x128xf32>
    %c26_255 = arith.constant 26 : index
    %c0_256 = arith.constant 0 : index
    %613 = vector.load %arg4[%c26_255, %c0_256] : memref<96x128xf32, #tpu.memory_space<vmem>>, vector<1x128xf32>
    %614 = vector.broadcast %613 : vector<1x128xf32> to vector<16x128xf32>
    %615 = arith.mulf %612, %614 : vector<16x128xf32>
    %616 = arith.addf %611, %615 : vector<16x128xf32>
    %c116_i32_257 = arith.constant 116 : i32
    %617 = tpu.dynamic_rotate %481 by %c116_i32_257 dim 1 : vector<16x128xf32>, i32 -> vector<16x128xf32>
    %c27_258 = arith.constant 27 : index
    %c0_259 = arith.constant 0 : index
    %618 = vector.load %arg4[%c27_258, %c0_259] : memref<96x128xf32, #tpu.memory_space<vmem>>, vector<1x128xf32>
    %619 = vector.broadcast %618 : vector<1x128xf32> to vector<16x128xf32>
    %620 = arith.mulf %617, %619 : vector<16x128xf32>
    %621 = arith.addf %616, %620 : vector<16x128xf32>
    %c115_i32_260 = arith.constant 115 : i32
    %622 = tpu.dynamic_rotate %481 by %c115_i32_260 dim 1 : vector<16x128xf32>, i32 -> vector<16x128xf32>
    %c28_261 = arith.constant 28 : index
    %c0_262 = arith.constant 0 : index
    %623 = vector.load %arg4[%c28_261, %c0_262] : memref<96x128xf32, #tpu.memory_space<vmem>>, vector<1x128xf32>
    %624 = vector.broadcast %623 : vector<1x128xf32> to vector<16x128xf32>
    %625 = arith.mulf %622, %624 : vector<16x128xf32>
    %626 = arith.addf %621, %625 : vector<16x128xf32>
    %c114_i32_263 = arith.constant 114 : i32
    %627 = tpu.dynamic_rotate %481 by %c114_i32_263 dim 1 : vector<16x128xf32>, i32 -> vector<16x128xf32>
    %c29_264 = arith.constant 29 : index
    %c0_265 = arith.constant 0 : index
    %628 = vector.load %arg4[%c29_264, %c0_265] : memref<96x128xf32, #tpu.memory_space<vmem>>, vector<1x128xf32>
    %629 = vector.broadcast %628 : vector<1x128xf32> to vector<16x128xf32>
    %630 = arith.mulf %627, %629 : vector<16x128xf32>
    %631 = arith.addf %626, %630 : vector<16x128xf32>
    %c113_i32_266 = arith.constant 113 : i32
    %632 = tpu.dynamic_rotate %481 by %c113_i32_266 dim 1 : vector<16x128xf32>, i32 -> vector<16x128xf32>
    %c30_267 = arith.constant 30 : index
    %c0_268 = arith.constant 0 : index
    %633 = vector.load %arg4[%c30_267, %c0_268] : memref<96x128xf32, #tpu.memory_space<vmem>>, vector<1x128xf32>
    %634 = vector.broadcast %633 : vector<1x128xf32> to vector<16x128xf32>
    %635 = arith.mulf %632, %634 : vector<16x128xf32>
    %636 = arith.addf %631, %635 : vector<16x128xf32>
    %c8_269 = arith.constant 8 : index
    %c0_270 = arith.constant 0 : index
    %637 = vector.load %arg7[%c8_269, %c0_270] : memref<32x128xf32, #tpu.memory_space<vmem>>, vector<16x128xf32>
    %cst_271 = arith.constant 0.000000e+00 : f32
    %638 = vector.broadcast %cst_271 : f32 to vector<16x128xf32>
    %c15_i32_272 = arith.constant 15 : i32
    %639 = tpu.dynamic_rotate %637 by %c15_i32_272 dim 1 : vector<16x128xf32>, i32 -> vector<16x128xf32>
    %c31_273 = arith.constant 31 : index
    %c0_274 = arith.constant 0 : index
    %640 = vector.load %arg4[%c31_273, %c0_274] : memref<96x128xf32, #tpu.memory_space<vmem>>, vector<1x128xf32>
    %641 = vector.broadcast %640 : vector<1x128xf32> to vector<16x128xf32>
    %642 = arith.mulf %639, %641 : vector<16x128xf32>
    %643 = arith.addf %638, %642 : vector<16x128xf32>
    %c14_i32_275 = arith.constant 14 : i32
    %644 = tpu.dynamic_rotate %637 by %c14_i32_275 dim 1 : vector<16x128xf32>, i32 -> vector<16x128xf32>
    %c32_276 = arith.constant 32 : index
    %c0_277 = arith.constant 0 : index
    %645 = vector.load %arg4[%c32_276, %c0_277] : memref<96x128xf32, #tpu.memory_space<vmem>>, vector<1x128xf32>
    %646 = vector.broadcast %645 : vector<1x128xf32> to vector<16x128xf32>
    %647 = arith.mulf %644, %646 : vector<16x128xf32>
    %648 = arith.addf %643, %647 : vector<16x128xf32>
    %c13_i32_278 = arith.constant 13 : i32
    %649 = tpu.dynamic_rotate %637 by %c13_i32_278 dim 1 : vector<16x128xf32>, i32 -> vector<16x128xf32>
    %c33_279 = arith.constant 33 : index
    %c0_280 = arith.constant 0 : index
    %650 = vector.load %arg4[%c33_279, %c0_280] : memref<96x128xf32, #tpu.memory_space<vmem>>, vector<1x128xf32>
    %651 = vector.broadcast %650 : vector<1x128xf32> to vector<16x128xf32>
    %652 = arith.mulf %649, %651 : vector<16x128xf32>
    %653 = arith.addf %648, %652 : vector<16x128xf32>
    %c12_i32_281 = arith.constant 12 : i32
    %654 = tpu.dynamic_rotate %637 by %c12_i32_281 dim 1 : vector<16x128xf32>, i32 -> vector<16x128xf32>
    %c34_282 = arith.constant 34 : index
    %c0_283 = arith.constant 0 : index
    %655 = vector.load %arg4[%c34_282, %c0_283] : memref<96x128xf32, #tpu.memory_space<vmem>>, vector<1x128xf32>
    %656 = vector.broadcast %655 : vector<1x128xf32> to vector<16x128xf32>
    %657 = arith.mulf %654, %656 : vector<16x128xf32>
    %658 = arith.addf %653, %657 : vector<16x128xf32>
    %c11_i32_284 = arith.constant 11 : i32
    %659 = tpu.dynamic_rotate %637 by %c11_i32_284 dim 1 : vector<16x128xf32>, i32 -> vector<16x128xf32>
    %c35_285 = arith.constant 35 : index
    %c0_286 = arith.constant 0 : index
    %660 = vector.load %arg4[%c35_285, %c0_286] : memref<96x128xf32, #tpu.memory_space<vmem>>, vector<1x128xf32>
    %661 = vector.broadcast %660 : vector<1x128xf32> to vector<16x128xf32>
    %662 = arith.mulf %659, %661 : vector<16x128xf32>
    %663 = arith.addf %658, %662 : vector<16x128xf32>
    %c10_i32_287 = arith.constant 10 : i32
    %664 = tpu.dynamic_rotate %637 by %c10_i32_287 dim 1 : vector<16x128xf32>, i32 -> vector<16x128xf32>
    %c36_288 = arith.constant 36 : index
    %c0_289 = arith.constant 0 : index
    %665 = vector.load %arg4[%c36_288, %c0_289] : memref<96x128xf32, #tpu.memory_space<vmem>>, vector<1x128xf32>
    %666 = vector.broadcast %665 : vector<1x128xf32> to vector<16x128xf32>
    %667 = arith.mulf %664, %666 : vector<16x128xf32>
    %668 = arith.addf %663, %667 : vector<16x128xf32>
    %c9_i32_290 = arith.constant 9 : i32
    %669 = tpu.dynamic_rotate %637 by %c9_i32_290 dim 1 : vector<16x128xf32>, i32 -> vector<16x128xf32>
    %c37_291 = arith.constant 37 : index
    %c0_292 = arith.constant 0 : index
    %670 = vector.load %arg4[%c37_291, %c0_292] : memref<96x128xf32, #tpu.memory_space<vmem>>, vector<1x128xf32>
    %671 = vector.broadcast %670 : vector<1x128xf32> to vector<16x128xf32>
    %672 = arith.mulf %669, %671 : vector<16x128xf32>
    %673 = arith.addf %668, %672 : vector<16x128xf32>
    %c8_i32_293 = arith.constant 8 : i32
    %674 = tpu.dynamic_rotate %637 by %c8_i32_293 dim 1 : vector<16x128xf32>, i32 -> vector<16x128xf32>
    %c38_294 = arith.constant 38 : index
    %c0_295 = arith.constant 0 : index
    %675 = vector.load %arg4[%c38_294, %c0_295] : memref<96x128xf32, #tpu.memory_space<vmem>>, vector<1x128xf32>
    %676 = vector.broadcast %675 : vector<1x128xf32> to vector<16x128xf32>
    %677 = arith.mulf %674, %676 : vector<16x128xf32>
    %678 = arith.addf %673, %677 : vector<16x128xf32>
    %c7_i32_296 = arith.constant 7 : i32
    %679 = tpu.dynamic_rotate %637 by %c7_i32_296 dim 1 : vector<16x128xf32>, i32 -> vector<16x128xf32>
    %c39_297 = arith.constant 39 : index
    %c0_298 = arith.constant 0 : index
    %680 = vector.load %arg4[%c39_297, %c0_298] : memref<96x128xf32, #tpu.memory_space<vmem>>, vector<1x128xf32>
    %681 = vector.broadcast %680 : vector<1x128xf32> to vector<16x128xf32>
    %682 = arith.mulf %679, %681 : vector<16x128xf32>
    %683 = arith.addf %678, %682 : vector<16x128xf32>
    %c6_i32_299 = arith.constant 6 : i32
    %684 = tpu.dynamic_rotate %637 by %c6_i32_299 dim 1 : vector<16x128xf32>, i32 -> vector<16x128xf32>
    %c40_300 = arith.constant 40 : index
    %c0_301 = arith.constant 0 : index
    %685 = vector.load %arg4[%c40_300, %c0_301] : memref<96x128xf32, #tpu.memory_space<vmem>>, vector<1x128xf32>
    %686 = vector.broadcast %685 : vector<1x128xf32> to vector<16x128xf32>
    %687 = arith.mulf %684, %686 : vector<16x128xf32>
    %688 = arith.addf %683, %687 : vector<16x128xf32>
    %c5_i32_302 = arith.constant 5 : i32
    %689 = tpu.dynamic_rotate %637 by %c5_i32_302 dim 1 : vector<16x128xf32>, i32 -> vector<16x128xf32>
    %c41_303 = arith.constant 41 : index
    %c0_304 = arith.constant 0 : index
    %690 = vector.load %arg4[%c41_303, %c0_304] : memref<96x128xf32, #tpu.memory_space<vmem>>, vector<1x128xf32>
    %691 = vector.broadcast %690 : vector<1x128xf32> to vector<16x128xf32>
    %692 = arith.mulf %689, %691 : vector<16x128xf32>
    %693 = arith.addf %688, %692 : vector<16x128xf32>
    %c4_i32_305 = arith.constant 4 : i32
    %694 = tpu.dynamic_rotate %637 by %c4_i32_305 dim 1 : vector<16x128xf32>, i32 -> vector<16x128xf32>
    %c42_306 = arith.constant 42 : index
    %c0_307 = arith.constant 0 : index
    %695 = vector.load %arg4[%c42_306, %c0_307] : memref<96x128xf32, #tpu.memory_space<vmem>>, vector<1x128xf32>
    %696 = vector.broadcast %695 : vector<1x128xf32> to vector<16x128xf32>
    %697 = arith.mulf %694, %696 : vector<16x128xf32>
    %698 = arith.addf %693, %697 : vector<16x128xf32>
    %c3_i32_308 = arith.constant 3 : i32
    %699 = tpu.dynamic_rotate %637 by %c3_i32_308 dim 1 : vector<16x128xf32>, i32 -> vector<16x128xf32>
    %c43_309 = arith.constant 43 : index
    %c0_310 = arith.constant 0 : index
    %700 = vector.load %arg4[%c43_309, %c0_310] : memref<96x128xf32, #tpu.memory_space<vmem>>, vector<1x128xf32>
    %701 = vector.broadcast %700 : vector<1x128xf32> to vector<16x128xf32>
    %702 = arith.mulf %699, %701 : vector<16x128xf32>
    %703 = arith.addf %698, %702 : vector<16x128xf32>
    %c2_i32_311 = arith.constant 2 : i32
    %704 = tpu.dynamic_rotate %637 by %c2_i32_311 dim 1 : vector<16x128xf32>, i32 -> vector<16x128xf32>
    %c44_312 = arith.constant 44 : index
    %c0_313 = arith.constant 0 : index
    %705 = vector.load %arg4[%c44_312, %c0_313] : memref<96x128xf32, #tpu.memory_space<vmem>>, vector<1x128xf32>
    %706 = vector.broadcast %705 : vector<1x128xf32> to vector<16x128xf32>
    %707 = arith.mulf %704, %706 : vector<16x128xf32>
    %708 = arith.addf %703, %707 : vector<16x128xf32>
    %c1_i32_314 = arith.constant 1 : i32
    %709 = tpu.dynamic_rotate %637 by %c1_i32_314 dim 1 : vector<16x128xf32>, i32 -> vector<16x128xf32>
    %c45_315 = arith.constant 45 : index
    %c0_316 = arith.constant 0 : index
    %710 = vector.load %arg4[%c45_315, %c0_316] : memref<96x128xf32, #tpu.memory_space<vmem>>, vector<1x128xf32>
    %711 = vector.broadcast %710 : vector<1x128xf32> to vector<16x128xf32>
    %712 = arith.mulf %709, %711 : vector<16x128xf32>
    %713 = arith.addf %708, %712 : vector<16x128xf32>
    %c46_317 = arith.constant 46 : index
    %c0_318 = arith.constant 0 : index
    %714 = vector.load %arg4[%c46_317, %c0_318] : memref<96x128xf32, #tpu.memory_space<vmem>>, vector<1x128xf32>
    %715 = vector.broadcast %714 : vector<1x128xf32> to vector<16x128xf32>
    %716 = arith.mulf %637, %715 : vector<16x128xf32>
    %717 = arith.addf %713, %716 : vector<16x128xf32>
    %c127_i32_319 = arith.constant 127 : i32
    %718 = tpu.dynamic_rotate %637 by %c127_i32_319 dim 1 : vector<16x128xf32>, i32 -> vector<16x128xf32>
    %c47_320 = arith.constant 47 : index
    %c0_321 = arith.constant 0 : index
    %719 = vector.load %arg4[%c47_320, %c0_321] : memref<96x128xf32, #tpu.memory_space<vmem>>, vector<1x128xf32>
    %720 = vector.broadcast %719 : vector<1x128xf32> to vector<16x128xf32>
    %721 = arith.mulf %718, %720 : vector<16x128xf32>
    %722 = arith.addf %717, %721 : vector<16x128xf32>
    %c126_i32_322 = arith.constant 126 : i32
    %723 = tpu.dynamic_rotate %637 by %c126_i32_322 dim 1 : vector<16x128xf32>, i32 -> vector<16x128xf32>
    %c48_323 = arith.constant 48 : index
    %c0_324 = arith.constant 0 : index
    %724 = vector.load %arg4[%c48_323, %c0_324] : memref<96x128xf32, #tpu.memory_space<vmem>>, vector<1x128xf32>
    %725 = vector.broadcast %724 : vector<1x128xf32> to vector<16x128xf32>
    %726 = arith.mulf %723, %725 : vector<16x128xf32>
    %727 = arith.addf %722, %726 : vector<16x128xf32>
    %c125_i32_325 = arith.constant 125 : i32
    %728 = tpu.dynamic_rotate %637 by %c125_i32_325 dim 1 : vector<16x128xf32>, i32 -> vector<16x128xf32>
    %c49_326 = arith.constant 49 : index
    %c0_327 = arith.constant 0 : index
    %729 = vector.load %arg4[%c49_326, %c0_327] : memref<96x128xf32, #tpu.memory_space<vmem>>, vector<1x128xf32>
    %730 = vector.broadcast %729 : vector<1x128xf32> to vector<16x128xf32>
    %731 = arith.mulf %728, %730 : vector<16x128xf32>
    %732 = arith.addf %727, %731 : vector<16x128xf32>
    %c124_i32_328 = arith.constant 124 : i32
    %733 = tpu.dynamic_rotate %637 by %c124_i32_328 dim 1 : vector<16x128xf32>, i32 -> vector<16x128xf32>
    %c50_329 = arith.constant 50 : index
    %c0_330 = arith.constant 0 : index
    %734 = vector.load %arg4[%c50_329, %c0_330] : memref<96x128xf32, #tpu.memory_space<vmem>>, vector<1x128xf32>
    %735 = vector.broadcast %734 : vector<1x128xf32> to vector<16x128xf32>
    %736 = arith.mulf %733, %735 : vector<16x128xf32>
    %737 = arith.addf %732, %736 : vector<16x128xf32>
    %c123_i32_331 = arith.constant 123 : i32
    %738 = tpu.dynamic_rotate %637 by %c123_i32_331 dim 1 : vector<16x128xf32>, i32 -> vector<16x128xf32>
    %c51_332 = arith.constant 51 : index
    %c0_333 = arith.constant 0 : index
    %739 = vector.load %arg4[%c51_332, %c0_333] : memref<96x128xf32, #tpu.memory_space<vmem>>, vector<1x128xf32>
    %740 = vector.broadcast %739 : vector<1x128xf32> to vector<16x128xf32>
    %741 = arith.mulf %738, %740 : vector<16x128xf32>
    %742 = arith.addf %737, %741 : vector<16x128xf32>
    %c122_i32_334 = arith.constant 122 : i32
    %743 = tpu.dynamic_rotate %637 by %c122_i32_334 dim 1 : vector<16x128xf32>, i32 -> vector<16x128xf32>
    %c52_335 = arith.constant 52 : index
    %c0_336 = arith.constant 0 : index
    %744 = vector.load %arg4[%c52_335, %c0_336] : memref<96x128xf32, #tpu.memory_space<vmem>>, vector<1x128xf32>
    %745 = vector.broadcast %744 : vector<1x128xf32> to vector<16x128xf32>
    %746 = arith.mulf %743, %745 : vector<16x128xf32>
    %747 = arith.addf %742, %746 : vector<16x128xf32>
    %c121_i32_337 = arith.constant 121 : i32
    %748 = tpu.dynamic_rotate %637 by %c121_i32_337 dim 1 : vector<16x128xf32>, i32 -> vector<16x128xf32>
    %c53_338 = arith.constant 53 : index
    %c0_339 = arith.constant 0 : index
    %749 = vector.load %arg4[%c53_338, %c0_339] : memref<96x128xf32, #tpu.memory_space<vmem>>, vector<1x128xf32>
    %750 = vector.broadcast %749 : vector<1x128xf32> to vector<16x128xf32>
    %751 = arith.mulf %748, %750 : vector<16x128xf32>
    %752 = arith.addf %747, %751 : vector<16x128xf32>
    %c120_i32_340 = arith.constant 120 : i32
    %753 = tpu.dynamic_rotate %637 by %c120_i32_340 dim 1 : vector<16x128xf32>, i32 -> vector<16x128xf32>
    %c54_341 = arith.constant 54 : index
    %c0_342 = arith.constant 0 : index
    %754 = vector.load %arg4[%c54_341, %c0_342] : memref<96x128xf32, #tpu.memory_space<vmem>>, vector<1x128xf32>
    %755 = vector.broadcast %754 : vector<1x128xf32> to vector<16x128xf32>
    %756 = arith.mulf %753, %755 : vector<16x128xf32>
    %757 = arith.addf %752, %756 : vector<16x128xf32>
    %c119_i32_343 = arith.constant 119 : i32
    %758 = tpu.dynamic_rotate %637 by %c119_i32_343 dim 1 : vector<16x128xf32>, i32 -> vector<16x128xf32>
    %c55_344 = arith.constant 55 : index
    %c0_345 = arith.constant 0 : index
    %759 = vector.load %arg4[%c55_344, %c0_345] : memref<96x128xf32, #tpu.memory_space<vmem>>, vector<1x128xf32>
    %760 = vector.broadcast %759 : vector<1x128xf32> to vector<16x128xf32>
    %761 = arith.mulf %758, %760 : vector<16x128xf32>
    %762 = arith.addf %757, %761 : vector<16x128xf32>
    %c118_i32_346 = arith.constant 118 : i32
    %763 = tpu.dynamic_rotate %637 by %c118_i32_346 dim 1 : vector<16x128xf32>, i32 -> vector<16x128xf32>
    %c56_347 = arith.constant 56 : index
    %c0_348 = arith.constant 0 : index
    %764 = vector.load %arg4[%c56_347, %c0_348] : memref<96x128xf32, #tpu.memory_space<vmem>>, vector<1x128xf32>
    %765 = vector.broadcast %764 : vector<1x128xf32> to vector<16x128xf32>
    %766 = arith.mulf %763, %765 : vector<16x128xf32>
    %767 = arith.addf %762, %766 : vector<16x128xf32>
    %c117_i32_349 = arith.constant 117 : i32
    %768 = tpu.dynamic_rotate %637 by %c117_i32_349 dim 1 : vector<16x128xf32>, i32 -> vector<16x128xf32>
    %c57_350 = arith.constant 57 : index
    %c0_351 = arith.constant 0 : index
    %769 = vector.load %arg4[%c57_350, %c0_351] : memref<96x128xf32, #tpu.memory_space<vmem>>, vector<1x128xf32>
    %770 = vector.broadcast %769 : vector<1x128xf32> to vector<16x128xf32>
    %771 = arith.mulf %768, %770 : vector<16x128xf32>
    %772 = arith.addf %767, %771 : vector<16x128xf32>
    %c116_i32_352 = arith.constant 116 : i32
    %773 = tpu.dynamic_rotate %637 by %c116_i32_352 dim 1 : vector<16x128xf32>, i32 -> vector<16x128xf32>
    %c58_353 = arith.constant 58 : index
    %c0_354 = arith.constant 0 : index
    %774 = vector.load %arg4[%c58_353, %c0_354] : memref<96x128xf32, #tpu.memory_space<vmem>>, vector<1x128xf32>
    %775 = vector.broadcast %774 : vector<1x128xf32> to vector<16x128xf32>
    %776 = arith.mulf %773, %775 : vector<16x128xf32>
    %777 = arith.addf %772, %776 : vector<16x128xf32>
    %c115_i32_355 = arith.constant 115 : i32
    %778 = tpu.dynamic_rotate %637 by %c115_i32_355 dim 1 : vector<16x128xf32>, i32 -> vector<16x128xf32>
    %c59_356 = arith.constant 59 : index
    %c0_357 = arith.constant 0 : index
    %779 = vector.load %arg4[%c59_356, %c0_357] : memref<96x128xf32, #tpu.memory_space<vmem>>, vector<1x128xf32>
    %780 = vector.broadcast %779 : vector<1x128xf32> to vector<16x128xf32>
    %781 = arith.mulf %778, %780 : vector<16x128xf32>
    %782 = arith.addf %777, %781 : vector<16x128xf32>
    %c114_i32_358 = arith.constant 114 : i32
    %783 = tpu.dynamic_rotate %637 by %c114_i32_358 dim 1 : vector<16x128xf32>, i32 -> vector<16x128xf32>
    %c60_359 = arith.constant 60 : index
    %c0_360 = arith.constant 0 : index
    %784 = vector.load %arg4[%c60_359, %c0_360] : memref<96x128xf32, #tpu.memory_space<vmem>>, vector<1x128xf32>
    %785 = vector.broadcast %784 : vector<1x128xf32> to vector<16x128xf32>
    %786 = arith.mulf %783, %785 : vector<16x128xf32>
    %787 = arith.addf %782, %786 : vector<16x128xf32>
    %c113_i32_361 = arith.constant 113 : i32
    %788 = tpu.dynamic_rotate %637 by %c113_i32_361 dim 1 : vector<16x128xf32>, i32 -> vector<16x128xf32>
    %c61_362 = arith.constant 61 : index
    %c0_363 = arith.constant 0 : index
    %789 = vector.load %arg4[%c61_362, %c0_363] : memref<96x128xf32, #tpu.memory_space<vmem>>, vector<1x128xf32>
    %790 = vector.broadcast %789 : vector<1x128xf32> to vector<16x128xf32>
    %791 = arith.mulf %788, %790 : vector<16x128xf32>
    %792 = arith.addf %787, %791 : vector<16x128xf32>
    %c9_364 = arith.constant 9 : index
    %c0_365 = arith.constant 0 : index
    %793 = vector.load %arg7[%c9_364, %c0_365] : memref<32x128xf32, #tpu.memory_space<vmem>>, vector<16x128xf32>
    %cst_366 = arith.constant 0.000000e+00 : f32
    %794 = vector.broadcast %cst_366 : f32 to vector<16x128xf32>
    %c15_i32_367 = arith.constant 15 : i32
    %795 = tpu.dynamic_rotate %793 by %c15_i32_367 dim 1 : vector<16x128xf32>, i32 -> vector<16x128xf32>
    %c62_368 = arith.constant 62 : index
    %c0_369 = arith.constant 0 : index
    %796 = vector.load %arg4[%c62_368, %c0_369] : memref<96x128xf32, #tpu.memory_space<vmem>>, vector<1x128xf32>
    %797 = vector.broadcast %796 : vector<1x128xf32> to vector<16x128xf32>
    %798 = arith.mulf %795, %797 : vector<16x128xf32>
    %799 = arith.addf %794, %798 : vector<16x128xf32>
    %c14_i32_370 = arith.constant 14 : i32
    %800 = tpu.dynamic_rotate %793 by %c14_i32_370 dim 1 : vector<16x128xf32>, i32 -> vector<16x128xf32>
    %c63_371 = arith.constant 63 : index
    %c0_372 = arith.constant 0 : index
    %801 = vector.load %arg4[%c63_371, %c0_372] : memref<96x128xf32, #tpu.memory_space<vmem>>, vector<1x128xf32>
    %802 = vector.broadcast %801 : vector<1x128xf32> to vector<16x128xf32>
    %803 = arith.mulf %800, %802 : vector<16x128xf32>
    %804 = arith.addf %799, %803 : vector<16x128xf32>
    %c13_i32_373 = arith.constant 13 : i32
    %805 = tpu.dynamic_rotate %793 by %c13_i32_373 dim 1 : vector<16x128xf32>, i32 -> vector<16x128xf32>
    %c64_374 = arith.constant 64 : index
    %c0_375 = arith.constant 0 : index
    %806 = vector.load %arg4[%c64_374, %c0_375] : memref<96x128xf32, #tpu.memory_space<vmem>>, vector<1x128xf32>
    %807 = vector.broadcast %806 : vector<1x128xf32> to vector<16x128xf32>
    %808 = arith.mulf %805, %807 : vector<16x128xf32>
    %809 = arith.addf %804, %808 : vector<16x128xf32>
    %c12_i32_376 = arith.constant 12 : i32
    %810 = tpu.dynamic_rotate %793 by %c12_i32_376 dim 1 : vector<16x128xf32>, i32 -> vector<16x128xf32>
    %c65_377 = arith.constant 65 : index
    %c0_378 = arith.constant 0 : index
    %811 = vector.load %arg4[%c65_377, %c0_378] : memref<96x128xf32, #tpu.memory_space<vmem>>, vector<1x128xf32>
    %812 = vector.broadcast %811 : vector<1x128xf32> to vector<16x128xf32>
    %813 = arith.mulf %810, %812 : vector<16x128xf32>
    %814 = arith.addf %809, %813 : vector<16x128xf32>
    %c11_i32_379 = arith.constant 11 : i32
    %815 = tpu.dynamic_rotate %793 by %c11_i32_379 dim 1 : vector<16x128xf32>, i32 -> vector<16x128xf32>
    %c66_380 = arith.constant 66 : index
    %c0_381 = arith.constant 0 : index
    %816 = vector.load %arg4[%c66_380, %c0_381] : memref<96x128xf32, #tpu.memory_space<vmem>>, vector<1x128xf32>
    %817 = vector.broadcast %816 : vector<1x128xf32> to vector<16x128xf32>
    %818 = arith.mulf %815, %817 : vector<16x128xf32>
    %819 = arith.addf %814, %818 : vector<16x128xf32>
    %c10_i32_382 = arith.constant 10 : i32
    %820 = tpu.dynamic_rotate %793 by %c10_i32_382 dim 1 : vector<16x128xf32>, i32 -> vector<16x128xf32>
    %c67_383 = arith.constant 67 : index
    %c0_384 = arith.constant 0 : index
    %821 = vector.load %arg4[%c67_383, %c0_384] : memref<96x128xf32, #tpu.memory_space<vmem>>, vector<1x128xf32>
    %822 = vector.broadcast %821 : vector<1x128xf32> to vector<16x128xf32>
    %823 = arith.mulf %820, %822 : vector<16x128xf32>
    %824 = arith.addf %819, %823 : vector<16x128xf32>
    %c9_i32_385 = arith.constant 9 : i32
    %825 = tpu.dynamic_rotate %793 by %c9_i32_385 dim 1 : vector<16x128xf32>, i32 -> vector<16x128xf32>
    %c68_386 = arith.constant 68 : index
    %c0_387 = arith.constant 0 : index
    %826 = vector.load %arg4[%c68_386, %c0_387] : memref<96x128xf32, #tpu.memory_space<vmem>>, vector<1x128xf32>
    %827 = vector.broadcast %826 : vector<1x128xf32> to vector<16x128xf32>
    %828 = arith.mulf %825, %827 : vector<16x128xf32>
    %829 = arith.addf %824, %828 : vector<16x128xf32>
    %c8_i32_388 = arith.constant 8 : i32
    %830 = tpu.dynamic_rotate %793 by %c8_i32_388 dim 1 : vector<16x128xf32>, i32 -> vector<16x128xf32>
    %c69_389 = arith.constant 69 : index
    %c0_390 = arith.constant 0 : index
    %831 = vector.load %arg4[%c69_389, %c0_390] : memref<96x128xf32, #tpu.memory_space<vmem>>, vector<1x128xf32>
    %832 = vector.broadcast %831 : vector<1x128xf32> to vector<16x128xf32>
    %833 = arith.mulf %830, %832 : vector<16x128xf32>
    %834 = arith.addf %829, %833 : vector<16x128xf32>
    %c7_i32_391 = arith.constant 7 : i32
    %835 = tpu.dynamic_rotate %793 by %c7_i32_391 dim 1 : vector<16x128xf32>, i32 -> vector<16x128xf32>
    %c70_392 = arith.constant 70 : index
    %c0_393 = arith.constant 0 : index
    %836 = vector.load %arg4[%c70_392, %c0_393] : memref<96x128xf32, #tpu.memory_space<vmem>>, vector<1x128xf32>
    %837 = vector.broadcast %836 : vector<1x128xf32> to vector<16x128xf32>
    %838 = arith.mulf %835, %837 : vector<16x128xf32>
    %839 = arith.addf %834, %838 : vector<16x128xf32>
    %c6_i32_394 = arith.constant 6 : i32
    %840 = tpu.dynamic_rotate %793 by %c6_i32_394 dim 1 : vector<16x128xf32>, i32 -> vector<16x128xf32>
    %c71_395 = arith.constant 71 : index
    %c0_396 = arith.constant 0 : index
    %841 = vector.load %arg4[%c71_395, %c0_396] : memref<96x128xf32, #tpu.memory_space<vmem>>, vector<1x128xf32>
    %842 = vector.broadcast %841 : vector<1x128xf32> to vector<16x128xf32>
    %843 = arith.mulf %840, %842 : vector<16x128xf32>
    %844 = arith.addf %839, %843 : vector<16x128xf32>
    %c5_i32_397 = arith.constant 5 : i32
    %845 = tpu.dynamic_rotate %793 by %c5_i32_397 dim 1 : vector<16x128xf32>, i32 -> vector<16x128xf32>
    %c72_398 = arith.constant 72 : index
    %c0_399 = arith.constant 0 : index
    %846 = vector.load %arg4[%c72_398, %c0_399] : memref<96x128xf32, #tpu.memory_space<vmem>>, vector<1x128xf32>
    %847 = vector.broadcast %846 : vector<1x128xf32> to vector<16x128xf32>
    %848 = arith.mulf %845, %847 : vector<16x128xf32>
    %849 = arith.addf %844, %848 : vector<16x128xf32>
    %c4_i32_400 = arith.constant 4 : i32
    %850 = tpu.dynamic_rotate %793 by %c4_i32_400 dim 1 : vector<16x128xf32>, i32 -> vector<16x128xf32>
    %c73_401 = arith.constant 73 : index
    %c0_402 = arith.constant 0 : index
    %851 = vector.load %arg4[%c73_401, %c0_402] : memref<96x128xf32, #tpu.memory_space<vmem>>, vector<1x128xf32>
    %852 = vector.broadcast %851 : vector<1x128xf32> to vector<16x128xf32>
    %853 = arith.mulf %850, %852 : vector<16x128xf32>
    %854 = arith.addf %849, %853 : vector<16x128xf32>
    %c3_i32_403 = arith.constant 3 : i32
    %855 = tpu.dynamic_rotate %793 by %c3_i32_403 dim 1 : vector<16x128xf32>, i32 -> vector<16x128xf32>
    %c74_404 = arith.constant 74 : index
    %c0_405 = arith.constant 0 : index
    %856 = vector.load %arg4[%c74_404, %c0_405] : memref<96x128xf32, #tpu.memory_space<vmem>>, vector<1x128xf32>
    %857 = vector.broadcast %856 : vector<1x128xf32> to vector<16x128xf32>
    %858 = arith.mulf %855, %857 : vector<16x128xf32>
    %859 = arith.addf %854, %858 : vector<16x128xf32>
    %c2_i32_406 = arith.constant 2 : i32
    %860 = tpu.dynamic_rotate %793 by %c2_i32_406 dim 1 : vector<16x128xf32>, i32 -> vector<16x128xf32>
    %c75_407 = arith.constant 75 : index
    %c0_408 = arith.constant 0 : index
    %861 = vector.load %arg4[%c75_407, %c0_408] : memref<96x128xf32, #tpu.memory_space<vmem>>, vector<1x128xf32>
    %862 = vector.broadcast %861 : vector<1x128xf32> to vector<16x128xf32>
    %863 = arith.mulf %860, %862 : vector<16x128xf32>
    %864 = arith.addf %859, %863 : vector<16x128xf32>
    %c1_i32_409 = arith.constant 1 : i32
    %865 = tpu.dynamic_rotate %793 by %c1_i32_409 dim 1 : vector<16x128xf32>, i32 -> vector<16x128xf32>
    %c76_410 = arith.constant 76 : index
    %c0_411 = arith.constant 0 : index
    %866 = vector.load %arg4[%c76_410, %c0_411] : memref<96x128xf32, #tpu.memory_space<vmem>>, vector<1x128xf32>
    %867 = vector.broadcast %866 : vector<1x128xf32> to vector<16x128xf32>
    %868 = arith.mulf %865, %867 : vector<16x128xf32>
    %869 = arith.addf %864, %868 : vector<16x128xf32>
    %c77_412 = arith.constant 77 : index
    %c0_413 = arith.constant 0 : index
    %870 = vector.load %arg4[%c77_412, %c0_413] : memref<96x128xf32, #tpu.memory_space<vmem>>, vector<1x128xf32>
    %871 = vector.broadcast %870 : vector<1x128xf32> to vector<16x128xf32>
    %872 = arith.mulf %793, %871 : vector<16x128xf32>
    %873 = arith.addf %869, %872 : vector<16x128xf32>
    %c127_i32_414 = arith.constant 127 : i32
    %874 = tpu.dynamic_rotate %793 by %c127_i32_414 dim 1 : vector<16x128xf32>, i32 -> vector<16x128xf32>
    %c78_415 = arith.constant 78 : index
    %c0_416 = arith.constant 0 : index
    %875 = vector.load %arg4[%c78_415, %c0_416] : memref<96x128xf32, #tpu.memory_space<vmem>>, vector<1x128xf32>
    %876 = vector.broadcast %875 : vector<1x128xf32> to vector<16x128xf32>
    %877 = arith.mulf %874, %876 : vector<16x128xf32>
    %878 = arith.addf %873, %877 : vector<16x128xf32>
    %c126_i32_417 = arith.constant 126 : i32
    %879 = tpu.dynamic_rotate %793 by %c126_i32_417 dim 1 : vector<16x128xf32>, i32 -> vector<16x128xf32>
    %c79_418 = arith.constant 79 : index
    %c0_419 = arith.constant 0 : index
    %880 = vector.load %arg4[%c79_418, %c0_419] : memref<96x128xf32, #tpu.memory_space<vmem>>, vector<1x128xf32>
    %881 = vector.broadcast %880 : vector<1x128xf32> to vector<16x128xf32>
    %882 = arith.mulf %879, %881 : vector<16x128xf32>
    %883 = arith.addf %878, %882 : vector<16x128xf32>
    %c125_i32_420 = arith.constant 125 : i32
    %884 = tpu.dynamic_rotate %793 by %c125_i32_420 dim 1 : vector<16x128xf32>, i32 -> vector<16x128xf32>
    %c80_421 = arith.constant 80 : index
    %c0_422 = arith.constant 0 : index
    %885 = vector.load %arg4[%c80_421, %c0_422] : memref<96x128xf32, #tpu.memory_space<vmem>>, vector<1x128xf32>
    %886 = vector.broadcast %885 : vector<1x128xf32> to vector<16x128xf32>
    %887 = arith.mulf %884, %886 : vector<16x128xf32>
    %888 = arith.addf %883, %887 : vector<16x128xf32>
    %c124_i32_423 = arith.constant 124 : i32
    %889 = tpu.dynamic_rotate %793 by %c124_i32_423 dim 1 : vector<16x128xf32>, i32 -> vector<16x128xf32>
    %c81_424 = arith.constant 81 : index
    %c0_425 = arith.constant 0 : index
    %890 = vector.load %arg4[%c81_424, %c0_425] : memref<96x128xf32, #tpu.memory_space<vmem>>, vector<1x128xf32>
    %891 = vector.broadcast %890 : vector<1x128xf32> to vector<16x128xf32>
    %892 = arith.mulf %889, %891 : vector<16x128xf32>
    %893 = arith.addf %888, %892 : vector<16x128xf32>
    %c123_i32_426 = arith.constant 123 : i32
    %894 = tpu.dynamic_rotate %793 by %c123_i32_426 dim 1 : vector<16x128xf32>, i32 -> vector<16x128xf32>
    %c82_427 = arith.constant 82 : index
    %c0_428 = arith.constant 0 : index
    %895 = vector.load %arg4[%c82_427, %c0_428] : memref<96x128xf32, #tpu.memory_space<vmem>>, vector<1x128xf32>
    %896 = vector.broadcast %895 : vector<1x128xf32> to vector<16x128xf32>
    %897 = arith.mulf %894, %896 : vector<16x128xf32>
    %898 = arith.addf %893, %897 : vector<16x128xf32>
    %c122_i32_429 = arith.constant 122 : i32
    %899 = tpu.dynamic_rotate %793 by %c122_i32_429 dim 1 : vector<16x128xf32>, i32 -> vector<16x128xf32>
    %c83_430 = arith.constant 83 : index
    %c0_431 = arith.constant 0 : index
    %900 = vector.load %arg4[%c83_430, %c0_431] : memref<96x128xf32, #tpu.memory_space<vmem>>, vector<1x128xf32>
    %901 = vector.broadcast %900 : vector<1x128xf32> to vector<16x128xf32>
    %902 = arith.mulf %899, %901 : vector<16x128xf32>
    %903 = arith.addf %898, %902 : vector<16x128xf32>
    %c121_i32_432 = arith.constant 121 : i32
    %904 = tpu.dynamic_rotate %793 by %c121_i32_432 dim 1 : vector<16x128xf32>, i32 -> vector<16x128xf32>
    %c84_433 = arith.constant 84 : index
    %c0_434 = arith.constant 0 : index
    %905 = vector.load %arg4[%c84_433, %c0_434] : memref<96x128xf32, #tpu.memory_space<vmem>>, vector<1x128xf32>
    %906 = vector.broadcast %905 : vector<1x128xf32> to vector<16x128xf32>
    %907 = arith.mulf %904, %906 : vector<16x128xf32>
    %908 = arith.addf %903, %907 : vector<16x128xf32>
    %c120_i32_435 = arith.constant 120 : i32
    %909 = tpu.dynamic_rotate %793 by %c120_i32_435 dim 1 : vector<16x128xf32>, i32 -> vector<16x128xf32>
    %c85_436 = arith.constant 85 : index
    %c0_437 = arith.constant 0 : index
    %910 = vector.load %arg4[%c85_436, %c0_437] : memref<96x128xf32, #tpu.memory_space<vmem>>, vector<1x128xf32>
    %911 = vector.broadcast %910 : vector<1x128xf32> to vector<16x128xf32>
    %912 = arith.mulf %909, %911 : vector<16x128xf32>
    %913 = arith.addf %908, %912 : vector<16x128xf32>
    %c119_i32_438 = arith.constant 119 : i32
    %914 = tpu.dynamic_rotate %793 by %c119_i32_438 dim 1 : vector<16x128xf32>, i32 -> vector<16x128xf32>
    %c86_439 = arith.constant 86 : index
    %c0_440 = arith.constant 0 : index
    %915 = vector.load %arg4[%c86_439, %c0_440] : memref<96x128xf32, #tpu.memory_space<vmem>>, vector<1x128xf32>
    %916 = vector.broadcast %915 : vector<1x128xf32> to vector<16x128xf32>
    %917 = arith.mulf %914, %916 : vector<16x128xf32>
    %918 = arith.addf %913, %917 : vector<16x128xf32>
    %c118_i32_441 = arith.constant 118 : i32
    %919 = tpu.dynamic_rotate %793 by %c118_i32_441 dim 1 : vector<16x128xf32>, i32 -> vector<16x128xf32>
    %c87_442 = arith.constant 87 : index
    %c0_443 = arith.constant 0 : index
    %920 = vector.load %arg4[%c87_442, %c0_443] : memref<96x128xf32, #tpu.memory_space<vmem>>, vector<1x128xf32>
    %921 = vector.broadcast %920 : vector<1x128xf32> to vector<16x128xf32>
    %922 = arith.mulf %919, %921 : vector<16x128xf32>
    %923 = arith.addf %918, %922 : vector<16x128xf32>
    %c117_i32_444 = arith.constant 117 : i32
    %924 = tpu.dynamic_rotate %793 by %c117_i32_444 dim 1 : vector<16x128xf32>, i32 -> vector<16x128xf32>
    %c88_445 = arith.constant 88 : index
    %c0_446 = arith.constant 0 : index
    %925 = vector.load %arg4[%c88_445, %c0_446] : memref<96x128xf32, #tpu.memory_space<vmem>>, vector<1x128xf32>
    %926 = vector.broadcast %925 : vector<1x128xf32> to vector<16x128xf32>
    %927 = arith.mulf %924, %926 : vector<16x128xf32>
    %928 = arith.addf %923, %927 : vector<16x128xf32>
    %c116_i32_447 = arith.constant 116 : i32
    %929 = tpu.dynamic_rotate %793 by %c116_i32_447 dim 1 : vector<16x128xf32>, i32 -> vector<16x128xf32>
    %c89_448 = arith.constant 89 : index
    %c0_449 = arith.constant 0 : index
    %930 = vector.load %arg4[%c89_448, %c0_449] : memref<96x128xf32, #tpu.memory_space<vmem>>, vector<1x128xf32>
    %931 = vector.broadcast %930 : vector<1x128xf32> to vector<16x128xf32>
    %932 = arith.mulf %929, %931 : vector<16x128xf32>
    %933 = arith.addf %928, %932 : vector<16x128xf32>
    %c115_i32_450 = arith.constant 115 : i32
    %934 = tpu.dynamic_rotate %793 by %c115_i32_450 dim 1 : vector<16x128xf32>, i32 -> vector<16x128xf32>
    %c90_451 = arith.constant 90 : index
    %c0_452 = arith.constant 0 : index
    %935 = vector.load %arg4[%c90_451, %c0_452] : memref<96x128xf32, #tpu.memory_space<vmem>>, vector<1x128xf32>
    %936 = vector.broadcast %935 : vector<1x128xf32> to vector<16x128xf32>
    %937 = arith.mulf %934, %936 : vector<16x128xf32>
    %938 = arith.addf %933, %937 : vector<16x128xf32>
    %c114_i32_453 = arith.constant 114 : i32
    %939 = tpu.dynamic_rotate %793 by %c114_i32_453 dim 1 : vector<16x128xf32>, i32 -> vector<16x128xf32>
    %c91_454 = arith.constant 91 : index
    %c0_455 = arith.constant 0 : index
    %940 = vector.load %arg4[%c91_454, %c0_455] : memref<96x128xf32, #tpu.memory_space<vmem>>, vector<1x128xf32>
    %941 = vector.broadcast %940 : vector<1x128xf32> to vector<16x128xf32>
    %942 = arith.mulf %939, %941 : vector<16x128xf32>
    %943 = arith.addf %938, %942 : vector<16x128xf32>
    %c113_i32_456 = arith.constant 113 : i32
    %944 = tpu.dynamic_rotate %793 by %c113_i32_456 dim 1 : vector<16x128xf32>, i32 -> vector<16x128xf32>
    %c92_457 = arith.constant 92 : index
    %c0_458 = arith.constant 0 : index
    %945 = vector.load %arg4[%c92_457, %c0_458] : memref<96x128xf32, #tpu.memory_space<vmem>>, vector<1x128xf32>
    %946 = vector.broadcast %945 : vector<1x128xf32> to vector<16x128xf32>
    %947 = arith.mulf %944, %946 : vector<16x128xf32>
    %948 = arith.addf %943, %947 : vector<16x128xf32>
    %949 = arith.addf %636, %792 : vector<16x128xf32>
    %950 = arith.addf %949, %948 : vector<16x128xf32>
    %c0_459 = arith.constant 0 : index
    %c0_460 = arith.constant 0 : index
    %951 = vector.load %arg5[%c0_459, %c0_460] : memref<1x128xf32, #tpu.memory_space<vmem>>, vector<1x128xf32>
    %952 = vector.broadcast %951 : vector<1x128xf32> to vector<16x128xf32>
    %953 = arith.addf %950, %952 : vector<16x128xf32>
    %954 = arith.addf %953, %477 : vector<16x128xf32>
    %cst_461 = arith.constant 0.000000e+00 : f32
    %955 = vector.broadcast %cst_461 : f32 to vector<16x128xf32>
    %956 = arith.maximumf %954, %955 : vector<16x128xf32>
    %c0_462 = arith.constant 0 : index
    %c0_463 = arith.constant 0 : index
    %c0_464 = arith.constant 0 : index
    %957 = vector.load %arg6[%c0_462, %c0_463, %c0_464] : memref<1x16x128xf32, #tpu.memory_space<vmem>>, vector<1x16x128xf32>
    %958 = vector.shape_cast %957 : vector<1x16x128xf32> to vector<16x128xf32>
    %959 = vector.shape_cast %956 : vector<16x128xf32> to vector<1x16x128xf32>
    tpu.vector_store %arg6[%c0_462, %c0_463, %c0_464], %959 {strides = array<i32>} : memref<1x16x128xf32, #tpu.memory_space<vmem>>, vector<1x16x128xf32>,
    return
  }
  func.func @transform_0(%arg0: i32) -> (i32, i32, i32) {
    %c0_i32 = arith.constant 0 : i32
    %c0_i32_0 = arith.constant 0 : i32
    %c0_i32_1 = arith.constant 0 : i32
    return %arg0, %c0_i32, %c0_i32_0 : i32, i32, i32
  }
  func.func @transform_1(%arg0: i32) -> (i32, i32) {
    %c0_i32 = arith.constant 0 : i32
    %c0_i32_0 = arith.constant 0 : i32
    %c0_i32_1 = arith.constant 0 : i32
    return %c0_i32, %c0_i32_0 : i32, i32
  }
  func.func @transform_2(%arg0: i32) -> (i32, i32) {
    %c0_i32 = arith.constant 0 : i32
    %c0_i32_0 = arith.constant 0 : i32
    %c0_i32_1 = arith.constant 0 : i32
    return %c0_i32, %c0_i32_0 : i32, i32
  }
  func.func @transform_3(%arg0: i32) -> (i32, i32) {
    %c0_i32 = arith.constant 0 : i32
    %c0_i32_0 = arith.constant 0 : i32
    %c0_i32_1 = arith.constant 0 : i32
    return %c0_i32, %c0_i32_0 : i32, i32
  }
  func.func @transform_4(%arg0: i32) -> (i32, i32) {
    %c0_i32 = arith.constant 0 : i32
    %c0_i32_0 = arith.constant 0 : i32
    %c0_i32_1 = arith.constant 0 : i32
    return %c0_i32, %c0_i32_0 : i32, i32
  }
  func.func @transform_5(%arg0: i32) -> (i32, i32, i32) {
    %c0_i32 = arith.constant 0 : i32
    %c0_i32_0 = arith.constant 0 : i32
    %c0_i32_1 = arith.constant 0 : i32
    return %arg0, %c0_i32, %c0_i32_0 : i32, i32, i32
  }
}

</mosaic_0001>

<bundles_post_ra>
// kernel: tpu_custom_call.1
= control target key start
LH: loop header
LB: loop body
LE: loop exit
PB: predicated region body
PF: predicated region fallthrough
CT: control target
= control target key end

     0   :  { %s5179_s0 = inlined_call_operand.hbm [shape: f32[2,16,128], index: 0, kind: input, shape index: {}]   ;;  %s5180_s1 = inlined_call_operand.hbm [shape: f32[96,128], index: 1, kind: input, shape index: {}]   ;;  %s5181_s2 = inlined_call_operand.vmem [shape: f32[1,128], index: 2, kind: input, shape index: {}]   ;;  %s5182_s3 = inlined_call_operand.hbm [shape: f32[96,128], index: 3, kind: input, shape index: {}]   ;;  %s5183_s4 = inlined_call_operand.vmem [shape: f32[1,128], index: 4, kind: input, shape index: {}]   ;;  %s5184_s5 = inlined_call_operand.hbm [shape: f32[2,16,128], index: 5, kind: output, shape index: {}]  }
   0x1   :  { %5270 = sst [smem:[#allocation99_spill]] %s5179_s0 }
   0x2   :  { %5271 = sst [smem:[#allocation100_spill]] %s5180_s1 }
   0x3   :  { %5272 = sst [smem:[#allocation101_spill]] %s5182_s3 }
   0x4   :  { %5273 = sst [smem:[#allocation102_spill]] %s5183_s4 }
   0x5   :  { %5274 = sst [smem:[#allocation103_spill]] %s5184_s5 }
   0x6   :  { %10 = vsyncpa [#allocation4], 0 }
   0x7   :  { %12 = vsyncpa [#allocation4 + $0x1], 0 }
   0x8   :  { %13 = vsyncpa [#allocation7], 0 }
   0x9   :  { %14 = vsyncpa [#allocation5], 0 }
   0xa   :  { %16 = vsyncpa [#allocation5 + $0x1], 0  ;;  %s3365_s18 = smov 0   ;;  %s3367_s19 = smov 0  }
   0xb   :  { %s3369_s20 = smov 0   ;;  %s3371_s21 = smov 0  }
   0xc LB: > { %5275 = sst [smem:[#allocation13_spill]] %s3283_s18  ;;  %s3386_s22 = sadd.s32 4294967295, %s3295_s21   ;;  %s3295_s21 = sphi %s3371_s21, %s5594_s21   ;;  %s3291_s20 = sphi %s3369_s20, %s5597_s20   ;;  %s3287_s19 = sphi %s3367_s19, %s5596_s19   ;;  %s3283_s18 = sphi %s3365_s18, %s5595_s18  }
   0xd   : > { %5276 = sst [smem:[#allocation14_spill]] %s3287_s19  ;;  %s2828_s23 = sadd.s32 4294967294, %s3295_s21  }
   0xe   : > { %5277 = sst [smem:[#allocation15_spill]] %s3291_s20  ;;  %p42_p0 = scmp.ne.s32.totalorder %s3287_s19, %s3283_s18 }
   0xf   : > { %5278 = sst [smem:[#allocation16_spill]] %s3295_s21  ;;  %p5185_p1 = scmp.eq.s32.totalorder %s3386_s22, 0 }
  0x10   : > { %5279 = sst [smem:[#allocation17_spill]] %s3386_s22  ;;  %p156_p3 = scmp.eq.s32.totalorder %s2828_s23, 1 }
  0x11   : > { %p3395_p4 = por %p5185_p1, %p42_p0  ;;  %p2829_p5 = scmp.ge.s32.totalorder %s3295_s21, 1 }
  0x12   : > { %p3400_p6 = por %p156_p3, %p42_p0  ;;  %p163_p7 = scmp.lt.s32.totalorder %s3295_s21, 3 }
  0x13   : > { %s5280_s24 = scalar_select %p3395_p4, 1, 0 }
  0x14   : > { %s5281_s25 = scalar_select %p3400_p6, 1, 0 }
  0x15   : > { %p3405_p8 = pnand %p2829_p5, %p163_p7  ;;  %s3297_s27 = smov [#allocation6]  }
  0x16   : > { %5282 = sst [smem:[#allocation18_spill]] %s5281_s25  ;;  %s175_s28 = sshll.u32 %s3297_s27, 4  ;;  %s3409_s28 = int_to_ptr.vmem [resolvable:$true] %s175_s28 }
  0x17   : > { %p3048_p9 = pneg %p3405_p8  ;;  %s3298_s30 = smov [#allocation8]  }
  0x18   : > { %s191_s6 = sshll.u32 %s3298_s30, 4  ;;  %s5285_s1 = sld [smem:[#allocation100_spill]]  ;;  %s3420_s6 = int_to_ptr.vmem [resolvable:$true] %s191_s6 }
  0x19   : > { %p3416_p11 = pnand %p3048_p9, %p5185_p1 }
  0x1b   : > { %p3141_p13 = pneg %p3416_p11 }
  0x1e   : > { %s3139_s9 = scalar_lea.hbm %s5285_s1, 1536 }
  0x1f   : > { %p3140_p12 = scmp.ne.s32.totalorder %s5285_s1, %s3139_s9  ;;  %p3146_p5 = scmp.lt.u32.totalorder %s3139_s9, %s5285_s1 }
  0x21   : > { %p3142_p0 = pnand %p3141_p13, %p3140_p12 }
  0x23   : > { %p3143_p3 = pneg %p3142_p0 }
  0x25   : > { %p3148_p7 = pnand %p3146_p5, %p3143_p3 }
  0x27   : > { %3151 = shalt.err (!%p3148_p7)
}
  0x28   : > { %s3152_s14 = scalar_lea.vmem %s3409_s28, 1536  ;;  %p3160_p2 = scmp.lt.s32.totalorder %s3409_s28, %s3409_s28 }
  0x29   : > { %p3153_p9 = scmp.ne.s32.totalorder %s3409_s28, %s3152_s14  ;;  %p3161_p12 = scmp.lt.s32.totalorder %s3152_s14, %s3152_s14 }
  0x2b   : > { %p3155_p10 = pnand %p3153_p9, %p3141_p13  ;;  %p3162_p0 = por %p3161_p12, %p3160_p2 }
  0x2d   : > { %p3156_p1 = pneg %p3155_p10 }
  0x2f   : > { %p3163_p6 = pnand %p3162_p0, %p3156_p1 }
  0x31   : > { %3166 = shalt.err (!%p3163_p6)
}
  0x32   : > { %s3299_s15 = smov 128   ;;  %s3300_s16 = smov 8  }
  0x33   : > { %3051 = dma.hbm_to_vmem [thread:$0]  (!%p3416_p11), %s5285_s1, 1536, %s3409_s28, [#allocation7], %s3299_s15, %s3299_s15, %s3300_s16  }
  0x34   : > { %s5286_s3 = sld [smem:[#allocation101_spill]] }
  0x3a   : > { %s3167_s7 = scalar_lea.hbm %s5286_s3, 1536 }
  0x3b   : > { %p3168_p1 = scmp.ne.s32.totalorder %s5286_s3, %s3167_s7  ;;  %p3174_p10 = scmp.lt.u32.totalorder %s3167_s7, %s5286_s3 }
  0x3d   : > { %p3170_p2 = pnand %p3168_p1, %p3141_p13 }
  0x3f   : > { %p3171_p6 = pneg %p3170_p2 }
  0x41   : > { %p3176_p3 = pnand %p3174_p10, %p3171_p6 }
  0x43   : > { %3179 = shalt.err (!%p3176_p3)
}
  0x44   : > { %s3180_s28 = scalar_lea.vmem %s3420_s6, 1536  ;;  %p3188_p12 = scmp.lt.s32.totalorder %s3420_s6, %s3420_s6 }
  0x45   : > { %p3181_p5 = scmp.ne.s32.totalorder %s3420_s6, %s3180_s28  ;;  %p3189_p0 = scmp.lt.s32.totalorder %s3180_s28, %s3180_s28 }
  0x47   : > { %p3183_p7 = pnand %p3181_p5, %p3141_p13  ;;  %p3190_p1 = por %p3189_p0, %p3188_p12 }
  0x49   : > { %p3184_p9 = pneg %p3183_p7 }
  0x4b   : > { %p3191_p2 = pnand %p3190_p1, %p3184_p9 }
  0x4d   : > { %3194 = shalt.err (!%p3191_p2)
}
  0x4e   : > { %3054 = dma.hbm_to_vmem [thread:$0]  (!%p3416_p11), %s5286_s3, 1536, %s3420_s6, [#allocation7], %s3299_s15, %s3299_s15, %s3300_s16  }
  0x4f   : > { %s3481_s29 = sadd.s32 1, %s3295_s21   ;;  %s29_s14 = sadd.s32 1, %s3291_s20 }
  0x50   : > { %5287 = sst [smem:[#allocation19_spill]] %s3481_s29  ;;  %s26_s17 = ssub.s32 %s3295_s21, %s3481_s29 }
  0x51   : > { %p36_p13 = scmp.ne.s32.totalorder %s3291_s20, %s3287_s19  ;;  %p27_p6 = scmp.eq.s32.totalorder %s26_s17, 0 }
  0x52   : > { %p37_p10 = scmp.eq.s32.totalorder %s3295_s21, 0  ;;  %p5288_p3 = scmp.eq.s32.totalorder %s3386_s22, 1 }
  0x53   : > { %p3065_p7 = scmp.lt.s32.totalorder %s3295_s21, 2  ;;  %s208_s30 = sand.u32 1, %s3291_s20  }
  0x54   : > { %p3491_p5 = por %p5288_p3, %p36_p13  ;;  %p38_p9 = por %p37_p10, %p36_p13 }
  0x55   : > { %s3497_s27 = scalar_select %p27_p6, %s3291_s20, %s29_s14  }
  0x56   : > { %s5289_s23 = scalar_select %p3491_p5, 1, 0 }
  0x57   : > { %5291 = sst [smem:[#allocation21_spill]] %s3497_s27  ;;  %s2833_s7 = sshll.u32 %s208_s30, 4 }
  0x58   : > { %5290 = sst [smem:[#allocation20_spill]] %s5289_s23  ;;  %s3034_s6 = sshll.u32 %s3295_s21, 8 }
  0x59   : > { %s5292_s0 = sld [smem:[#allocation99_spill]]  ;;  %s212_s11 = scalar_lea.vmem [#allocation3], %s2833_s7 }
  0x5a   : > { %s219_s28 = sshll.u32 %s212_s11, 4  ;;  %p3508_p11 = pnand %p3065_p7, %p38_p9  ;;  %s3506_s28 = int_to_ptr.vmem [resolvable:$true] %s219_s28 }
  0x5b   : > { %s3512_s13 = scalar_lea.sflag [#allocation4], %s208_s30 }
  0x5c   : > { %p3197_p0 = pneg %p3508_p11 }
  0x5f   : > { %s3504_s10 = scalar_lea.hbm %s5292_s0, %s3034_s6  ;;  %s3200_s6 = scalar_lea.hbm %s5292_s0, 512 }
  0x60   : > { %s3195_s14 = scalar_lea.hbm %s3504_s10, 256  ;;  %p3201_p13 = scmp.lt.u32.totalorder %s3504_s10, %s5292_s0 }
  0x61   : > { %p3196_p12 = scmp.ne.s32.totalorder %s3504_s10, %s3195_s14  ;;  %p3202_p6 = scmp.lt.u32.totalorder %s3200_s6, %s3195_s14 }
  0x62   : > { %p3204_p3 = scmp.lt.u32.totalorder %s3195_s14, %s3504_s10 }
  0x63   : > { %p3198_p1 = pnand %p3197_p0, %p3196_p12  ;;  %p3203_p10 = por %p3202_p6, %p3201_p13 }
  0x65   : > { %p3199_p2 = pneg %p3198_p1  ;;  %p3205_p7 = por %p3204_p3, %p3203_p10 }
  0x67   : > { %p3206_p9 = pnand %p3205_p7, %p3199_p2 }
  0x69   : > { %3209 = shalt.err (!%p3206_p9)
}
  0x6a   : > { %s3210_s30 = scalar_lea.vmem %s3506_s28, 256  ;;  %s3301_s11 = smov [#allocation3]  }
  0x6b   : > { %p3211_p12 = scmp.ne.s32.totalorder %s3506_s28, %s3210_s30  ;;  %s3215_s17 = sshll.u32 %s3301_s11, 4  ;;  %s3216_s17 = int_to_ptr.vmem [resolvable:$false] %s3215_s17 }
  0x6c   : > { %s3217_s7 = scalar_lea.vmem %s3216_s17, 512  ;;  %p3218_p4 = scmp.lt.s32.totalorder %s3506_s28, %s3216_s17 }
  0x6d   : > { %p3213_p1 = pnand %p3211_p12, %p3197_p0  ;;  %p3219_p13 = scmp.lt.s32.totalorder %s3217_s7, %s3210_s30 }
  0x6f   : > { %p3214_p5 = pneg %p3213_p1  ;;  %p3220_p6 = por %p3219_p13, %p3218_p4 }
  0x71   : > { %p3221_p10 = pnand %p3220_p6, %p3214_p5 }
  0x73   : > { %3224 = shalt.err (!%p3221_p10)
}
  0x74   : > { %3058 = dma.hbm_to_vmem [thread:$0]  (!%p3508_p11), %s3504_s10, 256, %s3506_s28, %s3512_s13, %s3299_s15, %s3299_s15, %s3300_s16  }
  0x75   : > { %231 = sbr.rel (%p3405_p8) target bundleno = 1129 (0x469), region = 40 }
  0x7c   : > { %s3546_s14 = sand.u32 1, %s3287_s19   ;;  %p5295_p4 = scmp.ne.s32.totalorder %s5280_s24, 0 }
  0x7d   : > { %5294 = sst [smem:[#allocation22_spill]] %s3546_s14  ;;  %s5188_s6 = sshll.u32 %s3546_s14, 4 }
  0x7e   : > { %s234_s8 = scalar_lea.sflag [#allocation4], %s3546_s14  ;;  %s237_s12 = scalar_lea.vmem [#allocation3], %s5188_s6 }
  0x7f   : > { %3270 = dma.done.wait (%p5295_p4), %s234_s8, 256  }
  0x80   : > { %3272 = vsyncadd (%p5295_p4), %s234_s8, 4294967040  ;;  %p5296_p5 = scmp.eq.s32.totalorder %s3386_s22, 0 }
  0x82   : > { %3274 = dma.done.wait (%p5296_p5), [#allocation7], 3072   ;;  %p5297_p8 = pmov %p5296_p5 }
  0x83   : > { %v3302_v0 = vmov 0.0   ;;  %v3560_v1 = vld [vmem:[%s237_s12] sm:$0xff]  ;;  %v3562_v2 = vld [vmem:[%s237_s12 + $0x8] sm:$0xff]  ;;  %s5237_s24 = smov 14   ;;  %s5239_s26 = smov 15  }
  0x84   : > { %3276 = vsyncadd (%p5297_p8), [#allocation7], 4294964224  ;;  %272 = vst [vmem:[#allocation2] sm:$0xff] %v3302_v0  ;;  %s5235_s15 = smov 13   ;;  %s5233_s16 = smov 12  }
  0x85   : > { %275 = vst [vmem:[#allocation2 + $0x18] sm:$0xff] %v3302_v0  ;;  %5298 = vst [vmem:[#allocation23_spill] sm:$0xff] %v3560_v1  ;;  %s5231_s10 = smov 11   ;;  %s5229_s28 = smov 10  }
  0x86   : > { %5299 = vst [vmem:[#allocation24_spill] sm:$0xff] %v3562_v2  ;;  %278 = vst [vmem:[#allocation2 + $0x8] sm:$0xff] %v3560_v1  ;;  %s5227_s13 = smov 9   ;;  %s5225_s9 = smov 8  }
  0x87   : > { %279 = vst [vmem:[#allocation2 + $0x10] sm:$0xff] %v3562_v2  ;;  %s5219_s30 = smov 7   ;;  %s5221_s11 = smov 6  }
  0x88   : > { %s5223_s17 = smov 5   ;;  %s5189_s7 = smov 4  }
  0x89   : > { %s5191_s8 = smov 3   ;;  %s5193_s12 = smov 2  }
  0x8a   : > { %s5195_s6 = smov 1   ;;  %s5325_s0 = smov 116  }
  0x8b   : > { %s5328_s1 = smov 115   ;;  %s5331_s3 = smov 114  }
  0x8c   : > { %s5334_s27 = smov 113   ;;  %s5337_s20 = smov 15  }
  0x8d   : > { %v3566_v3 = vld [vmem:[#allocation2 + $0x7] sm:$0xff]  ;;  %s5340_s19 = smov 14   ;;  %s5343_s29 = smov 13  }
  0x8e   : > { %295 = vrot.lane.b32.xlu1 %v3566_v3, %s5237_s24  ;;  %282 = vrot.lane.b32.xlu0 %v3566_v3, %s5239_s26  ;;  %v3572_v4 = vld [vmem:[#allocation2 + $0xf] sm:$0xff]  ;;  %s5346_s21 = smov 12   ;;  %s5349_s25 = smov 11  }
  0x8f   : > { %s5352_s18 = smov 10   ;;  %s5355_s5 = smov 9  }
  0x90   : > { %s5358_s23 = smov 8   ;;  %s5361_s4 = smov 7  }
  0x91   : > { %s5364_s14 = smov 6   ;;  %s5367_s22 = smov 5  }
  0x92   : > { %297 = vrot.lane.b32.xlu1 %v3572_v4, %s5237_s24  ;;  %284 = vrot.lane.b32.xlu0 %v3572_v4, %s5239_s26 }
  0x96   : > { %310 = vrot.lane.b32.xlu1 %v3572_v4, %s5235_s15  ;;  %308 = vrot.lane.b32.xlu0 %v3566_v3, %s5235_s15 }
  0x9a   : > { %323 = vrot.lane.b32.xlu1 %v3572_v4, %s5233_s16  ;;  %321 = vrot.lane.b32.xlu0 %v3566_v3, %s5233_s16 }
  0x9e   : > { %336 = vrot.lane.b32.xlu1 %v3572_v4, %s5231_s10  ;;  %334 = vrot.lane.b32.xlu0 %v3566_v3, %s5231_s10 }
  0xa2   : > { %349 = vrot.lane.b32.xlu1 %v3572_v4, %s5229_s28  ;;  %347 = vrot.lane.b32.xlu0 %v3566_v3, %s5229_s28 }
  0xa6   : > { %362 = vrot.lane.b32.xlu1 %v3572_v4, %s5227_s13  ;;  %360 = vrot.lane.b32.xlu0 %v3566_v3, %s5227_s13 }
  0xaa   : > { %375 = vrot.lane.b32.xlu1 %v3572_v4, %s5225_s9  ;;  %373 = vrot.lane.b32.xlu0 %v3566_v3, %s5225_s9 }
  0xae   : > { %388 = vrot.lane.b32.xlu1 %v3572_v4, %s5219_s30  ;;  %386 = vrot.lane.b32.xlu0 %v3566_v3, %s5219_s30 }
  0xb2   : > { %401 = vrot.lane.b32.xlu1 %v3572_v4, %s5221_s11  ;;  %399 = vrot.lane.b32.xlu0 %v3566_v3, %s5221_s11 }
  0xb6   : > { %414 = vrot.lane.b32.xlu1 %v3572_v4, %s5223_s17  ;;  %412 = vrot.lane.b32.xlu0 %v3566_v3, %s5223_s17 }
  0xba   : > { %427 = vrot.lane.b32.xlu1 %v3572_v4, %s5189_s7  ;;  %425 = vrot.lane.b32.xlu0 %v3566_v3, %s5189_s7  ;;  %s5197_s7 = smov 127  }
  0xbe   : > { %440 = vrot.lane.b32.xlu1 %v3572_v4, %s5191_s8  ;;  %438 = vrot.lane.b32.xlu0 %v3566_v3, %s5191_s8  ;;  %s5199_s8 = smov 126  }
  0xc2   : > { %453 = vrot.lane.b32.xlu1 %v3572_v4, %s5193_s12  ;;  %451 = vrot.lane.b32.xlu0 %v3566_v3, %s5193_s12  ;;  %s5201_s12 = smov 125  }
  0xc6   : > { %466 = vrot.lane.b32.xlu1 %v3572_v4, %s5195_s6  ;;  %464 = vrot.lane.b32.xlu0 %v3566_v3, %s5195_s6  ;;  %s5203_s6 = smov 124  }
  0xca   : > { %488 = vrot.lane.b32.xlu1 %v3572_v4, %s5197_s7  ;;  %486 = vrot.lane.b32.xlu0 %v3566_v3, %s5197_s7  ;;  %s5205_s7 = smov 123  }
  0xce   : > { %501 = vrot.lane.b32.xlu1 %v3572_v4, %s5199_s8  ;;  %499 = vrot.lane.b32.xlu0 %v3566_v3, %s5199_s8  ;;  %s5207_s8 = smov 122  }
  0xd2   : > { %514 = vrot.lane.b32.xlu1 %v3572_v4, %s5201_s12  ;;  %512 = vrot.lane.b32.xlu0 %v3566_v3, %s5201_s12  ;;  %s5209_s12 = smov 121  }
  0xd6   : > { %527 = vrot.lane.b32.xlu1 %v3572_v4, %s5203_s6  ;;  %525 = vrot.lane.b32.xlu0 %v3566_v3, %s5203_s6  ;;  %s5211_s6 = smov 120  }
  0xda   : > { %540 = vrot.lane.b32.xlu1 %v3572_v4, %s5205_s7  ;;  %538 = vrot.lane.b32.xlu0 %v3566_v3, %s5205_s7  ;;  %s5213_s7 = smov 119  }
  0xde   : > { %553 = vrot.lane.b32.xlu1 %v3572_v4, %s5207_s8  ;;  %551 = vrot.lane.b32.xlu0 %v3566_v3, %s5207_s8  ;;  %s5215_s8 = smov 118  }
  0xe2   : > { %566 = vrot.lane.b32.xlu1 %v3572_v4, %s5209_s12  ;;  %564 = vrot.lane.b32.xlu0 %v3566_v3, %s5209_s12  ;;  %s5217_s12 = smov 117  }
  0xe6   : > { %579 = vrot.lane.b32.xlu1 %v3572_v4, %s5211_s6  ;;  %577 = vrot.lane.b32.xlu0 %v3566_v3, %s5211_s6  ;;  %s5247_s6 = smov 116  }
  0xea   : > { %592 = vrot.lane.b32.xlu1 %v3572_v4, %s5213_s7  ;;  %590 = vrot.lane.b32.xlu0 %v3566_v3, %s5213_s7  ;;  %s5245_s7 = smov 115  }
  0xee   : > { %605 = vrot.lane.b32.xlu1 %v3572_v4, %s5215_s8  ;;  %603 = vrot.lane.b32.xlu0 %v3566_v3, %s5215_s8  ;;  %s5243_s8 = smov 114  }
  0xf2   : > { %618 = vrot.lane.b32.xlu1 %v3572_v4, %s5217_s12  ;;  %616 = vrot.lane.b32.xlu0 %v3566_v3, %s5217_s12  ;;  %s5241_s12 = smov 113  }
  0xf6   : > { %631 = vrot.lane.b32.xlu1 %v3572_v4, %s5247_s6  ;;  %629 = vrot.lane.b32.xlu0 %v3566_v3, %s5247_s6  ;;  %s5322_s6 = smov 117  }
  0xfa   : > { %644 = vrot.lane.b32.xlu1 %v3572_v4, %s5245_s7  ;;  %642 = vrot.lane.b32.xlu0 %v3566_v3, %s5245_s7  ;;  %s5319_s7 = smov 118  }
  0xfe   : > { %657 = vrot.lane.b32.xlu1 %v3572_v4, %s5243_s8  ;;  %655 = vrot.lane.b32.xlu0 %v3566_v3, %s5243_s8  ;;  %s5316_s8 = smov 119  }
 0x100   : > { %v3686_v5 = vpop.permute.xlu1 %295  ;;  %v3688_v6 = vpop.permute.xlu0 %282 }
 0x102   : > { %670 = vrot.lane.b32.xlu1 %v3572_v4, %s5241_s12  ;;  %668 = vrot.lane.b32.xlu0 %v3566_v3, %s5241_s12  ;;  %s5313_s12 = smov 120  }
 0x104   : > { %v3694_v7 = vpop.permute.xlu1 %297  ;;  %v3696_v8 = vpop.permute.xlu0 %284 }
 0x106   : > { %685 = vrot.lane.b32.xlu1 %v3562_v2, %s5239_s26  ;;  %683 = vrot.lane.b32.xlu0 %v3560_v1, %s5239_s26  ;;  %s5310_s26 = smov 121  }
 0x108   : > { %v3702_v9 = vpop.permute.xlu1 %310  ;;  %v3704_v10 = vpop.permute.xlu0 %308 }
 0x10a   : > { %698 = vrot.lane.b32.xlu1 %v3562_v2, %s5237_s24  ;;  %696 = vrot.lane.b32.xlu0 %v3560_v1, %s5237_s24  ;;  %s5309_s24 = smov 122  }
 0x10c   : > { %v3710_v11 = vpop.permute.xlu1 %323  ;;  %v3712_v12 = vpop.permute.xlu0 %321 }
 0x10e   : > { %711 = vrot.lane.b32.xlu1 %v3562_v2, %s5235_s15  ;;  %709 = vrot.lane.b32.xlu0 %v3560_v1, %s5235_s15  ;;  %s5308_s15 = smov 123  }
 0x110   : > { %v3718_v13 = vpop.permute.xlu1 %336  ;;  %v3720_v14 = vpop.permute.xlu0 %334 }
 0x112   : > { %724 = vrot.lane.b32.xlu1 %v3562_v2, %s5233_s16  ;;  %722 = vrot.lane.b32.xlu0 %v3560_v1, %s5233_s16  ;;  %s5307_s16 = smov 124  }
 0x114   : > { %v3726_v15 = vpop.permute.xlu1 %349  ;;  %v3728_v16 = vpop.permute.xlu0 %347 }
 0x116   : > { %737 = vrot.lane.b32.xlu1 %v3562_v2, %s5231_s10  ;;  %735 = vrot.lane.b32.xlu0 %v3560_v1, %s5231_s10  ;;  %s5306_s10 = smov 125  }
 0x118   : > { %v3734_v17 = vpop.permute.xlu1 %362  ;;  %v3736_v18 = vpop.permute.xlu0 %360 }
 0x11a   : > { %750 = vrot.lane.b32.xlu1 %v3562_v2, %s5229_s28  ;;  %748 = vrot.lane.b32.xlu0 %v3560_v1, %s5229_s28  ;;  %s5305_s28 = smov 126  }
 0x11c   : > { %v3742_v19 = vpop.permute.xlu1 %375  ;;  %v3744_v20 = vpop.permute.xlu0 %373 }
 0x11e   : > { %763 = vrot.lane.b32.xlu1 %v3562_v2, %s5227_s13  ;;  %761 = vrot.lane.b32.xlu0 %v3560_v1, %s5227_s13  ;;  %s5304_s13 = smov 127  }
 0x120   : > { %v3750_v21 = vpop.permute.xlu1 %388  ;;  %v3752_v22 = vpop.permute.xlu0 %386 }
 0x122   : > { %776 = vrot.lane.b32.xlu1 %v3562_v2, %s5225_s9  ;;  %774 = vrot.lane.b32.xlu0 %v3560_v1, %s5225_s9  ;;  %s5303_s9 = smov 1  }
 0x124   : > { %v3758_v23 = vpop.permute.xlu1 %401  ;;  %v3760_v24 = vpop.permute.xlu0 %399 }
 0x126   : > { %789 = vrot.lane.b32.xlu1 %v3562_v2, %s5219_s30  ;;  %787 = vrot.lane.b32.xlu0 %v3560_v1, %s5219_s30  ;;  %s5300_s30 = smov 4  }
 0x128   : > { %v3766_v25 = vpop.permute.xlu1 %414  ;;  %v3768_v26 = vpop.permute.xlu0 %412 }
 0x12a   : > { %802 = vrot.lane.b32.xlu1 %v3562_v2, %s5221_s11  ;;  %800 = vrot.lane.b32.xlu0 %v3560_v1, %s5221_s11  ;;  %s5301_s11 = smov 3  }
 0x12c   : > { %v3774_v27 = vpop.permute.xlu1 %427  ;;  %v3776_v28 = vpop.permute.xlu0 %425 }
 0x12e   : > { %815 = vrot.lane.b32.xlu1 %v3562_v2, %s5223_s17  ;;  %813 = vrot.lane.b32.xlu0 %v3560_v1, %s5223_s17  ;;  %s5302_s17 = smov 2  }
 0x130   : > { %v3782_v29 = vpop.permute.xlu1 %440  ;;  %v3784_v30 = vpop.permute.xlu0 %438 }
 0x132   : > { %828 = vrot.lane.b32.xlu1 %v3562_v2, %s5300_s30  ;;  %826 = vrot.lane.b32.xlu0 %v3560_v1, %s5300_s30 }
 0x134   : > { %v3790_v31 = vpop.permute.xlu1 %453  ;;  %v3792_v32 = vpop.permute.xlu0 %451 }
 0x136   : > { %841 = vrot.lane.b32.xlu1 %v3562_v2, %s5301_s11  ;;  %839 = vrot.lane.b32.xlu0 %v3560_v1, %s5301_s11 }
 0x138   : > { %v3798_v33 = vpop.permute.xlu1 %466  ;;  %v3800_v34 = vpop.permute.xlu0 %464 }
 0x13a   : > { %854 = vrot.lane.b32.xlu1 %v3562_v2, %s5302_s17  ;;  %852 = vrot.lane.b32.xlu0 %v3560_v1, %s5302_s17 }
 0x13c   : > { %v3806_v35 = vpop.permute.xlu1 %488  ;;  %v3808_v36 = vpop.permute.xlu0 %486 }
 0x13e   : > { %867 = vrot.lane.b32.xlu1 %v3562_v2, %s5303_s9  ;;  %865 = vrot.lane.b32.xlu0 %v3560_v1, %s5303_s9 }
 0x140   : > { %v3814_v37 = vpop.permute.xlu1 %501  ;;  %v3816_v38 = vpop.permute.xlu0 %499 }
 0x142   : > { %889 = vrot.lane.b32.xlu1 %v3562_v2, %s5304_s13  ;;  %887 = vrot.lane.b32.xlu0 %v3560_v1, %s5304_s13 }
 0x144   : > { %v3822_v39 = vpop.permute.xlu1 %514  ;;  %v3824_v40 = vpop.permute.xlu0 %512 }
 0x146   : > { %902 = vrot.lane.b32.xlu1 %v3562_v2, %s5305_s28  ;;  %900 = vrot.lane.b32.xlu0 %v3560_v1, %s5305_s28 }
 0x148   : > { %v3830_v41 = vpop.permute.xlu1 %527  ;;  %v3832_v42 = vpop.permute.xlu0 %525 }
 0x14a   : > { %915 = vrot.lane.b32.xlu1 %v3562_v2, %s5306_s10  ;;  %913 = vrot.lane.b32.xlu0 %v3560_v1, %s5306_s10 }
 0x14c   : > { %v3838_v43 = vpop.permute.xlu1 %540  ;;  %v3840_v44 = vpop.permute.xlu0 %538 }
 0x14e   : > { %928 = vrot.lane.b32.xlu1 %v3562_v2, %s5307_s16  ;;  %926 = vrot.lane.b32.xlu0 %v3560_v1, %s5307_s16 }
 0x150   : > { %v3846_v45 = vpop.permute.xlu1 %553  ;;  %v3848_v46 = vpop.permute.xlu0 %551 }
 0x152   : > { %941 = vrot.lane.b32.xlu1 %v3562_v2, %s5308_s15  ;;  %939 = vrot.lane.b32.xlu0 %v3560_v1, %s5308_s15 }
 0x154   : > { %v3854_v47 = vpop.permute.xlu1 %566  ;;  %v3856_v48 = vpop.permute.xlu0 %564 }
 0x156   : > { %954 = vrot.lane.b32.xlu1 %v3562_v2, %s5309_s24  ;;  %952 = vrot.lane.b32.xlu0 %v3560_v1, %s5309_s24 }
 0x158   : > { %v3862_v49 = vpop.permute.xlu1 %579  ;;  %v3864_v50 = vpop.permute.xlu0 %577 }
 0x15a   : > { %967 = vrot.lane.b32.xlu1 %v3562_v2, %s5310_s26  ;;  %965 = vrot.lane.b32.xlu0 %v3560_v1, %s5310_s26 }
 0x15c   : > { %v3870_v51 = vpop.permute.xlu1 %592  ;;  %v3872_v52 = vpop.permute.xlu0 %590 }
 0x15d   : > { %5311 = vst [vmem:[#allocation25_spill] sm:$0xff] %v3870_v51  ;;  %5312 = vst [vmem:[#allocation26_spill] sm:$0xff] %v3872_v52  ;;  %v2845_v52 = vld [vmem:[#allocation6 + $0x4] ss:$0 sm:$0xff]  ;;  %v2847_v51 = vld [vmem:[#allocation6 + $0x6] ss:$0 sm:$0xff] }
 0x15e   : > { %980 = vrot.lane.b32.xlu1 %v3562_v2, %s5313_s12  ;;  %978 = vrot.lane.b32.xlu0 %v3560_v1, %s5313_s12 }
 0x160   : > { %v3878_v53 = vpop.permute.xlu1 %605  ;;  %v3880_v54 = vpop.permute.xlu0 %603 }
 0x161   : > { %5314 = vst [vmem:[#allocation27_spill] sm:$0xff] %v3878_v53  ;;  %5315 = vst [vmem:[#allocation28_spill] sm:$0xff] %v3880_v54 }
 0x162   : > { %993 = vrot.lane.b32.xlu1 %v3562_v2, %s5316_s8  ;;  %991 = vrot.lane.b32.xlu0 %v3560_v1, %s5316_s8 }
 0x164   : > { %v3886_v55 = vpop.permute.xlu1 %618  ;;  %v3888_v56 = vpop.permute.xlu0 %616 }
 0x165   : > { %5317 = vst [vmem:[#allocation29_spill] sm:$0xff] %v3886_v55  ;;  %5318 = vst [vmem:[#allocation30_spill] sm:$0xff] %v3888_v56 }
 0x166   : > { %1006 = vrot.lane.b32.xlu1 %v3562_v2, %s5319_s7  ;;  %1004 = vrot.lane.b32.xlu0 %v3560_v1, %s5319_s7 }
 0x168   : > { %v3894_v57 = vpop.permute.xlu1 %631  ;;  %v3896_v58 = vpop.permute.xlu0 %629 }
 0x169   : > { %5320 = vst [vmem:[#allocation31_spill] sm:$0xff] %v3894_v57  ;;  %5321 = vst [vmem:[#allocation32_spill] sm:$0xff] %v3896_v58 }
 0x16a   : > { %1019 = vrot.lane.b32.xlu1 %v3562_v2, %s5322_s6  ;;  %1017 = vrot.lane.b32.xlu0 %v3560_v1, %s5322_s6 }
 0x16c   : > { %v3902_v59 = vpop.permute.xlu1 %644  ;;  %v3904_v60 = vpop.permute.xlu0 %642 }
 0x16d   : > { %5323 = vst [vmem:[#allocation33_spill] sm:$0xff] %v3902_v59  ;;  %5324 = vst [vmem:[#allocation34_spill] sm:$0xff] %v3904_v60 }
 0x16e   : > { %1032 = vrot.lane.b32.xlu1 %v3562_v2, %s5325_s0  ;;  %1030 = vrot.lane.b32.xlu0 %v3560_v1, %s5325_s0 }
 0x170   : > { %v3910_v61 = vpop.permute.xlu1 %657  ;;  %v3912_v62 = vpop.permute.xlu0 %655 }
 0x171   : > { %5326 = vst [vmem:[#allocation35_spill] sm:$0xff] %v3910_v61  ;;  %5327 = vst [vmem:[#allocation36_spill] sm:$0xff] %v3912_v62  ;;  %v3934_v62 = vld [vmem:[#allocation2 + $0x11] sm:$0xff] }
 0x172   : > { %1045 = vrot.lane.b32.xlu1 %v3562_v2, %s5328_s1  ;;  %1043 = vrot.lane.b32.xlu0 %v3560_v1, %s5328_s1 }
 0x174   : > { %v3918_v63 = vpop.permute.xlu1 %670  ;;  %v3920_v0 = vpop.permute.xlu0 %668 }
 0x175   : > { %5329 = vst [vmem:[#allocation37_spill] sm:$0xff] %v3918_v63  ;;  %5330 = vst [vmem:[#allocation38_spill] sm:$0xff] %v3920_v0  ;;  %v3936_v63 = vld [vmem:[#allocation2 + $0x9] sm:$0xff] }
 0x176   : > { %1058 = vrot.lane.b32.xlu1 %v3562_v2, %s5331_s3  ;;  %1056 = vrot.lane.b32.xlu0 %v3560_v1, %s5331_s3 }
 0x178   : > { %v3926_v60 = vpop.permute.xlu1 %685  ;;  %v3928_v61 = vpop.permute.xlu0 %683 }
 0x179   : > { %5332 = vst [vmem:[#allocation39_spill] sm:$0xff] %v3926_v60  ;;  %5333 = vst [vmem:[#allocation40_spill] sm:$0xff] %v3928_v61  ;;  %v2843_v61 = vld [vmem:[#allocation6 + $0x2] ss:$0 sm:$0xff] }
 0x17a   : > { %1071 = vrot.lane.b32.xlu1 %v3562_v2, %s5334_s27  ;;  %1069 = vrot.lane.b32.xlu0 %v3560_v1, %s5334_s27  ;;  %v317_v53 = vmul.f32 %v2843_v61, %v3704_v10 }
 0x17c   : > { %v3938_v0 = vpop.permute.xlu1 %698  ;;  %v3940_v59 = vpop.permute.xlu0 %696 }
 0x17d   : > { %5335 = vst [vmem:[#allocation41_spill] sm:$0xff] %v3938_v0  ;;  %5336 = vst [vmem:[#allocation42_spill] sm:$0xff] %v3940_v59  ;;  %v2844_v0 = vld [vmem:[#allocation6 + $0x3] ss:$0 sm:$0xff] }
 0x17e   : > { %1086 = vrot.lane.b32.xlu1 %v3934_v62, %s5337_s20  ;;  %1084 = vrot.lane.b32.xlu0 %v3936_v63, %s5337_s20 }
 0x180   : > { %v3946_v58 = vpop.permute.xlu1 %711  ;;  %v3948_v57 = vpop.permute.xlu0 %709 }
 0x181   : > { %5338 = vst [vmem:[#allocation43_spill] sm:$0xff] %v3946_v58  ;;  %5339 = vst [vmem:[#allocation44_spill] sm:$0xff] %v3948_v57 }
 0x182   : > { %1099 = vrot.lane.b32.xlu1 %v3934_v62, %s5340_s19  ;;  %1097 = vrot.lane.b32.xlu0 %v3936_v63, %s5340_s19 }
 0x184   : > { %v3954_v56 = vpop.permute.xlu1 %724  ;;  %v3956_v55 = vpop.permute.xlu0 %722 }
 0x185   : > { %5341 = vst [vmem:[#allocation45_spill] sm:$0xff] %v3954_v56  ;;  %5342 = vst [vmem:[#allocation46_spill] sm:$0xff] %v3956_v55 }
 0x186   : > { %1112 = vrot.lane.b32.xlu1 %v3934_v62, %s5343_s29  ;;  %1110 = vrot.lane.b32.xlu0 %v3936_v63, %s5343_s29 }
 0x188   : > { %v3962_v1 = vpop.permute.xlu1 %737  ;;  %v3964_v2 = vpop.permute.xlu0 %735 }
 0x189   : > { %5344 = vst [vmem:[#allocation47_spill] sm:$0xff] %v3962_v1  ;;  %5345 = vst [vmem:[#allocation48_spill] sm:$0xff] %v3964_v2 }
 0x18a   : > { %1125 = vrot.lane.b32.xlu1 %v3934_v62, %s5346_s21  ;;  %1123 = vrot.lane.b32.xlu0 %v3936_v63, %s5346_s21 }
 0x18c   : > { %v3970_v57 = vpop.permute.xlu1 %750  ;;  %v3972_v56 = vpop.permute.xlu0 %748 }
 0x18d   : > { %5347 = vst [vmem:[#allocation49_spill] sm:$0xff] %v3970_v57  ;;  %5348 = vst [vmem:[#allocation50_spill] sm:$0xff] %v3972_v56 }
 0x18e   : > { %1138 = vrot.lane.b32.xlu1 %v3934_v62, %s5349_s25  ;;  %1136 = vrot.lane.b32.xlu0 %v3936_v63, %s5349_s25 }
 0x190   : > { %v3978_v55 = vpop.permute.xlu1 %763  ;;  %v3980_v1 = vpop.permute.xlu0 %761 }
 0x191   : > { %5350 = vst [vmem:[#allocation51_spill] sm:$0xff] %v3978_v55  ;;  %5351 = vst [vmem:[#allocation52_spill] sm:$0xff] %v3980_v1 }
 0x192   : > { %1151 = vrot.lane.b32.xlu1 %v3934_v62, %s5352_s18  ;;  %1149 = vrot.lane.b32.xlu0 %v3936_v63, %s5352_s18 }
 0x194   : > { %v3986_v2 = vpop.permute.xlu1 %776  ;;  %v3988_v57 = vpop.permute.xlu0 %774 }
 0x195   : > { %5353 = vst [vmem:[#allocation53_spill] sm:$0xff] %v3986_v2  ;;  %5354 = vst [vmem:[#allocation54_spill] sm:$0xff] %v3988_v57 }
 0x196   : > { %1164 = vrot.lane.b32.xlu1 %v3934_v62, %s5355_s5  ;;  %1162 = vrot.lane.b32.xlu0 %v3936_v63, %s5355_s5 }
 0x198   : > { %v3994_v56 = vpop.permute.xlu1 %789  ;;  %v3996_v55 = vpop.permute.xlu0 %787 }
 0x199   : > { %5356 = vst [vmem:[#allocation55_spill] sm:$0xff] %v3994_v56  ;;  %5357 = vst [vmem:[#allocation56_spill] sm:$0xff] %v3996_v55 }
 0x19a   : > { %1177 = vrot.lane.b32.xlu1 %v3934_v62, %s5358_s23  ;;  %1175 = vrot.lane.b32.xlu0 %v3936_v63, %s5358_s23 }
 0x19c   : > { %v4002_v1 = vpop.permute.xlu1 %802  ;;  %v4004_v2 = vpop.permute.xlu0 %800 }
 0x19d   : > { %5359 = vst [vmem:[#allocation57_spill] sm:$0xff] %v4002_v1  ;;  %5360 = vst [vmem:[#allocation58_spill] sm:$0xff] %v4004_v2 }
 0x19e   : > { %1190 = vrot.lane.b32.xlu1 %v3934_v62, %s5361_s4  ;;  %1188 = vrot.lane.b32.xlu0 %v3936_v63, %s5361_s4 }
 0x1a0   : > { %v4010_v57 = vpop.permute.xlu1 %815  ;;  %v4012_v56 = vpop.permute.xlu0 %813 }
 0x1a1   : > { %5362 = vst [vmem:[#allocation59_spill] sm:$0xff] %v4010_v57  ;;  %5363 = vst [vmem:[#allocation60_spill] sm:$0xff] %v4012_v56 }
 0x1a2   : > { %1203 = vrot.lane.b32.xlu1 %v3934_v62, %s5364_s14  ;;  %1201 = vrot.lane.b32.xlu0 %v3936_v63, %s5364_s14 }
 0x1a4   : > { %v4018_v55 = vpop.permute.xlu1 %828  ;;  %v4020_v1 = vpop.permute.xlu0 %826 }
 0x1a5   : > { %5365 = vst [vmem:[#allocation61_spill] sm:$0xff] %v4018_v55  ;;  %5366 = vst [vmem:[#allocation62_spill] sm:$0xff] %v4020_v1 }
 0x1a6   : > { %1216 = vrot.lane.b32.xlu1 %v3934_v62, %s5367_s22  ;;  %1214 = vrot.lane.b32.xlu0 %v3936_v63, %s5367_s22 }
 0x1a8   : > { %v4026_v2 = vpop.permute.xlu1 %841  ;;  %v4028_v57 = vpop.permute.xlu0 %839 }
 0x1a9   : > { %5368 = vst [vmem:[#allocation63_spill] sm:$0xff] %v4026_v2  ;;  %5369 = vst [vmem:[#allocation64_spill] sm:$0xff] %v4028_v57 }
 0x1aa   : > { %1229 = vrot.lane.b32.xlu1 %v3934_v62, %s5300_s30  ;;  %1227 = vrot.lane.b32.xlu0 %v3936_v63, %s5300_s30 }
 0x1ac   : > { %v4034_v56 = vpop.permute.xlu1 %854  ;;  %v4036_v55 = vpop.permute.xlu0 %852 }
 0x1ad   : > { %5370 = vst [vmem:[#allocation65_spill] sm:$0xff] %v4034_v56  ;;  %5371 = vst [vmem:[#allocation66_spill] sm:$0xff] %v4036_v55 }
 0x1ae   : > { %1242 = vrot.lane.b32.xlu1 %v3934_v62, %s5301_s11  ;;  %1240 = vrot.lane.b32.xlu0 %v3936_v63, %s5301_s11 }
 0x1b0   : > { %v4042_v1 = vpop.permute.xlu1 %867  ;;  %v4044_v2 = vpop.permute.xlu0 %865 }
 0x1b1   : > { %5372 = vst [vmem:[#allocation67_spill] sm:$0xff] %v4042_v1  ;;  %5373 = vst [vmem:[#allocation68_spill] sm:$0xff] %v4044_v2 }
 0x1b2   : > { %1255 = vrot.lane.b32.xlu1 %v3934_v62, %s5302_s17  ;;  %1253 = vrot.lane.b32.xlu0 %v3936_v63, %s5302_s17 }
 0x1b4   : > { %v4050_v57 = vpop.permute.xlu1 %889  ;;  %v4052_v56 = vpop.permute.xlu0 %887 }
 0x1b5   : > { %5374 = vst [vmem:[#allocation69_spill] sm:$0xff] %v4050_v57  ;;  %5375 = vst [vmem:[#allocation70_spill] sm:$0xff] %v4052_v56 }
 0x1b6   : > { %1268 = vrot.lane.b32.xlu1 %v3934_v62, %s5303_s9  ;;  %1266 = vrot.lane.b32.xlu0 %v3936_v63, %s5303_s9 }
 0x1b8   : > { %v4058_v55 = vpop.permute.xlu1 %902  ;;  %v4060_v1 = vpop.permute.xlu0 %900 }
 0x1b9   : > { %5376 = vst [vmem:[#allocation71_spill] sm:$0xff] %v4058_v55  ;;  %5377 = vst [vmem:[#allocation72_spill] sm:$0xff] %v4060_v1 }
 0x1ba   : > { %1290 = vrot.lane.b32.xlu1 %v3934_v62, %s5304_s13  ;;  %1288 = vrot.lane.b32.xlu0 %v3936_v63, %s5304_s13 }
 0x1bc   : > { %v4066_v2 = vpop.permute.xlu1 %915  ;;  %v4068_v57 = vpop.permute.xlu0 %913 }
 0x1bd   : > { %5378 = vst [vmem:[#allocation73_spill] sm:$0xff] %v4066_v2  ;;  %5379 = vst [vmem:[#allocation74_spill] sm:$0xff] %v4068_v57 }
 0x1be   : > { %1303 = vrot.lane.b32.xlu1 %v3934_v62, %s5305_s28  ;;  %1301 = vrot.lane.b32.xlu0 %v3936_v63, %s5305_s28 }
 0x1c0   : > { %v4074_v56 = vpop.permute.xlu1 %928  ;;  %v4076_v55 = vpop.permute.xlu0 %926 }
 0x1c1   : > { %5380 = vst [vmem:[#allocation75_spill] sm:$0xff] %v4074_v56  ;;  %5381 = vst [vmem:[#allocation76_spill] sm:$0xff] %v4076_v55 }
 0x1c2   : > { %1316 = vrot.lane.b32.xlu1 %v3934_v62, %s5306_s10  ;;  %1314 = vrot.lane.b32.xlu0 %v3936_v63, %s5306_s10 }
 0x1c4   : > { %v4082_v1 = vpop.permute.xlu1 %941  ;;  %v4084_v2 = vpop.permute.xlu0 %939 }
 0x1c5   : > { %5382 = vst [vmem:[#allocation77_spill] sm:$0xff] %v4082_v1  ;;  %5383 = vst [vmem:[#allocation78_spill] sm:$0xff] %v4084_v2 }
 0x1c6   : > { %1329 = vrot.lane.b32.xlu1 %v3934_v62, %s5307_s16  ;;  %1327 = vrot.lane.b32.xlu0 %v3936_v63, %s5307_s16 }
 0x1c8   : > { %v4090_v57 = vpop.permute.xlu1 %954  ;;  %v4092_v56 = vpop.permute.xlu0 %952 }
 0x1c9   : > { %5384 = vst [vmem:[#allocation79_spill] sm:$0xff] %v4090_v57  ;;  %5385 = vst [vmem:[#allocation80_spill] sm:$0xff] %v4092_v56 }
 0x1ca   : > { %1342 = vrot.lane.b32.xlu1 %v3934_v62, %s5308_s15  ;;  %1340 = vrot.lane.b32.xlu0 %v3936_v63, %s5308_s15 }
 0x1cc   : > { %v4098_v55 = vpop.permute.xlu1 %967  ;;  %v4100_v1 = vpop.permute.xlu0 %965 }
 0x1cd   : > { %5386 = vst [vmem:[#allocation81_spill] sm:$0xff] %v4098_v55  ;;  %5387 = vst [vmem:[#allocation82_spill] sm:$0xff] %v4100_v1 }
 0x1ce   : > { %1355 = vrot.lane.b32.xlu1 %v3934_v62, %s5309_s24  ;;  %1353 = vrot.lane.b32.xlu0 %v3936_v63, %s5309_s24 }
 0x1d0   : > { %v4106_v2 = vpop.permute.xlu1 %980  ;;  %v4108_v57 = vpop.permute.xlu0 %978 }
 0x1d1   : > { %5388 = vst [vmem:[#allocation83_spill] sm:$0xff] %v4106_v2  ;;  %5389 = vst [vmem:[#allocation84_spill] sm:$0xff] %v4108_v57 }
 0x1d2   : > { %1368 = vrot.lane.b32.xlu1 %v3934_v62, %s5310_s26  ;;  %1366 = vrot.lane.b32.xlu0 %v3936_v63, %s5310_s26 }
 0x1d4   : > { %v4114_v56 = vpop.permute.xlu1 %993  ;;  %v4116_v55 = vpop.permute.xlu0 %991 }
 0x1d5   : > { %5390 = vst [vmem:[#allocation85_spill] sm:$0xff] %v4114_v56  ;;  %5391 = vst [vmem:[#allocation86_spill] sm:$0xff] %v4116_v55 }
 0x1d6   : > { %1381 = vrot.lane.b32.xlu1 %v3934_v62, %s5313_s12  ;;  %1379 = vrot.lane.b32.xlu0 %v3936_v63, %s5313_s12 }
 0x1d8   : > { %v4122_v1 = vpop.permute.xlu1 %1006  ;;  %v4124_v2 = vpop.permute.xlu0 %1004 }
 0x1d9   : > { %5392 = vst [vmem:[#allocation87_spill] sm:$0xff] %v4122_v1  ;;  %5393 = vst [vmem:[#allocation88_spill] sm:$0xff] %v4124_v2 }
 0x1da   : > { %1394 = vrot.lane.b32.xlu1 %v3934_v62, %s5316_s8  ;;  %1392 = vrot.lane.b32.xlu0 %v3936_v63, %s5316_s8 }
 0x1dc   : > { %v4130_v57 = vpop.permute.xlu1 %1019  ;;  %v4132_v56 = vpop.permute.xlu0 %1017 }
 0x1dd   : > { %5394 = vst [vmem:[#allocation89_spill] sm:$0xff] %v4130_v57  ;;  %5395 = vst [vmem:[#allocation90_spill] sm:$0xff] %v4132_v56  ;;  %v2842_v56 = vld [vmem:[#allocation6 + $0x1] ss:$0 sm:$0xff] }
 0x1de   : > { %1407 = vrot.lane.b32.xlu1 %v3934_v62, %s5319_s7  ;;  %1405 = vrot.lane.b32.xlu0 %v3936_v63, %s5319_s7  ;;  %v305_v60 = vmul.f32 %v2842_v56, %v3694_v7  ;;  %v331_v7 = vmul.f32 %v2844_v0, %v3710_v11 }
 0x1e0   : > { %v4138_v55 = vpop.permute.xlu1 %1032  ;;  %v4140_v1 = vpop.permute.xlu0 %1030 }
 0x1e1   : > { %5396 = vst [vmem:[#allocation91_spill] sm:$0xff] %v4138_v55  ;;  %5397 = vst [vmem:[#allocation92_spill] sm:$0xff] %v4140_v1  ;;  %v2841_v55 = vld [vmem:[#allocation6] ss:$0 sm:$0xff] }
 0x1e2   : > { %1420 = vrot.lane.b32.xlu1 %v3934_v62, %s5322_s6  ;;  %1418 = vrot.lane.b32.xlu0 %v3936_v63, %s5322_s6  ;;  %v292_v59 = vmul.f32 %v2841_v55, %v3696_v8  ;;  %v330_v8 = vmul.f32 %v2844_v0, %v3712_v12  ;;  %v2849_v0 = vld [vmem:[#allocation6 + $0x8] ss:$0 sm:$0xff] }
 0x1e4   : > { %v4146_v2 = vpop.permute.xlu1 %1045  ;;  %v4148_v57 = vpop.permute.xlu0 %1043 }
 0x1e5   : > { %5398 = vst [vmem:[#allocation93_spill] sm:$0xff] %v4146_v2  ;;  %5399 = vst [vmem:[#allocation94_spill] sm:$0xff] %v4148_v57  ;;  %v304_v57 = vmul.f32 %v2842_v56, %v3686_v5  ;;  %v291_v2 = vmul.f32 %v2841_v55, %v3688_v6  ;;  %v307_v6 = vadd.f32 %v305_v60, %v292_v59  ;;  %v2846_v55 = vld [vmem:[#allocation6 + $0x5] ss:$0 sm:$0xff]  ;;  %v2848_v59 = vld [vmem:[#allocation6 + $0x7] ss:$0 sm:$0xff] }
 0x1e6   : > { %1433 = vrot.lane.b32.xlu1 %v3934_v62, %s5325_s0  ;;  %1431 = vrot.lane.b32.xlu0 %v3936_v63, %s5325_s0  ;;  %v357_v12 = vmul.f32 %v2846_v55, %v3726_v15  ;;  %v369_v60 = vmul.f32 %v2847_v51, %v3736_v18  ;;  %v382_v15 = vmul.f32 %v2848_v59, %v3744_v20 }
 0x1e7   : > { %v306_v5 = vadd.f32 %v304_v57, %v291_v2  ;;  %v356_v57 = vmul.f32 %v2846_v55, %v3728_v16 }
 0x1e8   : > { %v4154_v58 = vpop.permute.xlu1 %1058  ;;  %v4156_v1 = vpop.permute.xlu0 %1056 }
 0x1e9   : > { %5400 = vst [vmem:[#allocation95_spill] sm:$0xff] %v4154_v58  ;;  %5401 = vst [vmem:[#allocation96_spill] sm:$0xff] %v4156_v1  ;;  %v318_v1 = vmul.f32 %v2843_v61, %v3702_v9  ;;  %v319_v10 = vadd.f32 %v317_v53, %v306_v5  ;;  %v344_v61 = vmul.f32 %v2845_v52, %v3718_v13 }
 0x1ea   : > { %1446 = vrot.lane.b32.xlu1 %v3934_v62, %s5328_s1  ;;  %1444 = vrot.lane.b32.xlu0 %v3936_v63, %s5328_s1 }
 0x1eb   : > { %v320_v9 = vadd.f32 %v318_v1, %v307_v6  ;;  %v332_v11 = vadd.f32 %v330_v8, %v319_v10  ;;  %v2850_v8 = vld [vmem:[#allocation6 + $0x9] ss:$0 sm:$0xff] }
 0x1ec   : > { %v4166_v54 = vpop.permute.xlu1 %1071  ;;  %v4168_v58 = vpop.permute.xlu0 %1069 }
 0x1ed   : > { %5402 = vst [vmem:[#allocation97_spill] sm:$0xff] %v4166_v54  ;;  %5403 = vst [vmem:[#allocation98_spill] sm:$0xff] %v4168_v58  ;;  %v343_v54 = vmul.f32 %v2845_v52, %v3720_v14  ;;  %v333_v2 = vadd.f32 %v331_v7, %v320_v9  ;;  %v370_v52 = vmul.f32 %v2847_v51, %v3734_v17 }
 0x1ee   : > { %1459 = vrot.lane.b32.xlu1 %v3934_v62, %s5331_s3  ;;  %1457 = vrot.lane.b32.xlu0 %v3936_v63, %s5331_s3  ;;  %v383_v7 = vmul.f32 %v2848_v59, %v3742_v19  ;;  %v395_v17 = vmul.f32 %v2849_v0, %v3752_v22  ;;  %v408_v19 = vmul.f32 %v2850_v8, %v3760_v24  ;;  %s5482_s3 = smov 114  }
 0x1ef   : > { %v346_v13 = vadd.f32 %v344_v61, %v333_v2  ;;  %v345_v14 = vadd.f32 %v343_v54, %v332_v11  ;;  %v396_v54 = vmul.f32 %v2849_v0, %v3750_v21  ;;  %v2851_v61 = vld [vmem:[#allocation6 + $0xa] ss:$0 sm:$0xff]  ;;  %v409_v2 = vmul.f32 %v2850_v8, %v3758_v23  ;;  %v2852_v11 = vld [vmem:[#allocation6 + $0xb] ss:$0 sm:$0xff]  ;;  %v2854_v0 = vld [vmem:[#allocation6 + $0xd] ss:$0 sm:$0xff] }
 0x1f0   : > { %v4178_v56 = vpop.permute.xlu1 %1086  ;;  %v4180_v58 = vpop.permute.xlu0 %1084  ;;  %v421_v21 = vmul.f32 %v2851_v61, %v3768_v26  ;;  %v434_v23 = vmul.f32 %v2852_v11, %v3776_v28  ;;  %v2855_v8 = vld [vmem:[#allocation6 + $0xe] ss:$0 sm:$0xff] }
 0x1f1   : > { %v359_v5 = vadd.f32 %v357_v12, %v346_v13  ;;  %v358_v6 = vadd.f32 %v356_v57, %v345_v14  ;;  %v422_v13 = vmul.f32 %v2851_v61, %v3766_v25  ;;  %v2853_v14 = vld [vmem:[#allocation6 + $0xc] ss:$0 sm:$0xff] }
 0x1f2   : > { %1472 = vrot.lane.b32.xlu1 %v3934_v62, %s5334_s27  ;;  %1470 = vrot.lane.b32.xlu0 %v3936_v63, %s5334_s27  ;;  %v447_v25 = vmul.f32 %v2853_v14, %v3784_v30  ;;  %s5483_s27 = smov 113  }
 0x1f3   : > { %v372_v9 = vadd.f32 %v370_v52, %v359_v5  ;;  %v371_v10 = vadd.f32 %v369_v60, %v358_v6  ;;  %v435_v60 = vmul.f32 %v2852_v11, %v3774_v27  ;;  %v460_v27 = vmul.f32 %v2854_v0, %v3792_v32 }
 0x1f4   : > { %v4190_v1 = vpop.permute.xlu1 %1099  ;;  %v4192_v53 = vpop.permute.xlu0 %1097 }
 0x1f5   : > { %v385_v18 = vadd.f32 %v383_v7, %v372_v9  ;;  %v384_v51 = vadd.f32 %v382_v15, %v371_v10  ;;  %v448_v15 = vmul.f32 %v2853_v14, %v3782_v29  ;;  %v461_v10 = vmul.f32 %v2854_v0, %v3790_v31  ;;  %v2856_v29 = vld [vmem:[#allocation6 + $0xf] ss:$0 sm:$0xff] }
 0x1f6   : > { %v483_v32 = vmul.f32 %v2856_v29, %v3572_v4  ;;  %v2860_v4 = vld [vmem:[#allocation6 + $0x13] ss:$0 sm:$0xff] }
 0x1f7   : > { %v398_v57 = vadd.f32 %v396_v54, %v385_v18  ;;  %v397_v59 = vadd.f32 %v395_v17, %v384_v51  ;;  %v474_v18 = vmul.f32 %v2855_v8, %v3798_v33  ;;  %v473_v51 = vmul.f32 %v2855_v8, %v3800_v34 }
 0x1f8   : > { %v4198_v16 = vpop.permute.xlu1 %1112  ;;  %v4200_v55 = vpop.permute.xlu0 %1110 }
 0x1f9   : > { %v411_v22 = vadd.f32 %v409_v2, %v398_v57  ;;  %v410_v52 = vadd.f32 %v408_v19, %v397_v59  ;;  %v482_v59 = vmul.f32 %v2856_v29, %v3566_v3  ;;  %v2863_v29 = vld [vmem:[#allocation6 + $0x16] ss:$0 sm:$0xff] }
 0x1fb   : > { %v424_v6 = vadd.f32 %v422_v13, %v411_v22  ;;  %v423_v7 = vadd.f32 %v421_v21, %v410_v52  ;;  %v2857_v13 = vld [vmem:[#allocation6 + $0x10] ss:$0 sm:$0xff]  ;;  %v2858_v21 = vld [vmem:[#allocation6 + $0x11] ss:$0 sm:$0xff] }
 0x1fc   : > { %v4206_v20 = vpop.permute.xlu1 %1125  ;;  %v4208_v12 = vpop.permute.xlu0 %1123  ;;  %v496_v22 = vmul.f32 %v2857_v13, %v3806_v35  ;;  %v509_v0 = vmul.f32 %v2858_v21, %v3814_v37  ;;  %v2861_v35 = vld [vmem:[#allocation6 + $0x14] ss:$0 sm:$0xff]  ;;  %v534_v37 = vmul.f32 %v2860_v4, %v3832_v42 }
 0x1fd   : > { %v437_v26 = vadd.f32 %v435_v60, %v424_v6  ;;  %v436_v9 = vadd.f32 %v434_v23, %v423_v7  ;;  %v495_v60 = vmul.f32 %v2857_v13, %v3808_v36  ;;  %v2859_v23 = vld [vmem:[#allocation6 + $0x12] ss:$0 sm:$0xff]  ;;  %v508_v6 = vmul.f32 %v2858_v21, %v3816_v38  ;;  %v2865_v21 = vld [vmem:[#allocation6 + $0x18] ss:$0 sm:$0xff] }
 0x1fe   : > { %v522_v8 = vmul.f32 %v2859_v23, %v3822_v39  ;;  %v535_v36 = vmul.f32 %v2860_v4, %v3830_v41  ;;  %v547_v39 = vmul.f32 %v2861_v35, %v3840_v44  ;;  %v574_v13 = vmul.f32 %v2863_v29, %v3854_v47 }
 0x1ff   : > { %v450_v17 = vadd.f32 %v448_v15, %v437_v26  ;;  %v449_v61 = vadd.f32 %v447_v25, %v436_v9  ;;  %v521_v26 = vmul.f32 %v2859_v23, %v3824_v40 }
 0x200   : > { %v4214_v24 = vpop.permute.xlu1 %1138  ;;  %v4216_v5 = vpop.permute.xlu0 %1136 }
 0x201   : > { %v463_v2 = vadd.f32 %v461_v10, %v450_v17  ;;  %v462_v30 = vadd.f32 %v460_v27, %v449_v61  ;;  %v2862_v27 = vld [vmem:[#allocation6 + $0x15] ss:$0 sm:$0xff] }
 0x202   : > { %v560_v41 = vmul.f32 %v2862_v27, %v3848_v46 }
 0x203   : > { %v476_v31 = vadd.f32 %v474_v18, %v463_v2  ;;  %v475_v57 = vadd.f32 %v473_v51, %v462_v30  ;;  %v548_v51 = vmul.f32 %v2861_v35, %v3838_v43  ;;  %v561_v30 = vmul.f32 %v2862_v27, %v3846_v45  ;;  %v5409_v27 = vld [vmem:[#allocation42_spill] sm:$0xff] }
 0x204   : > { %v4222_v54 = vpop.permute.xlu1 %1151  ;;  %v4224_v28 = vpop.permute.xlu0 %1149  ;;  %v573_v43 = vmul.f32 %v2863_v29, %v3856_v48 }
 0x205   : > { %v485_v34 = vadd.f32 %v483_v32, %v476_v31  ;;  %v484_v52 = vadd.f32 %v482_v59, %v475_v57  ;;  %v2864_v31 = vld [vmem:[#allocation6 + $0x17] ss:$0 sm:$0xff] }
 0x206   : > { %v586_v45 = vmul.f32 %v2864_v31, %v3864_v50  ;;  %v2874_v50 = vld [vmem:[#allocation6 + $0x21] ss:$0 sm:$0xff] }
 0x207   : > { %v498_v15 = vadd.f32 %v496_v22, %v485_v34  ;;  %v497_v25 = vadd.f32 %v495_v60, %v484_v52  ;;  %v587_v22 = vmul.f32 %v2864_v31, %v3862_v49  ;;  %v2866_v52 = vld [vmem:[#allocation6 + $0x19] ss:$0 sm:$0xff] }
 0x208   : > { %v4228_v19 = vpop.permute.xlu1 %1164  ;;  %v4230_v11 = vpop.permute.xlu0 %1162 }
 0x209   : > { %v511_v9 = vadd.f32 %v509_v0, %v498_v15  ;;  %v510_v10 = vadd.f32 %v508_v6, %v497_v25  ;;  %v5404_v6 = vld [vmem:[#allocation25_spill] sm:$0xff]  ;;  %v5405_v15 = vld [vmem:[#allocation26_spill] sm:$0xff]  ;;  %v2873_v25 = vld [vmem:[#allocation6 + $0x20] ss:$0 sm:$0xff] }
 0x20a   : > { %v600_v4 = vmul.f32 %v2865_v21, %v5404_v6  ;;  %v599_v47 = vmul.f32 %v2865_v21, %v5405_v15  ;;  %v5413_v21 = vld [vmem:[#allocation44_spill] sm:$0xff]  ;;  %v5415_v6 = vld [vmem:[#allocation23_spill] sm:$0xff] }
 0x20b   : > { %v524_v61 = vadd.f32 %v522_v8, %v511_v9  ;;  %v523_v18 = vadd.f32 %v521_v26, %v510_v10  ;;  %v5406_v26 = vld [vmem:[#allocation27_spill] sm:$0xff]  ;;  %v5407_v9 = vld [vmem:[#allocation28_spill] sm:$0xff]  ;;  %v2872_v10 = vld [vmem:[#allocation6 + $0x1f] ss:$0 sm:$0xff] }
 0x20c   : > { %v4234_v14 = vpop.permute.xlu1 %1177  ;;  %v4236_v33 = vpop.permute.xlu0 %1175  ;;  %v613_v35 = vmul.f32 %v2866_v52, %v5406_v26  ;;  %v612_v49 = vmul.f32 %v2866_v52, %v5407_v9  ;;  %v2876_v52 = vld [vmem:[#allocation6 + $0x23] ss:$0 sm:$0xff]  ;;  %v2903_v9 = vld [vmem:[#allocation6 + $0x3e] ss:$0 sm:$0xff] }
 0x20d   : > { %v537_v40 = vadd.f32 %v535_v36, %v524_v61  ;;  %v536_v2 = vadd.f32 %v534_v37, %v523_v18  ;;  %v5408_v36 = vld [vmem:[#allocation41_spill] sm:$0xff]  ;;  %v705_v61 = vmul.f32 %v2873_v25, %v5409_v27  ;;  %v2887_v18 = vld [vmem:[#allocation6 + $0x2e] ss:$0 sm:$0xff]  ;;  %v5419_v27 = vld [vmem:[#allocation30_spill] sm:$0xff] }
 0x20e   : > { %v706_v37 = vmul.f32 %v2873_v25, %v5408_v36  ;;  %v5416_v25 = vld [vmem:[#allocation45_spill] sm:$0xff] }
 0x20f   : > { %v550_v32 = vadd.f32 %v548_v51, %v537_v40  ;;  %v549_v59 = vadd.f32 %v547_v39, %v536_v2  ;;  %v2875_v2 = vld [vmem:[#allocation6 + $0x22] ss:$0 sm:$0xff] }
 0x210   : > { %v4242_v7 = vpop.permute.xlu1 %1190  ;;  %v4244_v3 = vpop.permute.xlu0 %1188 }
 0x211   : > { %v563_v44 = vadd.f32 %v561_v30, %v550_v32  ;;  %v562_v34 = vadd.f32 %v560_v41, %v549_v59  ;;  %v2867_v30 = vld [vmem:[#allocation6 + $0x1a] ss:$0 sm:$0xff]  ;;  %v5410_v41 = vld [vmem:[#allocation39_spill] sm:$0xff]  ;;  %v5411_v32 = vld [vmem:[#allocation40_spill] sm:$0xff] }
 0x212   : > { %v693_v31 = vmul.f32 %v2872_v10, %v5410_v41  ;;  %v692_v59 = vmul.f32 %v2872_v10, %v5411_v32  ;;  %v2905_v10 = vld [vmem:[#allocation6 + $0x40] ss:$0 sm:$0xff]  ;;  %v5421_v32 = vld [vmem:[#allocation48_spill] sm:$0xff] }
 0x213   : > { %v576_v23 = vadd.f32 %v574_v13, %v563_v44  ;;  %v575_v0 = vadd.f32 %v573_v43, %v562_v34  ;;  %v5412_v13 = vld [vmem:[#allocation43_spill] sm:$0xff]  ;;  %v718_v44 = vmul.f32 %v2874_v50, %v5413_v21  ;;  %v2904_v34 = vld [vmem:[#allocation6 + $0x3f] ss:$0 sm:$0xff] }
 0x214   : > { %v4250_v38 = vpop.permute.xlu1 %1203  ;;  %v4252_v17 = vpop.permute.xlu0 %1201  ;;  %v719_v43 = vmul.f32 %v2874_v50, %v5412_v13  ;;  %v708_v15 = vadd.f32 %v706_v37, %v693_v31  ;;  %v1107_v37 = vmul.f32 %v2904_v34, %v4190_v1  ;;  %v2906_v13 = vld [vmem:[#allocation6 + $0x41] ss:$0 sm:$0xff]  ;;  %v2878_v21 = vld [vmem:[#allocation6 + $0x25] ss:$0 sm:$0xff] }
 0x215   : > { %v589_v48 = vadd.f32 %v587_v22, %v576_v23  ;;  %v588_v8 = vadd.f32 %v586_v45, %v575_v0  ;;  %v5414_v23 = vld [vmem:[#allocation24_spill] sm:$0xff] }
 0x216   : > { %v4289_v0 = vmul.f32 %v2887_v18, %v5414_v23  ;;  %v1094_v23 = vmul.f32 %v2903_v9, %v4178_v56 }
 0x217   : > { %v602_v29 = vadd.f32 %v600_v4, %v589_v48  ;;  %v601_v40 = vadd.f32 %v599_v47, %v588_v8  ;;  %v4292_v4 = vmul.f32 %v2887_v18, %v5415_v6  ;;  %v707_v47 = vadd.f32 %v705_v61, %v692_v59  ;;  %v5417_v8 = vld [vmem:[#allocation46_spill] sm:$0xff]  ;;  %v2877_v18 = vld [vmem:[#allocation6 + $0x24] ss:$0 sm:$0xff] }
 0x218   : > { %v4258_v42 = vpop.permute.xlu1 %1216  ;;  %v4260_v57 = vpop.permute.xlu0 %1214  ;;  %v732_v48 = vmul.f32 %v2875_v2, %v5416_v25  ;;  %v731_v26 = vmul.f32 %v2875_v2, %v5417_v8  ;;  %v1106_v61 = vmul.f32 %v2904_v34, %v4192_v53  ;;  %v5420_v2 = vld [vmem:[#allocation47_spill] sm:$0xff]  ;;  %v744_v59 = vmul.f32 %v2876_v52, %v5421_v32 }
 0x219   : > { %v4284_v22 = vadd.f32 %v613_v35, %v602_v29  ;;  %v4286_v45 = vadd.f32 %v612_v49, %v601_v40  ;;  %v5418_v49 = vld [vmem:[#allocation29_spill] sm:$0xff]  ;;  %v4304_v29 = vmul.f32 %v2867_v30, %v5419_v27  ;;  %v721_v40 = vadd.f32 %v719_v43, %v708_v15  ;;  %v5423_v43 = vld [vmem:[#allocation50_spill] sm:$0xff]  ;;  %v2907_v34 = vld [vmem:[#allocation6 + $0x42] ss:$0 sm:$0xff] }
 0x21a   : > { %v4301_v36 = vmul.f32 %v2867_v30, %v5418_v49  ;;  %v720_v41 = vadd.f32 %v718_v44, %v707_v47  ;;  %v745_v31 = vmul.f32 %v2876_v52, %v5420_v2  ;;  %v1093_v6 = vmul.f32 %v2903_v9, %v4180_v58  ;;  %v5422_v49 = vld [vmem:[#allocation49_spill] sm:$0xff]  ;;  %v2879_v47 = vld [vmem:[#allocation6 + $0x26] ss:$0 sm:$0xff] }
 0x21b   : > { %v1120_v30 = vmul.f32 %v2905_v10, %v4198_v16  ;;  %v1119_v25 = vmul.f32 %v2905_v10, %v4200_v55  ;;  %v734_v8 = vadd.f32 %v732_v48, %v721_v40  ;;  %v758_v53 = vmul.f32 %v2877_v18, %v5422_v49  ;;  %v5424_v48 = vld [vmem:[#allocation51_spill] sm:$0xff]  ;;  %v5425_v10 = vld [vmem:[#allocation52_spill] sm:$0xff] }
 0x21c   : > { %v4266_v46 = vpop.permute.xlu1 %1229  ;;  %v4268_v60 = vpop.permute.xlu0 %1227  ;;  %v733_v1 = vadd.f32 %v731_v26, %v720_v41  ;;  %v757_v44 = vmul.f32 %v2877_v18, %v5423_v43  ;;  %v1109_v27 = vadd.f32 %v1107_v37, %v1094_v23  ;;  %v1108_v56 = vadd.f32 %v1106_v61, %v1093_v6  ;;  %v2908_v41 = vld [vmem:[#allocation6 + $0x43] ss:$0 sm:$0xff]  ;;  %v2880_v18 = vld [vmem:[#allocation6 + $0x27] ss:$0 sm:$0xff]  ;;  %v5426_v23 = vld [vmem:[#allocation53_spill] sm:$0xff] }
 0x21d   : > { %v1133_v58 = vmul.f32 %v2906_v13, %v4206_v20  ;;  %v1132_v16 = vmul.f32 %v2906_v13, %v4208_v12  ;;  %v747_v9 = vadd.f32 %v745_v31, %v734_v8  ;;  %v771_v26 = vmul.f32 %v2878_v21, %v5424_v48  ;;  %v5427_v6 = vld [vmem:[#allocation54_spill] sm:$0xff]  ;;  %v2909_v31 = vld [vmem:[#allocation6 + $0x44] ss:$0 sm:$0xff] }
 0x21e   : > { %v746_v55 = vadd.f32 %v744_v59, %v733_v1  ;;  %v770_v40 = vmul.f32 %v2878_v21, %v5425_v10  ;;  %v1122_v2 = vadd.f32 %v1120_v30, %v1109_v27  ;;  %v1121_v32 = vadd.f32 %v1119_v25, %v1108_v56  ;;  %v2881_v21 = vld [vmem:[#allocation6 + $0x28] ss:$0 sm:$0xff]  ;;  %v2910_v56 = vld [vmem:[#allocation6 + $0x45] ss:$0 sm:$0xff] }
 0x21f   : > { %v1146_v49 = vmul.f32 %v2907_v34, %v4214_v24  ;;  %v1145_v43 = vmul.f32 %v2907_v34, %v4216_v5  ;;  %v760_v37 = vadd.f32 %v758_v53, %v747_v9  ;;  %v784_v20 = vmul.f32 %v2879_v47, %v5426_v23  ;;  %v5428_v53 = vld [vmem:[#allocation55_spill] sm:$0xff]  ;;  %v5429_v34 = vld [vmem:[#allocation56_spill] sm:$0xff] }
 0x220   : > { %v4276_v51 = vpop.permute.xlu1 %1242  ;;  %v4278_v39 = vpop.permute.xlu0 %1240  ;;  %v759_v61 = vadd.f32 %v757_v44, %v746_v55  ;;  %v783_v12 = vmul.f32 %v2879_v47, %v5427_v6  ;;  %v1135_v8 = vadd.f32 %v1133_v58, %v1122_v2  ;;  %v1134_v1 = vadd.f32 %v1132_v16, %v1121_v32  ;;  %v2882_v47 = vld [vmem:[#allocation6 + $0x29] ss:$0 sm:$0xff]  ;;  %v5430_v2 = vld [vmem:[#allocation57_spill] sm:$0xff]  ;;  %v5431_v32 = vld [vmem:[#allocation58_spill] sm:$0xff] }
 0x221   : > { %v1159_v30 = vmul.f32 %v2908_v41, %v4222_v54  ;;  %v1158_v24 = vmul.f32 %v2908_v41, %v4224_v28  ;;  %v773_v25 = vadd.f32 %v771_v26, %v760_v37  ;;  %v797_v44 = vmul.f32 %v2880_v18, %v5428_v53  ;;  %v2911_v26 = vld [vmem:[#allocation6 + $0x46] ss:$0 sm:$0xff]  ;;  %v5433_v6 = vld [vmem:[#allocation60_spill] sm:$0xff]  ;;  %v5434_v53 = vld [vmem:[#allocation61_spill] sm:$0xff] }
 0x222   : > { %v772_v5 = vadd.f32 %v770_v40, %v759_v61  ;;  %v796_v27 = vmul.f32 %v2880_v18, %v5429_v34  ;;  %v1148_v9 = vadd.f32 %v1146_v49, %v1135_v8  ;;  %v1147_v55 = vadd.f32 %v1145_v43, %v1134_v1  ;;  %v2883_v18 = vld [vmem:[#allocation6 + $0x2a] ss:$0 sm:$0xff]  ;;  %v5432_v23 = vld [vmem:[#allocation59_spill] sm:$0xff]  ;;  %v5435_v34 = vld [vmem:[#allocation62_spill] sm:$0xff] }
 0x223   : > { %v1172_v48 = vmul.f32 %v2909_v31, %v4228_v19  ;;  %v1171_v10 = vmul.f32 %v2909_v31, %v4230_v11  ;;  %v786_v58 = vadd.f32 %v784_v20, %v773_v25  ;;  %v810_v54 = vmul.f32 %v2881_v21, %v5430_v2  ;;  %v2912_v31 = vld [vmem:[#allocation6 + $0x47] ss:$0 sm:$0xff]  ;;  %v5437_v2 = vld [vmem:[#allocation64_spill] sm:$0xff] }
 0x224   : > { %v4296_v50 = vpop.permute.xlu1 %1255  ;;  %v4298_v35 = vpop.permute.xlu0 %1253  ;;  %v785_v16 = vadd.f32 %v783_v12, %v772_v5  ;;  %v809_v28 = vmul.f32 %v2881_v21, %v5431_v32  ;;  %v1161_v37 = vadd.f32 %v1159_v30, %v1148_v9  ;;  %v1160_v61 = vadd.f32 %v1158_v24, %v1147_v55  ;;  %v2884_v21 = vld [vmem:[#allocation6 + $0x2b] ss:$0 sm:$0xff]  ;;  %v2914_v32 = vld [vmem:[#allocation6 + $0x49] ss:$0 sm:$0xff] }
 0x225   : > { %v1185_v49 = vmul.f32 %v2910_v56, %v4234_v14  ;;  %v1184_v19 = vmul.f32 %v2910_v56, %v4236_v33  ;;  %v799_v43 = vadd.f32 %v797_v44, %v786_v58  ;;  %v823_v20 = vmul.f32 %v2882_v47, %v5432_v23  ;;  %v2913_v44 = vld [vmem:[#allocation6 + $0x48] ss:$0 sm:$0xff]  ;;  %v5436_v58 = vld [vmem:[#allocation63_spill] sm:$0xff]  ;;  %v2915_v23 = vld [vmem:[#allocation6 + $0x4a] ss:$0 sm:$0xff] }
 0x226   : > { %v798_v11 = vadd.f32 %v796_v27, %v785_v16  ;;  %v822_v12 = vmul.f32 %v2882_v47, %v5433_v6  ;;  %v1174_v8 = vadd.f32 %v1172_v48, %v1161_v37  ;;  %v1173_v1 = vadd.f32 %v1171_v10, %v1160_v61  ;;  %v2885_v47 = vld [vmem:[#allocation6 + $0x2c] ss:$0 sm:$0xff] }
 0x227   : > { %v1198_v25 = vmul.f32 %v2911_v26, %v4242_v7  ;;  %v1197_v5 = vmul.f32 %v2911_v26, %v4244_v3  ;;  %v812_v30 = vadd.f32 %v810_v54, %v799_v43  ;;  %v836_v14 = vmul.f32 %v2883_v18, %v5434_v53  ;;  %v5438_v43 = vld [vmem:[#allocation65_spill] sm:$0xff]  ;;  %v2916_v53 = vld [vmem:[#allocation6 + $0x4b] ss:$0 sm:$0xff] }
 0x228   : > { %v4316_v15 = vpop.permute.xlu1 %1268  ;;  %v4318_v52 = vpop.permute.xlu0 %1266  ;;  %v811_v24 = vadd.f32 %v809_v28, %v798_v11  ;;  %v835_v33 = vmul.f32 %v2883_v18, %v5435_v34  ;;  %v1187_v9 = vadd.f32 %v1185_v49, %v1174_v8  ;;  %v1186_v55 = vadd.f32 %v1184_v19, %v1173_v1  ;;  %v2886_v28 = vld [vmem:[#allocation6 + $0x2d] ss:$0 sm:$0xff]  ;;  %v5439_v11 = vld [vmem:[#allocation66_spill] sm:$0xff] }
 0x229   : > { %v1211_v48 = vmul.f32 %v2912_v31, %v4250_v38  ;;  %v1210_v7 = vmul.f32 %v2912_v31, %v4252_v17  ;;  %v825_v10 = vadd.f32 %v823_v20, %v812_v30  ;;  %v849_v16 = vmul.f32 %v2884_v21, %v5436_v58  ;;  %v5441_v30 = vld [vmem:[#allocation68_spill] sm:$0xff] }
 0x22a   : > { %v824_v3 = vadd.f32 %v822_v12, %v811_v24  ;;  %v848_v54 = vmul.f32 %v2884_v21, %v5437_v2  ;;  %v1200_v26 = vadd.f32 %v1198_v25, %v1187_v9  ;;  %v1199_v18 = vadd.f32 %v1197_v5, %v1186_v55  ;;  %v2868_v12 = vld [vmem:[#allocation6 + $0x1b] ss:$0 sm:$0xff]  ;;  %v5440_v25 = vld [vmem:[#allocation67_spill] sm:$0xff]  ;;  %v5443_v55 = vld [vmem:[#allocation32_spill] sm:$0xff] }
 0x22b   : > { %v1224_v37 = vmul.f32 %v2913_v44, %v4258_v42  ;;  %v1223_v61 = vmul.f32 %v2913_v44, %v4260_v57  ;;  %v838_v49 = vadd.f32 %v836_v14, %v825_v10  ;;  %v862_v38 = vmul.f32 %v2885_v47, %v5438_v43 }
 0x22c   : > { %v4328_v59 = vpop.permute.xlu1 %1290  ;;  %v4330_v13 = vpop.permute.xlu0 %1288  ;;  %v837_v19 = vadd.f32 %v835_v33, %v824_v3  ;;  %v861_v17 = vmul.f32 %v2885_v47, %v5439_v11  ;;  %v1213_v31 = vadd.f32 %v1211_v48, %v1200_v26  ;;  %v1212_v21 = vadd.f32 %v1210_v7, %v1199_v18  ;;  %v5442_v47 = vld [vmem:[#allocation31_spill] sm:$0xff]  ;;  %v2888_v18 = vld [vmem:[#allocation6 + $0x2f] ss:$0 sm:$0xff] }
 0x22d   : > { %v1237_v8 = vmul.f32 %v2914_v32, %v4266_v46  ;;  %v1236_v42 = vmul.f32 %v2914_v32, %v4268_v60  ;;  %v851_v1 = vadd.f32 %v849_v16, %v838_v49  ;;  %v875_v5 = vmul.f32 %v2886_v28, %v5440_v25  ;;  %v2917_v60 = vld [vmem:[#allocation6 + $0x4c] ss:$0 sm:$0xff]  ;;  %v2869_v32 = vld [vmem:[#allocation6 + $0x1c] ss:$0 sm:$0xff] }
 0x22e   : > { %v850_v57 = vadd.f32 %v848_v54, %v837_v19  ;;  %v874_v24 = vmul.f32 %v2886_v28, %v5441_v30  ;;  %v1226_v14 = vadd.f32 %v1224_v37, %v1213_v31  ;;  %v1225_v34 = vadd.f32 %v1223_v61, %v1212_v21  ;;  %v5446_v21 = vld [vmem:[#allocation69_spill] sm:$0xff] }
 0x22f   : > { %v1250_v33 = vmul.f32 %v2915_v23, %v4276_v51  ;;  %v1249_v44 = vmul.f32 %v2915_v23, %v4278_v39  ;;  %v639_v9 = vmul.f32 %v2868_v12, %v5442_v47  ;;  %v638_v48 = vmul.f32 %v2868_v12, %v5443_v55  ;;  %v2870_v55 = vld [vmem:[#allocation6 + $0x1d] ss:$0 sm:$0xff] }
 0x230   : > { %v4340_v40 = vpop.permute.xlu1 %1303  ;;  %v4342_v41 = vpop.permute.xlu0 %1301  ;;  %v864_v46 = vadd.f32 %v862_v38, %v851_v1  ;;  %v863_v7 = vadd.f32 %v861_v17, %v850_v57  ;;  %v1239_v58 = vadd.f32 %v1237_v8, %v1226_v14  ;;  %v1238_v16 = vadd.f32 %v1236_v42, %v1225_v34  ;;  %v2918_v38 = vld [vmem:[#allocation6 + $0x4d] ss:$0 sm:$0xff]  ;;  %v2889_v17 = vld [vmem:[#allocation6 + $0x30] ss:$0 sm:$0xff]  ;;  %v5447_v8 = vld [vmem:[#allocation70_spill] sm:$0xff] }
 0x231   : > { %v1263_v2 = vmul.f32 %v2916_v53, %v4296_v50  ;;  %v1262_v54 = vmul.f32 %v2916_v53, %v4298_v35  ;;  %v628_v51 = vadd.f32 %v4301_v36, %v4284_v22  ;;  %v627_v39 = vadd.f32 %v4304_v29, %v4286_v45  ;;  %v5444_v22 = vld [vmem:[#allocation33_spill] sm:$0xff]  ;;  %v5445_v45 = vld [vmem:[#allocation34_spill] sm:$0xff]  ;;  %v5449_v14 = vld [vmem:[#allocation72_spill] sm:$0xff] }
 0x232   : > { %v877_v28 = vadd.f32 %v875_v5, %v864_v46  ;;  %v876_v26 = vadd.f32 %v874_v24, %v863_v7  ;;  %v1252_v37 = vadd.f32 %v1250_v33, %v1239_v58  ;;  %v1251_v61 = vadd.f32 %v1249_v44, %v1238_v16  ;;  %v2890_v1 = vld [vmem:[#allocation6 + $0x31] ss:$0 sm:$0xff]  ;;  %v5448_v24 = vld [vmem:[#allocation71_spill] sm:$0xff]  ;;  %v2919_v33 = vld [vmem:[#allocation6 + $0x4e] ss:$0 sm:$0xff] }
 0x233   : > { %v1276_v49 = vmul.f32 %v2917_v60, %v4316_v15  ;;  %v1275_v19 = vmul.f32 %v2917_v60, %v4318_v52  ;;  %v641_v43 = vadd.f32 %v639_v9, %v628_v51  ;;  %v640_v50 = vadd.f32 %v638_v48, %v627_v39  ;;  %v2891_v9 = vld [vmem:[#allocation6 + $0x32] ss:$0 sm:$0xff]  ;;  %v2920_v58 = vld [vmem:[#allocation6 + $0x4f] ss:$0 sm:$0xff]  ;;  %v2892_v16 = vld [vmem:[#allocation6 + $0x33] ss:$0 sm:$0xff] }
 0x234   : > { %v4352_v27 = vpop.permute.xlu1 %1316  ;;  %v4354_v56 = vpop.permute.xlu0 %1314  ;;  %v652_v36 = vmul.f32 %v2869_v32, %v5444_v22  ;;  %v651_v29 = vmul.f32 %v2869_v32, %v5445_v45  ;;  %v1265_v23 = vadd.f32 %v1263_v2, %v1252_v37  ;;  %v1264_v12 = vadd.f32 %v1262_v54, %v1251_v61  ;;  %v5453_v37 = vld [vmem:[#allocation76_spill] sm:$0xff] }
 0x235   : > { %v886_v31 = vadd.f32 %v4289_v0, %v877_v28  ;;  %v897_v15 = vmul.f32 %v2888_v18, %v5446_v21  ;;  %v885_v52 = vadd.f32 %v4292_v4, %v876_v26  ;;  %v896_v42 = vmul.f32 %v2888_v18, %v5447_v8  ;;  %v5452_v26 = vld [vmem:[#allocation75_spill] sm:$0xff]  ;;  %v5455_v22 = vld [vmem:[#allocation36_spill] sm:$0xff] }
 0x236   : > { %v1278_v57 = vadd.f32 %v1276_v49, %v1265_v23  ;;  %v1277_v25 = vadd.f32 %v1275_v19, %v1264_v12  ;;  %v1285_v5 = vmul.f32 %v2918_v38, %v3934_v62  ;;  %v1284_v30 = vmul.f32 %v2918_v38, %v3936_v63  ;;  %v5450_v62 = vld [vmem:[#allocation73_spill] sm:$0xff]  ;;  %v5451_v63 = vld [vmem:[#allocation74_spill] sm:$0xff] }
 0x237   : > { %v910_v53 = vmul.f32 %v2889_v17, %v5448_v24  ;;  %v909_v34 = vmul.f32 %v2889_v17, %v5449_v14  ;;  %v4406_v47 = vadd.f32 %v652_v36, %v641_v43  ;;  %v4408_v4 = vadd.f32 %v651_v29, %v640_v50  ;;  %v2921_v49 = vld [vmem:[#allocation6 + $0x50] ss:$0 sm:$0xff]  ;;  %v5454_v50 = vld [vmem:[#allocation35_spill] sm:$0xff]  ;;  %v5459_v24 = vld [vmem:[#allocation80_spill] sm:$0xff] }
 0x238   : > { %v4364_v20 = vpop.permute.xlu1 %1329  ;;  %v4366_v6 = vpop.permute.xlu0 %1327  ;;  %v899_v48 = vadd.f32 %v897_v15, %v886_v31  ;;  %v898_v46 = vadd.f32 %v896_v42, %v885_v52  ;;  %v923_v7 = vmul.f32 %v2890_v1, %v5450_v62  ;;  %v922_v60 = vmul.f32 %v2890_v1, %v5451_v63  ;;  %v5456_v23 = vld [vmem:[#allocation77_spill] sm:$0xff]  ;;  %v5457_v31 = vld [vmem:[#allocation78_spill] sm:$0xff] }
 0x239   : > { %v1287_v2 = vadd.f32 %v1285_v5, %v1278_v57  ;;  %v1298_v54 = vmul.f32 %v2919_v33, %v4328_v59  ;;  %v1286_v51 = vadd.f32 %v1284_v30, %v1277_v25  ;;  %v1297_v39 = vmul.f32 %v2919_v33, %v4330_v13  ;;  %v2893_v59 = vld [vmem:[#allocation6 + $0x34] ss:$0 sm:$0xff]  ;;  %v2922_v15 = vld [vmem:[#allocation6 + $0x51] ss:$0 sm:$0xff]  ;;  %v2894_v52 = vld [vmem:[#allocation6 + $0x35] ss:$0 sm:$0xff] }
 0x23a   : > { %v912_v32 = vadd.f32 %v910_v53, %v899_v48  ;;  %v911_v28 = vadd.f32 %v909_v34, %v898_v46  ;;  %v936_v18 = vmul.f32 %v2891_v9, %v5452_v26  ;;  %v935_v61 = vmul.f32 %v2891_v9, %v5453_v37  ;;  %v5458_v30 = vld [vmem:[#allocation79_spill] sm:$0xff]  ;;  %v2923_v53 = vld [vmem:[#allocation6 + $0x52] ss:$0 sm:$0xff]  ;;  %v2895_v33 = vld [vmem:[#allocation6 + $0x36] ss:$0 sm:$0xff] }
 0x23b   : > { %v4421_v38 = vmul.f32 %v2870_v55, %v5454_v50  ;;  %v4424_v36 = vmul.f32 %v2870_v55, %v5455_v22  ;;  %v1311_v13 = vmul.f32 %v2920_v58, %v4340_v40  ;;  %v1310_v45 = vmul.f32 %v2920_v58, %v4342_v41  ;;  %v5461_v63 = vld [vmem:[#allocation82_spill] sm:$0xff]  ;;  %v2924_v58 = vld [vmem:[#allocation6 + $0x53] ss:$0 sm:$0xff]  ;;  %v5462_v26 = vld [vmem:[#allocation83_spill] sm:$0xff] }
 0x23c   : > { %v4376_v10 = vpop.permute.xlu1 %1342  ;;  %v4378_v3 = vpop.permute.xlu0 %1340  ;;  %v925_v29 = vadd.f32 %v923_v7, %v912_v32  ;;  %v924_v17 = vadd.f32 %v922_v60, %v911_v28  ;;  %v949_v12 = vmul.f32 %v2892_v16, %v5456_v23  ;;  %v948_v21 = vmul.f32 %v2892_v16, %v5457_v31  ;;  %v5460_v7 = vld [vmem:[#allocation81_spill] sm:$0xff]  ;;  %v2897_v50 = vld [vmem:[#allocation6 + $0x38] ss:$0 sm:$0xff] }
 0x23d   : > { %v1300_v8 = vadd.f32 %v1298_v54, %v1287_v2  ;;  %v1299_v42 = vadd.f32 %v1297_v39, %v1286_v51  ;;  %v1324_v1 = vmul.f32 %v2921_v49, %v4352_v27  ;;  %v1323_v57 = vmul.f32 %v2921_v49, %v4354_v56  ;;  %v2896_v16 = vld [vmem:[#allocation6 + $0x37] ss:$0 sm:$0xff]  ;;  %v2925_v37 = vld [vmem:[#allocation6 + $0x54] ss:$0 sm:$0xff]  ;;  %v5465_v23 = vld [vmem:[#allocation86_spill] sm:$0xff] }
 0x23e   : > { %v938_v25 = vadd.f32 %v936_v18, %v925_v29  ;;  %v937_v5 = vadd.f32 %v935_v61, %v924_v17  ;;  %v962_v40 = vmul.f32 %v2893_v59, %v5458_v30  ;;  %v961_v41 = vmul.f32 %v2893_v59, %v5459_v24  ;;  %v5463_v18 = vld [vmem:[#allocation84_spill] sm:$0xff]  ;;  %v5464_v17 = vld [vmem:[#allocation85_spill] sm:$0xff] }
 0x23f   : > { %v1313_v9 = vadd.f32 %v1311_v13, %v1300_v8  ;;  %v1312_v55 = vadd.f32 %v1310_v45, %v1299_v42  ;;  %v1337_v48 = vmul.f32 %v2922_v15, %v4364_v20  ;;  %v1336_v46 = vmul.f32 %v2922_v15, %v4366_v6  ;;  %v2926_v31 = vld [vmem:[#allocation6 + $0x55] ss:$0 sm:$0xff]  ;;  %v2927_v30 = vld [vmem:[#allocation6 + $0x56] ss:$0 sm:$0xff] }
 0x240   : > { %v4388_v35 = vpop.permute.xlu1 %1355  ;;  %v4390_v11 = vpop.permute.xlu0 %1353  ;;  %v951_v62 = vadd.f32 %v949_v12, %v938_v25  ;;  %v950_v27 = vadd.f32 %v948_v21, %v937_v5  ;;  %v975_v56 = vmul.f32 %v2894_v52, %v5460_v7  ;;  %v974_v60 = vmul.f32 %v2894_v52, %v5461_v63  ;;  %v2898_v21 = vld [vmem:[#allocation6 + $0x39] ss:$0 sm:$0xff]  ;;  %v5466_v25 = vld [vmem:[#allocation87_spill] sm:$0xff]  ;;  %v5467_v5 = vld [vmem:[#allocation88_spill] sm:$0xff] }
 0x241   : > { %v1326_v2 = vadd.f32 %v1324_v1, %v1313_v9  ;;  %v1325_v54 = vadd.f32 %v1323_v57, %v1312_v55  ;;  %v1350_v51 = vmul.f32 %v2923_v53, %v4376_v10  ;;  %v1349_v39 = vmul.f32 %v2923_v53, %v4378_v3  ;;  %v2928_v7 = vld [vmem:[#allocation6 + $0x57] ss:$0 sm:$0xff] }
 0x242   : > { %v964_v32 = vadd.f32 %v962_v40, %v951_v62  ;;  %v963_v28 = vadd.f32 %v961_v41, %v950_v27  ;;  %v988_v20 = vmul.f32 %v2895_v33, %v5462_v26  ;;  %v987_v6 = vmul.f32 %v2895_v33, %v5463_v18  ;;  %v2899_v41 = vld [vmem:[#allocation6 + $0x3a] ss:$0 sm:$0xff] }
 0x243   : > { %v1339_v22 = vadd.f32 %v1337_v48, %v1326_v2  ;;  %v1338_v59 = vadd.f32 %v1336_v46, %v1325_v54  ;;  %v1363_v13 = vmul.f32 %v2924_v58, %v4388_v35  ;;  %v1362_v45 = vmul.f32 %v2924_v58, %v4390_v11  ;;  %v5468_v46 = vld [vmem:[#allocation89_spill] sm:$0xff]  ;;  %v5469_v62 = vld [vmem:[#allocation90_spill] sm:$0xff] }
 0x244   : > { %v4402_v44 = vpop.permute.xlu1 %1368  ;;  %v4404_v0 = vpop.permute.xlu0 %1366  ;;  %v977_v29 = vadd.f32 %v975_v56, %v964_v32  ;;  %v976_v10 = vadd.f32 %v974_v60, %v963_v28  ;;  %v1001_v3 = vmul.f32 %v2896_v16, %v5464_v17  ;;  %v1000_v12 = vmul.f32 %v2896_v16, %v5465_v23  ;;  %v2900_v56 = vld [vmem:[#allocation6 + $0x3b] ss:$0 sm:$0xff]  ;;  %v5471_v32 = vld [vmem:[#allocation92_spill] sm:$0xff]  ;;  %v2929_v28 = vld [vmem:[#allocation6 + $0x58] ss:$0 sm:$0xff] }
 0x245   : > { %v1352_v15 = vadd.f32 %v1350_v51, %v1339_v22  ;;  %v1351_v52 = vadd.f32 %v1349_v39, %v1338_v59  ;;  %v1376_v8 = vmul.f32 %v2925_v37, %v4402_v44  ;;  %v1375_v42 = vmul.f32 %v2925_v37, %v4404_v0  ;;  %v5470_v51 = vld [vmem:[#allocation91_spill] sm:$0xff] }
 0x246   : > { %v990_v1 = vadd.f32 %v988_v20, %v977_v29  ;;  %v989_v57 = vadd.f32 %v987_v6, %v976_v10  ;;  %v1014_v35 = vmul.f32 %v2897_v50, %v5466_v25  ;;  %v1013_v11 = vmul.f32 %v2897_v50, %v5467_v5  ;;  %v2901_v20 = vld [vmem:[#allocation6 + $0x3c] ss:$0 sm:$0xff]  ;;  %v2930_v29 = vld [vmem:[#allocation6 + $0x59] ss:$0 sm:$0xff]  ;;  %v2902_v10 = vld [vmem:[#allocation6 + $0x3d] ss:$0 sm:$0xff] }
 0x247   : > { %v1365_v53 = vadd.f32 %v1363_v13, %v1352_v15  ;;  %v1364_v33 = vadd.f32 %v1362_v45, %v1351_v52  ;;  %v1027_v0 = vmul.f32 %v2898_v21, %v5468_v46  ;;  %v1026_v27 = vmul.f32 %v2898_v21, %v5469_v62  ;;  %v5472_v13 = vld [vmem:[#allocation93_spill] sm:$0xff]  ;;  %v5474_v15 = vld [vmem:[#allocation95_spill] sm:$0xff] }
 0x248   : > { %v4416_v19 = vpop.permute.xlu1 %1381  ;;  %v4418_v43 = vpop.permute.xlu0 %1379  ;;  %v1003_v48 = vadd.f32 %v1001_v3, %v990_v1  ;;  %v1002_v44 = vadd.f32 %v1000_v12, %v989_v57  ;;  %v1040_v39 = vmul.f32 %v2899_v41, %v5470_v51  ;;  %v1053_v45 = vmul.f32 %v2900_v56, %v5472_v13  ;;  %v2871_v57 = vld [vmem:[#allocation6 + $0x1e] ss:$0 sm:$0xff] }
 0x249   : > { %v1389_v9 = vmul.f32 %v2926_v31, %v4416_v19  ;;  %v1388_v55 = vmul.f32 %v2926_v31, %v4418_v43  ;;  %v1378_v63 = vadd.f32 %v1376_v8, %v1365_v53  ;;  %v1377_v60 = vadd.f32 %v1375_v42, %v1364_v33  ;;  %v5475_v8 = vld [vmem:[#allocation96_spill] sm:$0xff]  ;;  %v5476_v53 = vld [vmem:[#allocation97_spill] sm:$0xff] }
 0x24a   : > { %v1016_v2 = vadd.f32 %v1014_v35, %v1003_v48  ;;  %v1015_v54 = vadd.f32 %v1013_v11, %v1002_v44  ;;  %v1039_v19 = vmul.f32 %v2899_v41, %v5471_v32  ;;  %v1066_v52 = vmul.f32 %v2901_v20, %v5474_v15 }
 0x24b   : > { %v1391_v18 = vadd.f32 %v1389_v9, %v1378_v63  ;;  %v1390_v6 = vadd.f32 %v1388_v55, %v1377_v60  ;;  %v1065_v42 = vmul.f32 %v2901_v20, %v5475_v8  ;;  %v1079_v33 = vmul.f32 %v2902_v10, %v5476_v53  ;;  %v2932_v9 = vld [vmem:[#allocation6 + $0x5b] ss:$0 sm:$0xff] }
 0x24c   : > { %v1395_v14 = vpop.permute.xlu1 %1394  ;;  %v1393_v34 = vpop.permute.xlu0 %1392  ;;  %v1029_v22 = vadd.f32 %v1027_v0, %v1016_v2  ;;  %v1028_v59 = vadd.f32 %v1026_v27, %v1015_v54  ;;  %v5478_v0 = vld [vmem:[#allocation37_spill] sm:$0xff]  ;;  %v5479_v27 = vld [vmem:[#allocation38_spill] sm:$0xff]  ;;  %v666_v32 = vadd.f32 %v4424_v36, %v4408_v4  ;;  %v2934_v4 = vld [vmem:[%s5181_s2] ss:$0 sm:$0xff] }
 0x24d   : > { %v1402_v58 = vmul.f32 %v2927_v30, %v1395_v14  ;;  %v1401_v16 = vmul.f32 %v2927_v30, %v1393_v34  ;;  %v5473_v14 = vld [vmem:[#allocation94_spill] sm:$0xff]  ;;  %v678_v62 = vmul.f32 %v2871_v57, %v5478_v0 }
 0x24e   : > { %v1052_v34 = vmul.f32 %v2900_v56, %v5473_v14  ;;  %v1042_v31 = vadd.f32 %v1040_v39, %v1029_v22  ;;  %v1041_v21 = vadd.f32 %v1039_v19, %v1028_v59  ;;  %v667_v39 = vadd.f32 %v4421_v38, %v4406_v47  ;;  %v2933_v19 = vld [vmem:[#allocation6 + $0x5c] ss:$0 sm:$0xff] }
 0x24f   : > { %v1404_v17 = vadd.f32 %v1402_v58, %v1391_v18  ;;  %v1403_v3 = vadd.f32 %v1401_v16, %v1390_v6 }
 0x250   : > { %v1408_v61 = vpop.permute.xlu1 %1407  ;;  %v1406_v49 = vpop.permute.xlu0 %1405  ;;  %v1055_v30 = vadd.f32 %v1053_v45, %v1042_v31  ;;  %v1054_v41 = vadd.f32 %v1052_v34, %v1041_v21  ;;  %v680_v18 = vadd.f32 %v678_v62, %v667_v39 }
 0x251   : > { %v1415_v37 = vmul.f32 %v2928_v7, %v1408_v61  ;;  %v1414_v50 = vmul.f32 %v2928_v7, %v1406_v49  ;;  %v2931_v61 = vld [vmem:[#allocation6 + $0x5a] ss:$0 sm:$0xff]  ;;  %v677_v7 = vmul.f32 %v2871_v57, %v5479_v27 }
 0x252   : > { %v1068_v56 = vadd.f32 %v1066_v52, %v1055_v30  ;;  %v1067_v63 = vadd.f32 %v1065_v42, %v1054_v41 }
 0x253   : > { %v1417_v25 = vadd.f32 %v1415_v37, %v1404_v17  ;;  %v1416_v35 = vadd.f32 %v1414_v50, %v1403_v3  ;;  %v679_v6 = vadd.f32 %v677_v7, %v666_v32 }
 0x254   : > { %v1421_v40 = vpop.permute.xlu1 %1420  ;;  %v1419_v24 = vpop.permute.xlu0 %1418 }
 0x255   : > { %v1428_v23 = vmul.f32 %v2929_v28, %v1421_v40  ;;  %v1427_v12 = vmul.f32 %v2929_v28, %v1419_v24  ;;  %v5477_v40 = vld [vmem:[#allocation98_spill] sm:$0xff]  ;;  %v1081_v28 = vadd.f32 %v1079_v33, %v1068_v56 }
 0x256   : > { %v1078_v24 = vmul.f32 %v2902_v10, %v5477_v40 }
 0x257   : > { %v1430_v55 = vadd.f32 %v1428_v23, %v1417_v25  ;;  %v1429_v48 = vadd.f32 %v1427_v12, %v1416_v35  ;;  %v1484_v14 = vadd.f32 %v1081_v28, %v680_v18 }
 0x258   : > { %v1434_v43 = vpop.permute.xlu1 %1433  ;;  %v1432_v26 = vpop.permute.xlu0 %1431 }
 0x259   : > { %v1441_v5 = vmul.f32 %v2930_v29, %v1434_v43  ;;  %v1440_v11 = vmul.f32 %v2930_v29, %v1432_v26  ;;  %v1080_v43 = vadd.f32 %v1078_v24, %v1067_v63 }
 0x25b   : > { %v1443_v16 = vadd.f32 %v1441_v5, %v1430_v55  ;;  %v1442_v2 = vadd.f32 %v1440_v11, %v1429_v48  ;;  %v1483_v34 = vadd.f32 %v1080_v43, %v679_v6 }
 0x25c   : > { %v1447_v49 = vpop.permute.xlu1 %1446  ;;  %v1445_v1 = vpop.permute.xlu0 %1444 }
 0x25d   : > { %v1454_v44 = vmul.f32 %v2931_v61, %v1447_v49  ;;  %v1453_v46 = vmul.f32 %v2931_v61, %v1445_v1 }
 0x25f   : > { %v1456_v26 = vadd.f32 %v1454_v44, %v1443_v16  ;;  %v1455_v20 = vadd.f32 %v1453_v46, %v1442_v2 }
 0x260   : > { %v1460_v60 = vpop.permute.xlu1 %1459  ;;  %v1458_v58 = vpop.permute.xlu0 %1457 }
 0x261   : > { %v1467_v54 = vmul.f32 %v2932_v9, %v1460_v60  ;;  %v1466_v51 = vmul.f32 %v2932_v9, %v1458_v58 }
 0x263   : > { %v1469_v22 = vadd.f32 %v1467_v54, %v1456_v26  ;;  %v1468_v59 = vadd.f32 %v1466_v51, %v1455_v20 }
 0x264   : > { %v1473_v37 = vpop.permute.xlu1 %1472  ;;  %v1471_v50 = vpop.permute.xlu0 %1470 }
 0x265   : > { %v1480_v13 = vmul.f32 %v2933_v19, %v1473_v37  ;;  %v1479_v45 = vmul.f32 %v2933_v19, %v1471_v50 }
 0x267   : > { %v1482_v29 = vadd.f32 %v1480_v13, %v1469_v22  ;;  %v1481_v47 = vadd.f32 %v1479_v45, %v1468_v59 }
 0x269   : > { %v1486_v38 = vadd.f32 %v1484_v14, %v1482_v29  ;;  %v1485_v36 = vadd.f32 %v1483_v34, %v1481_v47 }
 0x26b   : > { %v4471_v10 = vadd.f32 %v2934_v4, %v1486_v38  ;;  %v4473_v17 = vadd.f32 %v2934_v4, %v1485_v36 }
 0x26d   : > { %5480 = vst [vmem:[#allocation25_spill] sm:$0xff] %v4471_v10  ;;  %5481 = vst [vmem:[#allocation26_spill] sm:$0xff] %v4473_v17  ;;  %v4476_v3 = vmax.f32 %v4471_v10, 0.0  ;;  %v4479_v23 = vmax.f32 %v4473_v17, 0.0 }
 0x26f   : > { %1499 = vst [vmem:[#allocation2 + $0x10] sm:$0xff] %v4476_v3  ;;  %1498 = vst [vmem:[#allocation2 + $0x8] sm:$0xff] %v4479_v23 }
 0x276   : > { %v1500_v12 = vld [vmem:[#allocation2 + $0x7] sm:$0xff]  ;;  %v1501_v31 = vld [vmem:[#allocation2 + $0xf] sm:$0xff] }
 0x277   : > { %1504 = vrot.lane.b32.xlu1 %v1501_v31, %s5337_s20  ;;  %1502 = vrot.lane.b32.xlu0 %v1500_v12, %s5337_s20  ;;  %v4775_v17 = vld [vmem:[#allocation2 + $0x11] sm:$0xff]  ;;  %v4777_v10 = vld [vmem:[#allocation2 + $0x9] sm:$0xff] }
 0x278   : > { %5518 = vst [vmem:[#allocation67_spill] sm:$0xff] %v4775_v17  ;;  %5519 = vst [vmem:[#allocation68_spill] sm:$0xff] %v4777_v10 }
 0x27b   : > { %1517 = vrot.lane.b32.xlu1 %v1501_v31, %s5340_s19  ;;  %1515 = vrot.lane.b32.xlu0 %v1500_v12, %s5340_s19 }
 0x27f   : > { %1530 = vrot.lane.b32.xlu1 %v1501_v31, %s5343_s29  ;;  %1528 = vrot.lane.b32.xlu0 %v1500_v12, %s5343_s29 }
 0x283   : > { %1543 = vrot.lane.b32.xlu1 %v1501_v31, %s5346_s21  ;;  %1541 = vrot.lane.b32.xlu0 %v1500_v12, %s5346_s21 }
 0x287   : > { %1556 = vrot.lane.b32.xlu1 %v1501_v31, %s5349_s25  ;;  %1554 = vrot.lane.b32.xlu0 %v1500_v12, %s5349_s25 }
 0x28b   : > { %1569 = vrot.lane.b32.xlu1 %v1501_v31, %s5352_s18  ;;  %1567 = vrot.lane.b32.xlu0 %v1500_v12, %s5352_s18 }
 0x28f   : > { %1582 = vrot.lane.b32.xlu1 %v1501_v31, %s5355_s5  ;;  %1580 = vrot.lane.b32.xlu0 %v1500_v12, %s5355_s5 }
 0x293   : > { %1595 = vrot.lane.b32.xlu1 %v1501_v31, %s5358_s23  ;;  %1593 = vrot.lane.b32.xlu0 %v1500_v12, %s5358_s23 }
 0x297   : > { %1608 = vrot.lane.b32.xlu1 %v1501_v31, %s5361_s4  ;;  %1606 = vrot.lane.b32.xlu0 %v1500_v12, %s5361_s4 }
 0x29b   : > { %1621 = vrot.lane.b32.xlu1 %v1501_v31, %s5364_s14  ;;  %1619 = vrot.lane.b32.xlu0 %v1500_v12, %s5364_s14 }
 0x29f   : > { %1634 = vrot.lane.b32.xlu1 %v1501_v31, %s5367_s22  ;;  %1632 = vrot.lane.b32.xlu0 %v1500_v12, %s5367_s22 }
 0x2a3   : > { %1647 = vrot.lane.b32.xlu1 %v1501_v31, %s5300_s30  ;;  %1645 = vrot.lane.b32.xlu0 %v1500_v12, %s5300_s30 }
 0x2a7   : > { %1660 = vrot.lane.b32.xlu1 %v1501_v31, %s5301_s11  ;;  %1658 = vrot.lane.b32.xlu0 %v1500_v12, %s5301_s11 }
 0x2ab   : > { %1673 = vrot.lane.b32.xlu1 %v1501_v31, %s5302_s17  ;;  %1671 = vrot.lane.b32.xlu0 %v1500_v12, %s5302_s17 }
 0x2af   : > { %1686 = vrot.lane.b32.xlu1 %v1501_v31, %s5303_s9  ;;  %1684 = vrot.lane.b32.xlu0 %v1500_v12, %s5303_s9 }
 0x2b3   : > { %1708 = vrot.lane.b32.xlu1 %v1501_v31, %s5304_s13  ;;  %1706 = vrot.lane.b32.xlu0 %v1500_v12, %s5304_s13 }
 0x2b7   : > { %1721 = vrot.lane.b32.xlu1 %v1501_v31, %s5305_s28  ;;  %1719 = vrot.lane.b32.xlu0 %v1500_v12, %s5305_s28 }
 0x2bb   : > { %1734 = vrot.lane.b32.xlu1 %v1501_v31, %s5306_s10  ;;  %1732 = vrot.lane.b32.xlu0 %v1500_v12, %s5306_s10 }
 0x2bf   : > { %1747 = vrot.lane.b32.xlu1 %v1501_v31, %s5307_s16  ;;  %1745 = vrot.lane.b32.xlu0 %v1500_v12, %s5307_s16 }
 0x2c3   : > { %1760 = vrot.lane.b32.xlu1 %v1501_v31, %s5308_s15  ;;  %1758 = vrot.lane.b32.xlu0 %v1500_v12, %s5308_s15 }
 0x2c7   : > { %1773 = vrot.lane.b32.xlu1 %v1501_v31, %s5309_s24  ;;  %1771 = vrot.lane.b32.xlu0 %v1500_v12, %s5309_s24 }
 0x2cb   : > { %1786 = vrot.lane.b32.xlu1 %v1501_v31, %s5310_s26  ;;  %1784 = vrot.lane.b32.xlu0 %v1500_v12, %s5310_s26 }
 0x2cf   : > { %1799 = vrot.lane.b32.xlu1 %v1501_v31, %s5313_s12  ;;  %1797 = vrot.lane.b32.xlu0 %v1500_v12, %s5313_s12 }
 0x2d3   : > { %1812 = vrot.lane.b32.xlu1 %v1501_v31, %s5316_s8  ;;  %1810 = vrot.lane.b32.xlu0 %v1500_v12, %s5316_s8 }
 0x2d7   : > { %1825 = vrot.lane.b32.xlu1 %v1501_v31, %s5319_s7  ;;  %1823 = vrot.lane.b32.xlu0 %v1500_v12, %s5319_s7 }
 0x2db   : > { %1838 = vrot.lane.b32.xlu1 %v1501_v31, %s5322_s6  ;;  %1836 = vrot.lane.b32.xlu0 %v1500_v12, %s5322_s6 }
 0x2df   : > { %1851 = vrot.lane.b32.xlu1 %v1501_v31, %s5325_s0  ;;  %1849 = vrot.lane.b32.xlu0 %v1500_v12, %s5325_s0 }
 0x2e3   : > { %1864 = vrot.lane.b32.xlu1 %v1501_v31, %s5328_s1  ;;  %1862 = vrot.lane.b32.xlu0 %v1500_v12, %s5328_s1 }
 0x2e7   : > { %1877 = vrot.lane.b32.xlu1 %v1501_v31, %s5482_s3  ;;  %1875 = vrot.lane.b32.xlu0 %v1500_v12, %s5482_s3 }
 0x2e9   : > { %v4541_v21 = vpop.permute.xlu1 %1504  ;;  %v4543_v15 = vpop.permute.xlu0 %1502 }
 0x2eb   : > { %1890 = vrot.lane.b32.xlu1 %v1501_v31, %s5483_s27  ;;  %1888 = vrot.lane.b32.xlu0 %v1500_v12, %s5483_s27 }
 0x2ed   : > { %v4547_v52 = vpop.permute.xlu1 %1517  ;;  %v4549_v8 = vpop.permute.xlu0 %1515 }
 0x2ef   : > { %1905 = vrot.lane.b32.xlu1 %v4476_v3, %s5337_s20  ;;  %1903 = vrot.lane.b32.xlu0 %v4479_v23, %s5337_s20 }
 0x2f1   : > { %v4555_v42 = vpop.permute.xlu1 %1530  ;;  %v4557_v61 = vpop.permute.xlu0 %1528 }
 0x2f3   : > { %1918 = vrot.lane.b32.xlu1 %v4476_v3, %s5340_s19  ;;  %1916 = vrot.lane.b32.xlu0 %v4479_v23, %s5340_s19 }
 0x2f5   : > { %v4563_v49 = vpop.permute.xlu1 %1543  ;;  %v4565_v1 = vpop.permute.xlu0 %1541 }
 0x2f7   : > { %1931 = vrot.lane.b32.xlu1 %v4476_v3, %s5343_s29  ;;  %1929 = vrot.lane.b32.xlu0 %v4479_v23, %s5343_s29 }
 0x2f9   : > { %v4571_v57 = vpop.permute.xlu1 %1556  ;;  %v4573_v25 = vpop.permute.xlu0 %1554 }
 0x2fb   : > { %1944 = vrot.lane.b32.xlu1 %v4476_v3, %s5346_s21  ;;  %1942 = vrot.lane.b32.xlu0 %v4479_v23, %s5346_s21 }
 0x2fd   : > { %v4579_v35 = vpop.permute.xlu1 %1569  ;;  %v4581_v5 = vpop.permute.xlu0 %1567 }
 0x2ff   : > { %1957 = vrot.lane.b32.xlu1 %v4476_v3, %s5349_s25  ;;  %1955 = vrot.lane.b32.xlu0 %v4479_v23, %s5349_s25 }
 0x301   : > { %v4587_v11 = vpop.permute.xlu1 %1582  ;;  %v4589_v30 = vpop.permute.xlu0 %1580 }
 0x303   : > { %1970 = vrot.lane.b32.xlu1 %v4476_v3, %s5352_s18  ;;  %1968 = vrot.lane.b32.xlu0 %v4479_v23, %s5352_s18 }
 0x305   : > { %v4595_v41 = vpop.permute.xlu1 %1595  ;;  %v4597_v53 = vpop.permute.xlu0 %1593 }
 0x307   : > { %1983 = vrot.lane.b32.xlu1 %v4476_v3, %s5355_s5  ;;  %1981 = vrot.lane.b32.xlu0 %v4479_v23, %s5355_s5 }
 0x309   : > { %v4603_v33 = vpop.permute.xlu1 %1608  ;;  %v4605_v40 = vpop.permute.xlu0 %1606 }
 0x30b   : > { %1996 = vrot.lane.b32.xlu1 %v4476_v3, %s5358_s23  ;;  %1994 = vrot.lane.b32.xlu0 %v4479_v23, %s5358_s23 }
 0x30d   : > { %v4611_v24 = vpop.permute.xlu1 %1621  ;;  %v4613_v9 = vpop.permute.xlu0 %1619 }
 0x30f   : > { %2009 = vrot.lane.b32.xlu1 %v4476_v3, %s5361_s4  ;;  %2007 = vrot.lane.b32.xlu0 %v4479_v23, %s5361_s4 }
 0x311   : > { %v4619_v55 = vpop.permute.xlu1 %1634  ;;  %v4621_v48 = vpop.permute.xlu0 %1632 }
 0x313   : > { %2022 = vrot.lane.b32.xlu1 %v4476_v3, %s5364_s14  ;;  %2020 = vrot.lane.b32.xlu0 %v4479_v23, %s5364_s14 }
 0x315   : > { %v4627_v44 = vpop.permute.xlu1 %1647  ;;  %v4629_v46 = vpop.permute.xlu0 %1645 }
 0x317   : > { %2035 = vrot.lane.b32.xlu1 %v4476_v3, %s5367_s22  ;;  %2033 = vrot.lane.b32.xlu0 %v4479_v23, %s5367_s22 }
 0x319   : > { %v4635_v0 = vpop.permute.xlu1 %1660  ;;  %v4637_v62 = vpop.permute.xlu0 %1658 }
 0x31b   : > { %2048 = vrot.lane.b32.xlu1 %v4476_v3, %s5300_s30  ;;  %2046 = vrot.lane.b32.xlu0 %v4479_v23, %s5300_s30 }
 0x31d   : > { %v4643_v27 = vpop.permute.xlu1 %1673  ;;  %v4645_v7 = vpop.permute.xlu0 %1671 }
 0x31e   : > { %5484 = vst [vmem:[#allocation27_spill] sm:$0xff] %v4643_v27  ;;  %5485 = vst [vmem:[#allocation28_spill] sm:$0xff] %v4645_v7 }
 0x31f   : > { %2061 = vrot.lane.b32.xlu1 %v4476_v3, %s5301_s11  ;;  %2059 = vrot.lane.b32.xlu0 %v4479_v23, %s5301_s11 }
 0x321   : > { %v4651_v56 = vpop.permute.xlu1 %1686  ;;  %v4653_v63 = vpop.permute.xlu0 %1684 }
 0x322   : > { %5486 = vst [vmem:[#allocation41_spill] sm:$0xff] %v4651_v56  ;;  %5487 = vst [vmem:[#allocation42_spill] sm:$0xff] %v4653_v63 }
 0x323   : > { %2074 = vrot.lane.b32.xlu1 %v4476_v3, %s5302_s17  ;;  %2072 = vrot.lane.b32.xlu0 %v4479_v23, %s5302_s17 }
 0x325   : > { %v4659_v60 = vpop.permute.xlu1 %1708  ;;  %v4661_v58 = vpop.permute.xlu0 %1706 }
 0x326   : > { %5488 = vst [vmem:[#allocation39_spill] sm:$0xff] %v4659_v60  ;;  %5489 = vst [vmem:[#allocation40_spill] sm:$0xff] %v4661_v58 }
 0x327   : > { %2087 = vrot.lane.b32.xlu1 %v4476_v3, %s5303_s9  ;;  %2085 = vrot.lane.b32.xlu0 %v4479_v23, %s5303_s9 }
 0x329   : > { %v4667_v16 = vpop.permute.xlu1 %1721  ;;  %v4669_v2 = vpop.permute.xlu0 %1719 }
 0x32a   : > { %5490 = vst [vmem:[#allocation43_spill] sm:$0xff] %v4667_v16  ;;  %5491 = vst [vmem:[#allocation44_spill] sm:$0xff] %v4669_v2 }
 0x32b   : > { %2109 = vrot.lane.b32.xlu1 %v4476_v3, %s5304_s13  ;;  %2107 = vrot.lane.b32.xlu0 %v4479_v23, %s5304_s13 }
 0x32d   : > { %v4675_v54 = vpop.permute.xlu1 %1734  ;;  %v4677_v51 = vpop.permute.xlu0 %1732 }
 0x32e   : > { %5492 = vst [vmem:[#allocation24_spill] sm:$0xff] %v4675_v54  ;;  %5493 = vst [vmem:[#allocation23_spill] sm:$0xff] %v4677_v51  ;;  %v2970_v51 = vld [vmem:[#allocation8 + $0x23] ss:$0 sm:$0xff] }
 0x32f   : > { %2122 = vrot.lane.b32.xlu1 %v4476_v3, %s5305_s28  ;;  %2120 = vrot.lane.b32.xlu0 %v4479_v23, %s5305_s28 }
 0x331   : > { %v4683_v39 = vpop.permute.xlu1 %1747  ;;  %v4685_v32 = vpop.permute.xlu0 %1745 }
 0x332   : > { %5494 = vst [vmem:[#allocation45_spill] sm:$0xff] %v4683_v39  ;;  %5495 = vst [vmem:[#allocation46_spill] sm:$0xff] %v4685_v32 }
 0x333   : > { %2135 = vrot.lane.b32.xlu1 %v4476_v3, %s5306_s10  ;;  %2133 = vrot.lane.b32.xlu0 %v4479_v23, %s5306_s10 }
 0x335   : > { %v4691_v19 = vpop.permute.xlu1 %1760  ;;  %v4693_v28 = vpop.permute.xlu0 %1758 }
 0x336   : > { %5496 = vst [vmem:[#allocation29_spill] sm:$0xff] %v4691_v19  ;;  %5497 = vst [vmem:[#allocation30_spill] sm:$0xff] %v4693_v28 }
 0x337   : > { %2148 = vrot.lane.b32.xlu1 %v4476_v3, %s5307_s16  ;;  %2146 = vrot.lane.b32.xlu0 %v4479_v23, %s5307_s16 }
 0x339   : > { %v4699_v43 = vpop.permute.xlu1 %1773  ;;  %v4701_v26 = vpop.permute.xlu0 %1771 }
 0x33a   : > { %5498 = vst [vmem:[#allocation47_spill] sm:$0xff] %v4699_v43  ;;  %5499 = vst [vmem:[#allocation48_spill] sm:$0xff] %v4701_v26  ;;  %v2969_v43 = vld [vmem:[#allocation8 + $0x22] ss:$0 sm:$0xff] }
 0x33b   : > { %2161 = vrot.lane.b32.xlu1 %v4476_v3, %s5308_s15  ;;  %2159 = vrot.lane.b32.xlu0 %v4479_v23, %s5308_s15 }
 0x33d   : > { %v4707_v20 = vpop.permute.xlu1 %1786  ;;  %v4709_v18 = vpop.permute.xlu0 %1784 }
 0x33e   : > { %5500 = vst [vmem:[#allocation49_spill] sm:$0xff] %v4707_v20  ;;  %5501 = vst [vmem:[#allocation50_spill] sm:$0xff] %v4709_v18 }
 0x33f   : > { %2174 = vrot.lane.b32.xlu1 %v4476_v3, %s5309_s24  ;;  %2172 = vrot.lane.b32.xlu0 %v4479_v23, %s5309_s24 }
 0x341   : > { %v4715_v6 = vpop.permute.xlu1 %1799  ;;  %v4717_v37 = vpop.permute.xlu0 %1797 }
 0x342   : > { %5502 = vst [vmem:[#allocation51_spill] sm:$0xff] %v4715_v6  ;;  %5503 = vst [vmem:[#allocation52_spill] sm:$0xff] %v4717_v37  ;;  %v2968_v37 = vld [vmem:[#allocation8 + $0x21] ss:$0 sm:$0xff] }
 0x343   : > { %2187 = vrot.lane.b32.xlu1 %v4476_v3, %s5310_s26  ;;  %2185 = vrot.lane.b32.xlu0 %v4479_v23, %s5310_s26 }
 0x345   : > { %v4723_v50 = vpop.permute.xlu1 %1812  ;;  %v4725_v22 = vpop.permute.xlu0 %1810 }
 0x346   : > { %5504 = vst [vmem:[#allocation53_spill] sm:$0xff] %v4723_v50  ;;  %5505 = vst [vmem:[#allocation54_spill] sm:$0xff] %v4725_v22  ;;  %v2967_v22 = vld [vmem:[#allocation8 + $0x20] ss:$0 sm:$0xff]  ;;  %v2966_v50 = vld [vmem:[#allocation8 + $0x1f] ss:$0 sm:$0xff] }
 0x347   : > { %2200 = vrot.lane.b32.xlu1 %v4476_v3, %s5313_s12  ;;  %2198 = vrot.lane.b32.xlu0 %v4479_v23, %s5313_s12 }
 0x349   : > { %v4731_v59 = vpop.permute.xlu1 %1825  ;;  %v4733_v13 = vpop.permute.xlu0 %1823 }
 0x34a   : > { %5506 = vst [vmem:[#allocation55_spill] sm:$0xff] %v4731_v59  ;;  %5507 = vst [vmem:[#allocation56_spill] sm:$0xff] %v4733_v13 }
 0x34b   : > { %2213 = vrot.lane.b32.xlu1 %v4476_v3, %s5316_s8  ;;  %2211 = vrot.lane.b32.xlu0 %v4479_v23, %s5316_s8 }
 0x34d   : > { %v4739_v45 = vpop.permute.xlu1 %1838  ;;  %v4741_v14 = vpop.permute.xlu0 %1836 }
 0x34e   : > { %5508 = vst [vmem:[#allocation57_spill] sm:$0xff] %v4739_v45  ;;  %5509 = vst [vmem:[#allocation58_spill] sm:$0xff] %v4741_v14 }
 0x34f   : > { %2226 = vrot.lane.b32.xlu1 %v4476_v3, %s5319_s7  ;;  %2224 = vrot.lane.b32.xlu0 %v4479_v23, %s5319_s7 }
 0x351   : > { %v4747_v34 = vpop.permute.xlu1 %1851  ;;  %v4749_v29 = vpop.permute.xlu0 %1849 }
 0x352   : > { %5510 = vst [vmem:[#allocation59_spill] sm:$0xff] %v4747_v34  ;;  %5511 = vst [vmem:[#allocation60_spill] sm:$0xff] %v4749_v29 }
 0x353   : > { %2239 = vrot.lane.b32.xlu1 %v4476_v3, %s5322_s6  ;;  %2237 = vrot.lane.b32.xlu0 %v4479_v23, %s5322_s6 }
 0x355   : > { %v4755_v47 = vpop.permute.xlu1 %1864  ;;  %v4757_v4 = vpop.permute.xlu0 %1862 }
 0x356   : > { %5512 = vst [vmem:[#allocation61_spill] sm:$0xff] %v4755_v47  ;;  %5513 = vst [vmem:[#allocation62_spill] sm:$0xff] %v4757_v4 }
 0x357   : > { %2252 = vrot.lane.b32.xlu1 %v4476_v3, %s5325_s0  ;;  %2250 = vrot.lane.b32.xlu0 %v4479_v23, %s5325_s0 }
 0x359   : > { %v4763_v38 = vpop.permute.xlu1 %1877  ;;  %v4765_v36 = vpop.permute.xlu0 %1875 }
 0x35a   : > { %5514 = vst [vmem:[#allocation63_spill] sm:$0xff] %v4763_v38  ;;  %5515 = vst [vmem:[#allocation64_spill] sm:$0xff] %v4765_v36 }
 0x35b   : > { %2265 = vrot.lane.b32.xlu1 %v4476_v3, %s5328_s1  ;;  %2263 = vrot.lane.b32.xlu0 %v4479_v23, %s5328_s1 }
 0x35d   : > { %v4771_v12 = vpop.permute.xlu1 %1890  ;;  %v4773_v31 = vpop.permute.xlu0 %1888 }
 0x35e   : > { %5516 = vst [vmem:[#allocation65_spill] sm:$0xff] %v4771_v12  ;;  %5517 = vst [vmem:[#allocation66_spill] sm:$0xff] %v4773_v31 }
 0x35f   : > { %2306 = vrot.lane.b32.xlu1 %v4775_v17, %s5337_s20  ;;  %2304 = vrot.lane.b32.xlu0 %v4777_v10, %s5337_s20 }
 0x361   : > { %v1906_v36 = vpop.permute.xlu1 %1905  ;;  %v1904_v38 = vpop.permute.xlu0 %1903 }
 0x362   : > { %v1913_v28 = vmul.f32 %v2966_v50, %v1906_v36  ;;  %v1912_v19 = vmul.f32 %v2966_v50, %v1904_v38 }
 0x363   : > { %2319 = vrot.lane.b32.xlu1 %v4775_v17, %s5340_s19  ;;  %2317 = vrot.lane.b32.xlu0 %v4777_v10, %s5340_s19  ;;  %s5583_s19 = sld [smem:[#allocation20_spill]] }
 0x365   : > { %v1919_v12 = vpop.permute.xlu1 %1918  ;;  %v1917_v31 = vpop.permute.xlu0 %1916 }
 0x366   : > { %v1926_v20 = vmul.f32 %v2967_v22, %v1919_v12  ;;  %v1925_v26 = vmul.f32 %v2967_v22, %v1917_v31  ;;  %v2971_v12 = vld [vmem:[#allocation8 + $0x24] ss:$0 sm:$0xff] }
 0x367   : > { %2332 = vrot.lane.b32.xlu1 %v4775_v17, %s5343_s29  ;;  %2330 = vrot.lane.b32.xlu0 %v4777_v10, %s5343_s29 }
 0x368   : > { %v1928_v16 = vadd.f32 %v1926_v20, %v1913_v28  ;;  %v1927_v58 = vadd.f32 %v1925_v26, %v1912_v19  ;;  %v2973_v26 = vld [vmem:[#allocation8 + $0x26] ss:$0 sm:$0xff] }
 0x369   : > { %v1932_v4 = vpop.permute.xlu1 %1931  ;;  %v1930_v47 = vpop.permute.xlu0 %1929  ;;  %p5588_p0 = scmp.ne.s32.totalorder %s5583_s19, 0 }
 0x36a   : > { %v1939_v32 = vmul.f32 %v2968_v37, %v1932_v4  ;;  %v1938_v39 = vmul.f32 %v2968_v37, %v1930_v47  ;;  %v2972_v4 = vld [vmem:[#allocation8 + $0x25] ss:$0 sm:$0xff] }
 0x36b   : > { %2345 = vrot.lane.b32.xlu1 %v4775_v17, %s5346_s21  ;;  %2343 = vrot.lane.b32.xlu0 %v4777_v10, %s5346_s21 }
 0x36c   : > { %v1941_v22 = vadd.f32 %v1939_v32, %v1928_v16  ;;  %v1940_v31 = vadd.f32 %v1938_v39, %v1927_v58  ;;  %v2974_v39 = vld [vmem:[#allocation8 + $0x27] ss:$0 sm:$0xff] }
 0x36d   : > { %v1945_v29 = vpop.permute.xlu1 %1944  ;;  %v1943_v34 = vpop.permute.xlu0 %1942 }
 0x36e   : > { %v1952_v60 = vmul.f32 %v2969_v43, %v1945_v29  ;;  %v1951_v63 = vmul.f32 %v2969_v43, %v1943_v34 }
 0x36f   : > { %2358 = vrot.lane.b32.xlu1 %v4775_v17, %s5349_s25  ;;  %2356 = vrot.lane.b32.xlu0 %v4777_v10, %s5349_s25 }
 0x370   : > { %v1954_v38 = vadd.f32 %v1952_v60, %v1941_v22  ;;  %v1953_v56 = vadd.f32 %v1951_v63, %v1940_v31 }
 0x371   : > { %v1958_v14 = vpop.permute.xlu1 %1957  ;;  %v1956_v45 = vpop.permute.xlu0 %1955 }
 0x372   : > { %v1965_v36 = vmul.f32 %v2970_v51, %v1958_v14  ;;  %v1964_v50 = vmul.f32 %v2970_v51, %v1956_v45 }
 0x373   : > { %2371 = vrot.lane.b32.xlu1 %v4775_v17, %s5352_s18  ;;  %2369 = vrot.lane.b32.xlu0 %v4777_v10, %s5352_s18  ;;  %s5582_s18 = sld [smem:[#allocation102_spill]] }
 0x374   : > { %v1967_v43 = vadd.f32 %v1965_v36, %v1954_v38  ;;  %v1966_v20 = vadd.f32 %v1964_v50, %v1953_v56 }
 0x375   : > { %v1971_v13 = vpop.permute.xlu1 %1970  ;;  %v1969_v59 = vpop.permute.xlu0 %1968 }
 0x376   : > { %v1978_v28 = vmul.f32 %v2971_v12, %v1971_v13  ;;  %v1977_v19 = vmul.f32 %v2971_v12, %v1969_v59  ;;  %v2975_v13 = vld [vmem:[#allocation8 + $0x28] ss:$0 sm:$0xff] }
 0x377   : > { %2384 = vrot.lane.b32.xlu1 %v4775_v17, %s5355_s5  ;;  %2382 = vrot.lane.b32.xlu0 %v4777_v10, %s5355_s5 }
 0x378   : > { %v1980_v45 = vadd.f32 %v1978_v28, %v1967_v43  ;;  %v1979_v14 = vadd.f32 %v1977_v19, %v1966_v20 }
 0x379   : > { %v1984_v6 = vpop.permute.xlu1 %1983  ;;  %v1982_v18 = vpop.permute.xlu0 %1981 }
 0x37a   : > { %v1991_v16 = vmul.f32 %v2972_v4, %v1984_v6  ;;  %v1990_v58 = vmul.f32 %v2972_v4, %v1982_v18  ;;  %v2976_v6 = vld [vmem:[#allocation8 + $0x29] ss:$0 sm:$0xff] }
 0x37b   : > { %2397 = vrot.lane.b32.xlu1 %v4775_v17, %s5358_s23  ;;  %2395 = vrot.lane.b32.xlu0 %v4777_v10, %s5358_s23 }
 0x37c   : > { %v1993_v59 = vadd.f32 %v1991_v16, %v1980_v45  ;;  %v1992_v34 = vadd.f32 %v1990_v58, %v1979_v14  ;;  %v2978_v16 = vld [vmem:[#allocation8 + $0x2b] ss:$0 sm:$0xff] }
 0x37d   : > { %v1997_v54 = vpop.permute.xlu1 %1996  ;;  %v1995_v2 = vpop.permute.xlu0 %1994 }
 0x37e   : > { %v2004_v60 = vmul.f32 %v2973_v26, %v1997_v54  ;;  %v2003_v63 = vmul.f32 %v2973_v26, %v1995_v2  ;;  %v2977_v2 = vld [vmem:[#allocation8 + $0x2a] ss:$0 sm:$0xff] }
 0x37f   : > { %2410 = vrot.lane.b32.xlu1 %v4775_v17, %s5361_s4  ;;  %2408 = vrot.lane.b32.xlu0 %v4777_v10, %s5361_s4 }
 0x380   : > { %v2006_v22 = vadd.f32 %v2004_v60, %v1993_v59  ;;  %v2005_v31 = vadd.f32 %v2003_v63, %v1992_v34 }
 0x381   : > { %v2010_v37 = vpop.permute.xlu1 %2009  ;;  %v2008_v47 = vpop.permute.xlu0 %2007 }
 0x382   : > { %v2017_v29 = vmul.f32 %v2974_v39, %v2010_v37  ;;  %v2016_v56 = vmul.f32 %v2974_v39, %v2008_v47 }
 0x383   : > { %2423 = vrot.lane.b32.xlu1 %v4775_v17, %s5364_s14  ;;  %2421 = vrot.lane.b32.xlu0 %v4777_v10, %s5364_s14 }
 0x384   : > { %v2019_v54 = vadd.f32 %v2017_v29, %v2006_v22  ;;  %v2018_v4 = vadd.f32 %v2016_v56, %v2005_v31 }
 0x385   : > { %v2023_v51 = vpop.permute.xlu1 %2022  ;;  %v2021_v32 = vpop.permute.xlu0 %2020 }
 0x386   : > { %v2030_v36 = vmul.f32 %v2975_v13, %v2023_v51  ;;  %v2029_v50 = vmul.f32 %v2975_v13, %v2021_v32  ;;  %v2979_v13 = vld [vmem:[#allocation8 + $0x2c] ss:$0 sm:$0xff] }
 0x387   : > { %2436 = vrot.lane.b32.xlu1 %v4775_v17, %s5367_s22  ;;  %2434 = vrot.lane.b32.xlu0 %v4777_v10, %s5367_s22 }
 0x388   : > { %v2032_v19 = vadd.f32 %v2030_v36, %v2019_v54  ;;  %v2031_v26 = vadd.f32 %v2029_v50, %v2018_v4 }
 0x389   : > { %v2036_v18 = vpop.permute.xlu1 %2035  ;;  %v2034_v12 = vpop.permute.xlu0 %2033 }
 0x38a   : > { %v2043_v38 = vmul.f32 %v2976_v6, %v2036_v18  ;;  %v2042_v28 = vmul.f32 %v2976_v6, %v2034_v12  ;;  %v2980_v12 = vld [vmem:[#allocation8 + $0x2d] ss:$0 sm:$0xff] }
 0x38b   : > { %2449 = vrot.lane.b32.xlu1 %v4775_v17, %s5300_s30  ;;  %2447 = vrot.lane.b32.xlu0 %v4777_v10, %s5300_s30 }
 0x38c   : > { %v2045_v58 = vadd.f32 %v2043_v38, %v2032_v19  ;;  %v2044_v39 = vadd.f32 %v2042_v28, %v2031_v26  ;;  %v2982_v38 = vld [vmem:[#allocation8 + $0x2f] ss:$0 sm:$0xff] }
 0x38d   : > { %v2049_v37 = vpop.permute.xlu1 %2048  ;;  %v2047_v47 = vpop.permute.xlu0 %2046 }
 0x38e   : > { %v2056_v43 = vmul.f32 %v2977_v2, %v2049_v37  ;;  %v2055_v20 = vmul.f32 %v2977_v2, %v2047_v47  ;;  %v2981_v2 = vld [vmem:[#allocation8 + $0x2e] ss:$0 sm:$0xff] }
 0x38f   : > { %2462 = vrot.lane.b32.xlu1 %v4775_v17, %s5301_s11  ;;  %2460 = vrot.lane.b32.xlu0 %v4777_v10, %s5301_s11  ;;  %v2104_v47 = vmul.f32 %v2981_v2, %v4476_v3  ;;  %v2103_v19 = vmul.f32 %v2981_v2, %v4479_v23 }
 0x390   : > { %v2058_v45 = vadd.f32 %v2056_v43, %v2045_v58  ;;  %v2057_v14 = vadd.f32 %v2055_v20, %v2044_v39 }
 0x391   : > { %v2062_v51 = vpop.permute.xlu1 %2061  ;;  %v2060_v32 = vpop.permute.xlu0 %2059 }
 0x392   : > { %v2069_v60 = vmul.f32 %v2978_v16, %v2062_v51  ;;  %v2068_v63 = vmul.f32 %v2978_v16, %v2060_v32  ;;  %v2983_v51 = vld [vmem:[#allocation8 + $0x30] ss:$0 sm:$0xff] }
 0x393   : > { %2475 = vrot.lane.b32.xlu1 %v4775_v17, %s5302_s17  ;;  %2473 = vrot.lane.b32.xlu0 %v4777_v10, %s5302_s17 }
 0x394   : > { %v2071_v59 = vadd.f32 %v2069_v60, %v2058_v45  ;;  %v2070_v34 = vadd.f32 %v2068_v63, %v2057_v14 }
 0x395   : > { %v2075_v29 = vpop.permute.xlu1 %2074  ;;  %v2073_v56 = vpop.permute.xlu0 %2072 }
 0x396   : > { %v2082_v6 = vmul.f32 %v2979_v13, %v2075_v29  ;;  %v2081_v18 = vmul.f32 %v2979_v13, %v2073_v56 }
 0x397   : > { %2488 = vrot.lane.b32.xlu1 %v4775_v17, %s5303_s9  ;;  %2486 = vrot.lane.b32.xlu0 %v4777_v10, %s5303_s9 }
 0x398   : > { %v2084_v22 = vadd.f32 %v2082_v6, %v2071_v59  ;;  %v2083_v31 = vadd.f32 %v2081_v18, %v2070_v34  ;;  %v2984_v59 = vld [vmem:[#allocation8 + $0x31] ss:$0 sm:$0xff] }
 0x399   : > { %v2088_v36 = vpop.permute.xlu1 %2087  ;;  %v2086_v50 = vpop.permute.xlu0 %2085 }
 0x39a   : > { %v2095_v54 = vmul.f32 %v2980_v12, %v2088_v36  ;;  %v2094_v4 = vmul.f32 %v2980_v12, %v2086_v50 }
 0x39b   : > { %2510 = vrot.lane.b32.xlu1 %v4775_v17, %s5304_s13  ;;  %2508 = vrot.lane.b32.xlu0 %v4777_v10, %s5304_s13 }
 0x39c   : > { %v2097_v28 = vadd.f32 %v2095_v54, %v2084_v22  ;;  %v2096_v37 = vadd.f32 %v2094_v4, %v2083_v31  ;;  %v2985_v22 = vld [vmem:[#allocation8 + $0x32] ss:$0 sm:$0xff] }
 0x39d   : > { %v2110_v26 = vpop.permute.xlu1 %2109  ;;  %v2108_v43 = vpop.permute.xlu0 %2107 }
 0x39e   : > { %v2106_v20 = vadd.f32 %v2104_v47, %v2097_v28  ;;  %v2117_v16 = vmul.f32 %v2982_v38, %v2110_v26  ;;  %v2105_v58 = vadd.f32 %v2103_v19, %v2096_v37  ;;  %v2116_v39 = vmul.f32 %v2982_v38, %v2108_v43  ;;  %v2986_v38 = vld [vmem:[#allocation8 + $0x33] ss:$0 sm:$0xff] }
 0x39f   : > { %2523 = vrot.lane.b32.xlu1 %v4775_v17, %s5305_s28  ;;  %2521 = vrot.lane.b32.xlu0 %v4777_v10, %s5305_s28 }
 0x3a0   : > { %v2119_v32 = vadd.f32 %v2117_v16, %v2106_v20  ;;  %v2118_v45 = vadd.f32 %v2116_v39, %v2105_v58  ;;  %v2987_v20 = vld [vmem:[#allocation8 + $0x34] ss:$0 sm:$0xff] }
 0x3a1   : > { %v2123_v14 = vpop.permute.xlu1 %2122  ;;  %v2121_v60 = vpop.permute.xlu0 %2120 }
 0x3a2   : > { %v2130_v63 = vmul.f32 %v2983_v51, %v2123_v14  ;;  %v2129_v13 = vmul.f32 %v2983_v51, %v2121_v60  ;;  %v2988_v14 = vld [vmem:[#allocation8 + $0x35] ss:$0 sm:$0xff] }
 0x3a3   : > { %2536 = vrot.lane.b32.xlu1 %v4775_v17, %s5306_s10  ;;  %2534 = vrot.lane.b32.xlu0 %v4777_v10, %s5306_s10 }
 0x3a4   : > { %v2132_v34 = vadd.f32 %v2130_v63, %v2119_v32  ;;  %v2131_v29 = vadd.f32 %v2129_v13, %v2118_v45 }
 0x3a5   : > { %v2136_v56 = vpop.permute.xlu1 %2135  ;;  %v2134_v6 = vpop.permute.xlu0 %2133 }
 0x3a6   : > { %v2143_v18 = vmul.f32 %v2984_v59, %v2136_v56  ;;  %v2142_v12 = vmul.f32 %v2984_v59, %v2134_v6  ;;  %v2989_v56 = vld [vmem:[#allocation8 + $0x36] ss:$0 sm:$0xff] }
 0x3a7   : > { %2549 = vrot.lane.b32.xlu1 %v4775_v17, %s5307_s16  ;;  %2547 = vrot.lane.b32.xlu0 %v4777_v10, %s5307_s16  ;;  %s3333_s16 = smov [#allocation9]  }
 0x3a8   : > { %v2145_v31 = vadd.f32 %v2143_v18, %v2132_v34  ;;  %v2144_v36 = vadd.f32 %v2142_v12, %v2131_v29  ;;  %s3229_s10 = sshll.u32 %s3333_s16, 4  ;;  %s3230_s10 = int_to_ptr.vmem [resolvable:$false] %s3229_s10 }
 0x3a9   : > { %v2149_v50 = vpop.permute.xlu1 %2148  ;;  %v2147_v2 = vpop.permute.xlu0 %2146  ;;  %s3231_s28 = scalar_lea.vmem %s3230_s10, 512 }
 0x3aa   : > { %v2156_v54 = vmul.f32 %v2985_v22, %v2149_v50  ;;  %v2155_v4 = vmul.f32 %v2985_v22, %v2147_v2  ;;  %v2990_v50 = vld [vmem:[#allocation8 + $0x37] ss:$0 sm:$0xff] }
 0x3ab   : > { %2562 = vrot.lane.b32.xlu1 %v4775_v17, %s5308_s15  ;;  %2560 = vrot.lane.b32.xlu0 %v4777_v10, %s5308_s15 }
 0x3ac   : > { %v2158_v28 = vadd.f32 %v2156_v54, %v2145_v31  ;;  %v2157_v37 = vadd.f32 %v2155_v4, %v2144_v36 }
 0x3ad   : > { %v2162_v47 = vpop.permute.xlu1 %2161  ;;  %v2160_v19 = vpop.permute.xlu0 %2159 }
 0x3ae   : > { %v2169_v26 = vmul.f32 %v2986_v38, %v2162_v47  ;;  %v2168_v43 = vmul.f32 %v2986_v38, %v2160_v19  ;;  %v2991_v47 = vld [vmem:[#allocation8 + $0x38] ss:$0 sm:$0xff] }
 0x3af   : > { %2575 = vrot.lane.b32.xlu1 %v4775_v17, %s5309_s24  ;;  %2573 = vrot.lane.b32.xlu0 %v4777_v10, %s5309_s24 }
 0x3b0   : > { %v2171_v16 = vadd.f32 %v2169_v26, %v2158_v28  ;;  %v2170_v58 = vadd.f32 %v2168_v43, %v2157_v37 }
 0x3b1   : > { %v2175_v39 = vpop.permute.xlu1 %2174  ;;  %v2173_v51 = vpop.permute.xlu0 %2172 }
 0x3b2   : > { %v2182_v32 = vmul.f32 %v2987_v20, %v2175_v39  ;;  %v2181_v45 = vmul.f32 %v2987_v20, %v2173_v51  ;;  %v2992_v39 = vld [vmem:[#allocation8 + $0x39] ss:$0 sm:$0xff] }
 0x3b3   : > { %2588 = vrot.lane.b32.xlu1 %v4775_v17, %s5310_s26  ;;  %2586 = vrot.lane.b32.xlu0 %v4777_v10, %s5310_s26 }
 0x3b4   : > { %v2184_v60 = vadd.f32 %v2182_v32, %v2171_v16  ;;  %v2183_v63 = vadd.f32 %v2181_v45, %v2170_v58 }
 0x3b5   : > { %v2188_v13 = vpop.permute.xlu1 %2187  ;;  %v2186_v59 = vpop.permute.xlu0 %2185 }
 0x3b6   : > { %v2195_v34 = vmul.f32 %v2988_v14, %v2188_v13  ;;  %v2194_v29 = vmul.f32 %v2988_v14, %v2186_v59  ;;  %v2993_v13 = vld [vmem:[#allocation8 + $0x3a] ss:$0 sm:$0xff] }
 0x3b7   : > { %2601 = vrot.lane.b32.xlu1 %v4775_v17, %s5313_s12  ;;  %2599 = vrot.lane.b32.xlu0 %v4777_v10, %s5313_s12 }
 0x3b8   : > { %v2197_v6 = vadd.f32 %v2195_v34, %v2184_v60  ;;  %v2196_v18 = vadd.f32 %v2194_v29, %v2183_v63 }
 0x3b9   : > { %v2201_v12 = vpop.permute.xlu1 %2200  ;;  %v2199_v22 = vpop.permute.xlu0 %2198 }
 0x3ba   : > { %v2208_v31 = vmul.f32 %v2989_v56, %v2201_v12  ;;  %v2207_v36 = vmul.f32 %v2989_v56, %v2199_v22  ;;  %v2994_v12 = vld [vmem:[#allocation8 + $0x3b] ss:$0 sm:$0xff] }
 0x3bb   : > { %2614 = vrot.lane.b32.xlu1 %v4775_v17, %s5316_s8  ;;  %2612 = vrot.lane.b32.xlu0 %v4777_v10, %s5316_s8 }
 0x3bc   : > { %v2210_v2 = vadd.f32 %v2208_v31, %v2197_v6  ;;  %v2209_v54 = vadd.f32 %v2207_v36, %v2196_v18 }
 0x3bd   : > { %v2214_v4 = vpop.permute.xlu1 %2213  ;;  %v2212_v38 = vpop.permute.xlu0 %2211 }
 0x3be   : > { %v2221_v28 = vmul.f32 %v2990_v50, %v2214_v4  ;;  %v2220_v37 = vmul.f32 %v2990_v50, %v2212_v38 }
 0x3bf   : > { %2627 = vrot.lane.b32.xlu1 %v4775_v17, %s5319_s7  ;;  %2625 = vrot.lane.b32.xlu0 %v4777_v10, %s5319_s7 }
 0x3c0   : > { %v2223_v19 = vadd.f32 %v2221_v28, %v2210_v2  ;;  %v2222_v26 = vadd.f32 %v2220_v37, %v2209_v54 }
 0x3c1   : > { %v2227_v43 = vpop.permute.xlu1 %2226  ;;  %v2225_v20 = vpop.permute.xlu0 %2224 }
 0x3c2   : > { %v2234_v16 = vmul.f32 %v2991_v47, %v2227_v43  ;;  %v2233_v58 = vmul.f32 %v2991_v47, %v2225_v20 }
 0x3c3   : > { %2640 = vrot.lane.b32.xlu1 %v4775_v17, %s5322_s6  ;;  %2638 = vrot.lane.b32.xlu0 %v4777_v10, %s5322_s6  ;;  %s5587_s6 = sld [smem:[#allocation103_spill]] }
 0x3c4   : > { %v2236_v51 = vadd.f32 %v2234_v16, %v2223_v19  ;;  %v2235_v32 = vadd.f32 %v2233_v58, %v2222_v26 }
 0x3c5   : > { %v2240_v45 = vpop.permute.xlu1 %2239  ;;  %v2238_v14 = vpop.permute.xlu0 %2237 }
 0x3c6   : > { %v2247_v60 = vmul.f32 %v2992_v39, %v2240_v45  ;;  %v2246_v63 = vmul.f32 %v2992_v39, %v2238_v14 }
 0x3c7   : > { %2653 = vrot.lane.b32.xlu1 %v4775_v17, %s5325_s0  ;;  %2651 = vrot.lane.b32.xlu0 %v4777_v10, %s5325_s0  ;;  %s5580_s0 = sld [smem:[#allocation17_spill]] }
 0x3c8   : > { %v2249_v59 = vadd.f32 %v2247_v60, %v2236_v51  ;;  %v2248_v34 = vadd.f32 %v2246_v63, %v2235_v32 }
 0x3c9   : > { %v2253_v29 = vpop.permute.xlu1 %2252  ;;  %v2251_v56 = vpop.permute.xlu0 %2250 }
 0x3ca   : > { %v2260_v6 = vmul.f32 %v2993_v13, %v2253_v29  ;;  %v2259_v18 = vmul.f32 %v2993_v13, %v2251_v56 }
 0x3cb   : > { %2278 = vrot.lane.b32.xlu1 %v4476_v3, %s5482_s3  ;;  %2276 = vrot.lane.b32.xlu0 %v4479_v23, %s5482_s3 }
 0x3cc   : > { %v2262_v22 = vadd.f32 %v2260_v6, %v2249_v59  ;;  %v2261_v31 = vadd.f32 %v2259_v18, %v2248_v34 }
 0x3cd   : > { %v2266_v36 = vpop.permute.xlu1 %2265  ;;  %v2264_v50 = vpop.permute.xlu0 %2263  ;;  %s3035_s20 = sshll.u32 %s5580_s0, 8 }
 0x3ce   : > { %v2273_v2 = vmul.f32 %v2994_v12, %v2266_v36  ;;  %v2272_v54 = vmul.f32 %v2994_v12, %v2264_v50  ;;  %v2935_v50 = vld [vmem:[#allocation8] ss:$0 sm:$0xff]  ;;  %s5132_s24 = scalar_lea.hbm %s5587_s6, %s3035_s20 }
 0x3cf   : > { %2666 = vrot.lane.b32.xlu1 %v4775_v17, %s5328_s1  ;;  %2664 = vrot.lane.b32.xlu0 %v4777_v10, %s5328_s1  ;;  %s5581_s1 = sld [smem:[#allocation22_spill]] }
 0x3d0   : > { %v4897_v4 = vadd.f32 %v2273_v2, %v2262_v22  ;;  %v4899_v38 = vadd.f32 %v2272_v54, %v2261_v31  ;;  %v2936_v22 = vld [vmem:[#allocation8 + $0x1] ss:$0 sm:$0xff]  ;;  %v2937_v2 = vld [vmem:[#allocation8 + $0x2] ss:$0 sm:$0xff] }
 0x3d1   : > { %v4901_v28 = vpop.permute.xlu1 %2306  ;;  %v4903_v37 = vpop.permute.xlu0 %2304  ;;  %v1525_v54 = vmul.f32 %v2936_v22, %v4547_v52 }
 0x3d2   : > { %5520 = vst [vmem:[#allocation31_spill] sm:$0xff] %v4897_v4  ;;  %5521 = vst [vmem:[#allocation32_spill] sm:$0xff] %v4899_v38  ;;  %v1524_v38 = vmul.f32 %v2936_v22, %v4549_v8  ;;  %v2938_v4 = vld [vmem:[#allocation8 + $0x3] ss:$0 sm:$0xff]  ;;  %v2997_v22 = vld [vmem:[#allocation8 + $0x3e] ss:$0 sm:$0xff] }
 0x3d3   : > { %2291 = vrot.lane.b32.xlu1 %v4476_v3, %s5483_s27  ;;  %2289 = vrot.lane.b32.xlu0 %v4479_v23, %s5483_s27  ;;  %v1551_v52 = vmul.f32 %v2938_v4, %v4563_v49  ;;  %v1550_v8 = vmul.f32 %v2938_v4, %v4565_v1  ;;  %v2314_v49 = vmul.f32 %v2997_v22, %v4901_v28 }
 0x3d4   : > { %v2313_v1 = vmul.f32 %v2997_v22, %v4903_v37 }
 0x3d5   : > { %v2320_v47 = vpop.permute.xlu1 %2319  ;;  %v2318_v19 = vpop.permute.xlu0 %2317  ;;  %s5584_s21 = sshll.u32 %s5581_s1, 4  ;;  %s2723_s26 = scalar_lea.sflag [#allocation5], %s5581_s1 }
 0x3d6   : > { %s271_s22 = scalar_lea.vmem [#allocation9], %s5584_s21 }
 0x3d7   : > { %2679 = vrot.lane.b32.xlu1 %v4775_v17, %s5482_s3  ;;  %2677 = vrot.lane.b32.xlu0 %v4777_v10, %s5482_s3  ;;  %s2736_s25 = sshll.u32 %s271_s22, 4  ;;  %s5134_s25 = int_to_ptr.vmem [resolvable:$true] %s2736_s25 }
 0x3d8   : > { %s3225_s15 = scalar_lea.vmem %s5134_s25, 256  ;;  %p3232_p7 = scmp.lt.s32.totalorder %s5134_s25, %s3230_s10 }
 0x3d9   : > { %v2333_v26 = vpop.permute.xlu1 %2332  ;;  %v2331_v43 = vpop.permute.xlu0 %2330  ;;  %p3226_p11 = scmp.ne.s32.totalorder %s5134_s25, %s3225_s15  ;;  %p3233_p9 = scmp.lt.s32.totalorder %s3231_s28, %s3225_s15 }
 0x3db   : > { %2692 = vrot.lane.b32.xlu1 %v4775_v17, %s5483_s27  ;;  %2690 = vrot.lane.b32.xlu0 %v4777_v10, %s5483_s27  ;;  %p3227_p2 = pnand %p3226_p11, %p5588_p0  ;;  %p3234_p12 = por %p3233_p9, %p3232_p7 }
 0x3dd   : > { %v4917_v3 = vpop.permute.xlu1 %2345  ;;  %v4919_v20 = vpop.permute.xlu0 %2343  ;;  %p3228_p3 = pneg %p3227_p2 }
 0x3df   : > { %p3235_p1 = pnand %p3234_p12, %p3228_p3 }
 0x3e1   : > { %v4921_v23 = vpop.permute.xlu1 %2358  ;;  %v4923_v16 = vpop.permute.xlu0 %2356 }
 0x3e5   : > { %v4925_v58 = vpop.permute.xlu1 %2371  ;;  %v4927_v39 = vpop.permute.xlu0 %2369 }
 0x3e9   : > { %v4929_v51 = vpop.permute.xlu1 %2384  ;;  %v4931_v32 = vpop.permute.xlu0 %2382 }
 0x3ed   : > { %v4933_v45 = vpop.permute.xlu1 %2397  ;;  %v4935_v14 = vpop.permute.xlu0 %2395 }
 0x3f1   : > { %v4937_v60 = vpop.permute.xlu1 %2410  ;;  %v4939_v63 = vpop.permute.xlu0 %2408 }
 0x3f5   : > { %v4941_v13 = vpop.permute.xlu1 %2423  ;;  %v4943_v59 = vpop.permute.xlu0 %2421 }
 0x3f9   : > { %v4945_v34 = vpop.permute.xlu1 %2436  ;;  %v4947_v29 = vpop.permute.xlu0 %2434 }
 0x3fa   : > { %5522 = vst [vmem:[#allocation33_spill] sm:$0xff] %v4945_v34  ;;  %5523 = vst [vmem:[#allocation34_spill] sm:$0xff] %v4947_v29  ;;  %v2940_v29 = vld [vmem:[#allocation8 + $0x5] ss:$0 sm:$0xff] }
 0x3fd   : > { %v4949_v56 = vpop.permute.xlu1 %2449  ;;  %v4951_v6 = vpop.permute.xlu0 %2447 }
 0x3fe   : > { %5524 = vst [vmem:[#allocation69_spill] sm:$0xff] %v4949_v56  ;;  %5525 = vst [vmem:[#allocation70_spill] sm:$0xff] %v4951_v6  ;;  %v1538_v6 = vmul.f32 %v2937_v2, %v4555_v42  ;;  %v2939_v56 = vld [vmem:[#allocation8 + $0x4] ss:$0 sm:$0xff] }
 0x401   : > { %v4953_v18 = vpop.permute.xlu1 %2462  ;;  %v4955_v12 = vpop.permute.xlu0 %2460 }
 0x402   : > { %5526 = vst [vmem:[#allocation71_spill] sm:$0xff] %v4953_v18  ;;  %5527 = vst [vmem:[#allocation72_spill] sm:$0xff] %v4955_v12  ;;  %v1512_v18 = vmul.f32 %v2935_v50, %v4541_v21  ;;  %v1511_v12 = vmul.f32 %v2935_v50, %v4543_v15 }
 0x404   : > { %v1527_v7 = vadd.f32 %v1525_v54, %v1512_v18  ;;  %v1526_v27 = vadd.f32 %v1524_v38, %v1511_v12  ;;  %v1563_v18 = vmul.f32 %v2939_v56, %v4573_v25  ;;  %v3000_v38 = vld [vmem:[#allocation8 + $0x41] ss:$0 sm:$0xff]  ;;  %v2941_v12 = vld [vmem:[#allocation8 + $0x6] ss:$0 sm:$0xff]  ;;  %v1576_v54 = vmul.f32 %v2940_v29, %v4581_v5  ;;  %v2943_v5 = vld [vmem:[#allocation8 + $0x8] ss:$0 sm:$0xff] }
 0x405   : > { %v4957_v31 = vpop.permute.xlu1 %2475  ;;  %v4959_v36 = vpop.permute.xlu0 %2473  ;;  %v2353_v25 = vmul.f32 %v3000_v38, %v4917_v3 }
 0x406   : > { %5528 = vst [vmem:[#allocation73_spill] sm:$0xff] %v4957_v31  ;;  %5529 = vst [vmem:[#allocation74_spill] sm:$0xff] %v4959_v36  ;;  %v1537_v31 = vmul.f32 %v2937_v2, %v4557_v61  ;;  %v2998_v36 = vld [vmem:[#allocation8 + $0x3f] ss:$0 sm:$0xff]  ;;  %v1540_v42 = vadd.f32 %v1538_v6, %v1527_v7  ;;  %v1564_v61 = vmul.f32 %v2939_v56, %v4571_v57  ;;  %v3001_v7 = vld [vmem:[#allocation8 + $0x42] ss:$0 sm:$0xff] }
 0x407   : > { %v2326_v34 = vmul.f32 %v2998_v36, %v2318_v19  ;;  %v2352_v56 = vmul.f32 %v3000_v38, %v4919_v20  ;;  %v2365_v3 = vmul.f32 %v3001_v7, %v4923_v16 }
 0x408   : > { %v1539_v50 = vadd.f32 %v1537_v31, %v1526_v27  ;;  %v2942_v27 = vld [vmem:[#allocation8 + $0x7] ss:$0 sm:$0xff] }
 0x409   : > { %v4963_v10 = vpop.permute.xlu1 %2488  ;;  %v4965_v17 = vpop.permute.xlu0 %2486  ;;  %v2328_v57 = vadd.f32 %v2326_v34, %v2313_v1  ;;  %v1602_v22 = vmul.f32 %v2942_v27, %v4597_v53  ;;  %v3004_v1 = vld [vmem:[#allocation8 + $0x45] ss:$0 sm:$0xff]  ;;  %v2945_v53 = vld [vmem:[#allocation8 + $0xa] ss:$0 sm:$0xff] }
 0x40a   : > { %5530 = vst [vmem:[#allocation75_spill] sm:$0xff] %v4963_v10  ;;  %5531 = vst [vmem:[#allocation76_spill] sm:$0xff] %v4965_v17  ;;  %v2999_v10 = vld [vmem:[#allocation8 + $0x40] ss:$0 sm:$0xff]  ;;  %v2327_v17 = vmul.f32 %v2998_v36, %v2320_v47  ;;  %v1553_v47 = vadd.f32 %v1551_v52, %v1540_v42  ;;  %v1552_v19 = vadd.f32 %v1550_v8, %v1539_v50  ;;  %v3003_v42 = vld [vmem:[#allocation8 + $0x44] ss:$0 sm:$0xff] }
 0x40b   : > { %v2340_v4 = vmul.f32 %v2999_v10, %v2333_v26  ;;  %v2339_v2 = vmul.f32 %v2999_v10, %v2331_v43  ;;  %v1577_v36 = vmul.f32 %v2940_v29, %v4579_v35  ;;  %v1590_v26 = vmul.f32 %v2941_v12, %v4587_v11  ;;  %v3002_v43 = vld [vmem:[#allocation8 + $0x43] ss:$0 sm:$0xff]  ;;  %v2944_v50 = vld [vmem:[#allocation8 + $0x9] ss:$0 sm:$0xff] }
 0x40c   : > { %v2329_v6 = vadd.f32 %v2327_v17, %v2314_v49  ;;  %v1566_v37 = vadd.f32 %v1564_v61, %v1553_v47  ;;  %v1565_v10 = vadd.f32 %v1563_v18, %v1552_v19  ;;  %v1589_v35 = vmul.f32 %v2941_v12, %v4589_v30 }
 0x40d   : > { %v4973_v21 = vpop.permute.xlu1 %2510  ;;  %v4975_v15 = vpop.permute.xlu0 %2508  ;;  %v2341_v52 = vadd.f32 %v2339_v2, %v2328_v57  ;;  %v2366_v17 = vmul.f32 %v3001_v7, %v4921_v23  ;;  %v1603_v8 = vmul.f32 %v2942_v27, %v4595_v41  ;;  %v2379_v30 = vmul.f32 %v3002_v43, %v4925_v58  ;;  %v3005_v7 = vld [vmem:[#allocation8 + $0x46] ss:$0 sm:$0xff]  ;;  %v2946_v27 = vld [vmem:[#allocation8 + $0xb] ss:$0 sm:$0xff] }
 0x40e   : > { %v2342_v29 = vadd.f32 %v2340_v4, %v2329_v6  ;;  %v1579_v34 = vadd.f32 %v1577_v36, %v1566_v37  ;;  %v1578_v20 = vadd.f32 %v1576_v54, %v1565_v10  ;;  %v2378_v18 = vmul.f32 %v3002_v43, %v4927_v39  ;;  %v3006_v10 = vld [vmem:[#allocation8 + $0x47] ss:$0 sm:$0xff] }
 0x40f   : > { %v2354_v11 = vadd.f32 %v2352_v56, %v2341_v52  ;;  %v1616_v49 = vmul.f32 %v2943_v5, %v4603_v33  ;;  %v1615_v41 = vmul.f32 %v2943_v5, %v4605_v40  ;;  %v2392_v47 = vmul.f32 %v3003_v42, %v4929_v51 }
 0x410   : > { %v2355_v61 = vadd.f32 %v2353_v25, %v2342_v29  ;;  %v1592_v23 = vadd.f32 %v1590_v26, %v1579_v34  ;;  %v1591_v16 = vadd.f32 %v1589_v35, %v1578_v20  ;;  %v2391_v58 = vmul.f32 %v3003_v42, %v4931_v32 }
 0x411   : > { %v4985_v31 = vpop.permute.xlu1 %2523  ;;  %v4987_v28 = vpop.permute.xlu0 %2521  ;;  %v2367_v2 = vadd.f32 %v2365_v3, %v2354_v11  ;;  %v1629_v36 = vmul.f32 %v2944_v50, %v4611_v24  ;;  %v1628_v54 = vmul.f32 %v2944_v50, %v4613_v9  ;;  %v2405_v40 = vmul.f32 %v3004_v1, %v4933_v45  ;;  %v2947_v9 = vld [vmem:[#allocation8 + $0xc] ss:$0 sm:$0xff]  ;;  %v2948_v3 = vld [vmem:[#allocation8 + $0xd] ss:$0 sm:$0xff]  ;;  %v3008_v50 = vld [vmem:[#allocation8 + $0x49] ss:$0 sm:$0xff] }
 0x412   : > { %v2368_v4 = vadd.f32 %v2366_v17, %v2355_v61  ;;  %v1605_v19 = vadd.f32 %v1603_v8, %v1592_v23  ;;  %v1604_v39 = vadd.f32 %v1602_v22, %v1591_v16  ;;  %v2404_v57 = vmul.f32 %v3004_v1, %v4935_v14  ;;  %v3007_v17 = vld [vmem:[#allocation8 + $0x48] ss:$0 sm:$0xff]  ;;  %v5533_v23 = vld [vmem:[#allocation34_spill] sm:$0xff] }
 0x413   : > { %v2380_v33 = vadd.f32 %v2378_v18, %v2367_v2  ;;  %v1642_v37 = vmul.f32 %v2945_v53, %v4619_v55  ;;  %v1641_v24 = vmul.f32 %v2945_v53, %v4621_v48  ;;  %v2418_v43 = vmul.f32 %v3005_v7, %v4937_v60  ;;  %v5535_v1 = vld [vmem:[#allocation28_spill] sm:$0xff] }
 0x414   : > { %v2381_v6 = vadd.f32 %v2379_v30, %v2368_v4  ;;  %v1618_v51 = vadd.f32 %v1616_v49, %v1605_v19  ;;  %v1617_v32 = vadd.f32 %v1615_v41, %v1604_v39  ;;  %v2417_v45 = vmul.f32 %v3005_v7, %v4939_v63  ;;  %v5532_v30 = vld [vmem:[#allocation33_spill] sm:$0xff]  ;;  %v5534_v49 = vld [vmem:[#allocation27_spill] sm:$0xff]  ;;  %v3009_v4 = vld [vmem:[#allocation8 + $0x4a] ss:$0 sm:$0xff] }
 0x415   : > { %v4997_v38 = vpop.permute.xlu1 %2536  ;;  %v4999_v12 = vpop.permute.xlu0 %2534  ;;  %v2393_v35 = vadd.f32 %v2391_v58, %v2380_v33  ;;  %v1655_v29 = vmul.f32 %v2946_v27, %v4627_v44  ;;  %v1654_v52 = vmul.f32 %v2946_v27, %v4629_v46  ;;  %v2431_v48 = vmul.f32 %v3006_v10, %v4941_v13  ;;  %v2949_v46 = vld [vmem:[#allocation8 + $0xe] ss:$0 sm:$0xff]  ;;  %v5538_v27 = vld [vmem:[#allocation41_spill] sm:$0xff]  ;;  %v5539_v33 = vld [vmem:[#allocation42_spill] sm:$0xff] }
 0x416   : > { %v2394_v26 = vadd.f32 %v2392_v47, %v2381_v6  ;;  %v1631_v5 = vadd.f32 %v1629_v36, %v1618_v51  ;;  %v1630_v14 = vadd.f32 %v1628_v54, %v1617_v32  ;;  %v2430_v20 = vmul.f32 %v3006_v10, %v4943_v59  ;;  %v5541_v10 = vld [vmem:[#allocation72_spill] sm:$0xff] }
 0x417   : > { %v2406_v55 = vadd.f32 %v2404_v57, %v2393_v35  ;;  %v1668_v42 = vmul.f32 %v2947_v9, %v4635_v0  ;;  %v1667_v44 = vmul.f32 %v2947_v9, %v4637_v62  ;;  %v2444_v18 = vmul.f32 %v3007_v17, %v5532_v30  ;;  %v5536_v0 = vld [vmem:[#allocation69_spill] sm:$0xff]  ;;  %v5537_v62 = vld [vmem:[#allocation70_spill] sm:$0xff]  ;;  %v3010_v57 = vld [vmem:[#allocation8 + $0x4b] ss:$0 sm:$0xff] }
 0x418   : > { %v2407_v34 = vadd.f32 %v2405_v40, %v2394_v26  ;;  %v1644_v60 = vadd.f32 %v1642_v37, %v1631_v5  ;;  %v1643_v63 = vadd.f32 %v1641_v24, %v1630_v14  ;;  %v2443_v13 = vmul.f32 %v3007_v17, %v5533_v23  ;;  %v5540_v37 = vld [vmem:[#allocation71_spill] sm:$0xff]  ;;  %v5543_v17 = vld [vmem:[#allocation74_spill] sm:$0xff] }
 0x419   : > { %v5009_v25 = vpop.permute.xlu1 %2549  ;;  %v5011_v56 = vpop.permute.xlu0 %2547  ;;  %v2419_v11 = vadd.f32 %v2417_v45, %v2406_v55  ;;  %v1681_v41 = vmul.f32 %v2948_v3, %v5534_v49  ;;  %v1680_v53 = vmul.f32 %v2948_v3, %v5535_v1  ;;  %v2457_v58 = vmul.f32 %v3008_v50, %v5536_v0  ;;  %v2950_v45 = vld [vmem:[#allocation8 + $0xf] ss:$0 sm:$0xff] }
 0x41a   : > { %v2420_v61 = vadd.f32 %v2418_v43, %v2407_v34  ;;  %v1657_v16 = vadd.f32 %v1655_v29, %v1644_v60  ;;  %v1656_v59 = vadd.f32 %v1654_v52, %v1643_v63  ;;  %v2456_v19 = vmul.f32 %v3008_v50, %v5537_v62  ;;  %v3011_v43 = vld [vmem:[#allocation8 + $0x4c] ss:$0 sm:$0xff]  ;;  %v5542_v29 = vld [vmem:[#allocation73_spill] sm:$0xff] }
 0x41b   : > { %v2432_v47 = vadd.f32 %v2430_v20, %v2419_v11  ;;  %v1694_v6 = vmul.f32 %v2949_v46, %v5538_v27  ;;  %v1693_v40 = vmul.f32 %v2949_v46, %v5539_v33  ;;  %v2470_v24 = vmul.f32 %v3009_v4, %v5540_v37  ;;  %v2951_v60 = vld [vmem:[#allocation8 + $0x10] ss:$0 sm:$0xff]  ;;  %v5545_v46 = vld [vmem:[#allocation76_spill] sm:$0xff]  ;;  %v2953_v62 = vld [vmem:[#allocation8 + $0x12] ss:$0 sm:$0xff] }
 0x41c   : > { %v2433_v2 = vadd.f32 %v2431_v48, %v2420_v61  ;;  %v1670_v54 = vadd.f32 %v1668_v42, %v1657_v16  ;;  %v1669_v7 = vadd.f32 %v1667_v44, %v1656_v59  ;;  %v2469_v9 = vmul.f32 %v3009_v4, %v5541_v10  ;;  %v5544_v44 = vld [vmem:[#allocation75_spill] sm:$0xff]  ;;  %v3137_v11 = vld [vmem:[#allocation2 + $0xf] sm:$0xff] }
 0x41d   : > { %v5021_v8 = vpop.permute.xlu1 %2562  ;;  %v5023_v22 = vpop.permute.xlu0 %2560  ;;  %v2445_v32 = vadd.f32 %v2443_v13, %v2432_v47  ;;  %v2483_v52 = vmul.f32 %v3010_v57, %v5542_v29  ;;  %v2482_v3 = vmul.f32 %v3010_v57, %v5543_v17  ;;  %v2496_v50 = vmul.f32 %v3011_v43, %v5544_v44  ;;  %v2952_v13 = vld [vmem:[#allocation8 + $0x11] ss:$0 sm:$0xff]  ;;  %v5547_v47 = vld [vmem:[#allocation40_spill] sm:$0xff]  ;;  %v2954_v57 = vld [vmem:[#allocation8 + $0x13] ss:$0 sm:$0xff] }
 0x41e   : > { %v2446_v51 = vadd.f32 %v2444_v18, %v2433_v2  ;;  %v1683_v26 = vadd.f32 %v1681_v41, %v1670_v54  ;;  %v1682_v35 = vadd.f32 %v1680_v53, %v1669_v7  ;;  %v2495_v61 = vmul.f32 %v3011_v43, %v5545_v46  ;;  %v3138_v18 = vld [vmem:[#allocation2 + $0x7] sm:$0xff]  ;;  %v3014_v29 = vld [vmem:[#allocation8 + $0x4f] ss:$0 sm:$0xff] }
 0x41f   : > { %v2458_v14 = vadd.f32 %v2456_v19, %v2445_v32  ;;  %v1703_v30 = vmul.f32 %v3137_v11, %v2950_v45  ;;  %v1702_v23 = vmul.f32 %v3138_v18, %v2950_v45  ;;  %v5546_v53 = vld [vmem:[#allocation39_spill] sm:$0xff]  ;;  %v1715_v0 = vmul.f32 %v2951_v60, %v5547_v47  ;;  %v5551_v37 = vld [vmem:[#allocation68_spill] sm:$0xff]  ;;  %v2956_v11 = vld [vmem:[#allocation8 + $0x15] ss:$0 sm:$0xff] }
 0x420   : > { %v2459_v5 = vadd.f32 %v2457_v58, %v2446_v51  ;;  %v1696_v48 = vadd.f32 %v1694_v6, %v1683_v26  ;;  %v1695_v20 = vadd.f32 %v1693_v40, %v1682_v35  ;;  %v1716_v4 = vmul.f32 %v2951_v60, %v5546_v53  ;;  %v3012_v58 = vld [vmem:[#allocation8 + $0x4d] ss:$0 sm:$0xff]  ;;  %v5548_v7 = vld [vmem:[#allocation43_spill] sm:$0xff]  ;;  %v3013_v40 = vld [vmem:[#allocation8 + $0x4e] ss:$0 sm:$0xff] }
 0x421   : > { %v5033_v39 = vpop.permute.xlu1 %2575  ;;  %v5035_v36 = vpop.permute.xlu0 %2573  ;;  %v2471_v42 = vadd.f32 %v2469_v9, %v2458_v14  ;;  %v1729_v27 = vmul.f32 %v2952_v13, %v5548_v7  ;;  %v5549_v6 = vld [vmem:[#allocation44_spill] sm:$0xff]  ;;  %v5550_v51 = vld [vmem:[#allocation67_spill] sm:$0xff]  ;;  %v2530_v18 = vmul.f32 %v3014_v29, %v4987_v28 }
 0x422   : > { %v2472_v63 = vadd.f32 %v2470_v24, %v2459_v5  ;;  %v1705_v1 = vadd.f32 %v1703_v30, %v1696_v48  ;;  %v1704_v2 = vadd.f32 %v1702_v23, %v1695_v20  ;;  %v1728_v33 = vmul.f32 %v2952_v13, %v5549_v6  ;;  %v5552_v43 = vld [vmem:[#allocation24_spill] sm:$0xff]  ;;  %v5553_v5 = vld [vmem:[#allocation23_spill] sm:$0xff]  ;;  %v3017_v6 = vld [vmem:[#allocation8 + $0x52] ss:$0 sm:$0xff] }
 0x423   : > { %v2484_v59 = vadd.f32 %v2482_v3, %v2471_v42  ;;  %v2505_v32 = vmul.f32 %v3012_v58, %v5550_v51  ;;  %v2504_v24 = vmul.f32 %v3012_v58, %v5551_v37  ;;  %v1742_v45 = vmul.f32 %v2953_v62, %v5552_v43  ;;  %v5554_v42 = vld [vmem:[#allocation45_spill] sm:$0xff]  ;;  %v5559_v7 = vld [vmem:[#allocation48_spill] sm:$0xff]  ;;  %v5561_v43 = vld [vmem:[#allocation50_spill] sm:$0xff] }
 0x424   : > { %v2485_v16 = vadd.f32 %v2483_v52, %v2472_v63  ;;  %v1718_v26 = vadd.f32 %v1716_v4, %v1705_v1  ;;  %v1717_v35 = vadd.f32 %v1715_v0, %v1704_v2  ;;  %v1741_v14 = vmul.f32 %v2953_v62, %v5553_v5  ;;  %v2955_v52 = vld [vmem:[#allocation8 + $0x14] ss:$0 sm:$0xff]  ;;  %v5557_v1 = vld [vmem:[#allocation30_spill] sm:$0xff]  ;;  %v3016_v4 = vld [vmem:[#allocation8 + $0x51] ss:$0 sm:$0xff] }
 0x425   : > { %v5043_v34 = vpop.permute.xlu1 %2588  ;;  %v5045_v55 = vpop.permute.xlu0 %2586  ;;  %v2497_v54 = vadd.f32 %v2495_v61, %v2484_v59  ;;  %v2518_v3 = vmul.f32 %v3013_v40, %v4973_v21  ;;  %v2517_v20 = vmul.f32 %v3013_v40, %v4975_v15  ;;  %v1755_v44 = vmul.f32 %v2954_v57, %v5554_v42  ;;  %v3015_v61 = vld [vmem:[#allocation8 + $0x50] ss:$0 sm:$0xff]  ;;  %v2957_v2 = vld [vmem:[#allocation8 + $0x16] ss:$0 sm:$0xff]  ;;  %v3018_v5 = vld [vmem:[#allocation8 + $0x53] ss:$0 sm:$0xff] }
 0x426   : > { %v2498_v19 = vadd.f32 %v2496_v50, %v2485_v16  ;;  %v1731_v60 = vadd.f32 %v1729_v27, %v1718_v26  ;;  %v1730_v63 = vadd.f32 %v1728_v33, %v1717_v35  ;;  %v5555_v50 = vld [vmem:[#allocation46_spill] sm:$0xff]  ;;  %v2531_v30 = vmul.f32 %v3014_v29, %v4985_v31  ;;  %v5556_v59 = vld [vmem:[#allocation29_spill] sm:$0xff] }
 0x427   : > { %v2506_v48 = vadd.f32 %v2504_v24, %v2497_v54  ;;  %v1754_v46 = vmul.f32 %v2954_v57, %v5555_v50  ;;  %v1768_v15 = vmul.f32 %v2955_v52, %v5556_v59  ;;  %v1767_v53 = vmul.f32 %v2955_v52, %v5557_v1  ;;  %v2958_v33 = vld [vmem:[#allocation8 + $0x17] ss:$0 sm:$0xff]  ;;  %v3019_v42 = vld [vmem:[#allocation8 + $0x54] ss:$0 sm:$0xff]  ;;  %v5565_v59 = vld [vmem:[#allocation54_spill] sm:$0xff] }
 0x428   : > { %v2507_v17 = vadd.f32 %v2505_v32, %v2498_v19  ;;  %v1744_v21 = vadd.f32 %v1742_v45, %v1731_v60  ;;  %v1743_v16 = vadd.f32 %v1741_v14, %v1730_v63  ;;  %v2544_v58 = vmul.f32 %v3015_v61, %v4997_v38  ;;  %v5558_v19 = vld [vmem:[#allocation47_spill] sm:$0xff]  ;;  %v5560_v26 = vld [vmem:[#allocation49_spill] sm:$0xff]  ;;  %v2959_v14 = vld [vmem:[#allocation8 + $0x18] ss:$0 sm:$0xff] }
 0x429   : > { %v5049_v49 = vpop.permute.xlu1 %2601  ;;  %v5051_v41 = vpop.permute.xlu0 %2599  ;;  %v2519_v0 = vadd.f32 %v2517_v20, %v2506_v48  ;;  %v2543_v31 = vmul.f32 %v3015_v61, %v4999_v12  ;;  %v1781_v54 = vmul.f32 %v2956_v11, %v5558_v19  ;;  %v1780_v27 = vmul.f32 %v2956_v11, %v5559_v7  ;;  %v5562_v48 = vld [vmem:[#allocation51_spill] sm:$0xff]  ;;  %v5563_v60 = vld [vmem:[#allocation52_spill] sm:$0xff]  ;;  %v3020_v1 = vld [vmem:[#allocation8 + $0x55] ss:$0 sm:$0xff] }
 0x42a   : > { %v2520_v47 = vadd.f32 %v2518_v3, %v2507_v17  ;;  %v1757_v62 = vadd.f32 %v1755_v44, %v1744_v21  ;;  %v1756_v28 = vadd.f32 %v1754_v46, %v1743_v16  ;;  %v2557_v51 = vmul.f32 %v3016_v4, %v5009_v25  ;;  %v2960_v44 = vld [vmem:[#allocation8 + $0x19] ss:$0 sm:$0xff]  ;;  %v5564_v16 = vld [vmem:[#allocation53_spill] sm:$0xff] }
 0x42b   : > { %v2532_v57 = vadd.f32 %v2530_v18, %v2519_v0  ;;  %v2556_v32 = vmul.f32 %v3016_v4, %v5011_v56  ;;  %v1794_v35 = vmul.f32 %v2957_v2, %v5560_v26  ;;  %v1793_v45 = vmul.f32 %v2957_v2, %v5561_v43  ;;  %v3021_v19 = vld [vmem:[#allocation8 + $0x56] ss:$0 sm:$0xff]  ;;  %v3022_v26 = vld [vmem:[#allocation8 + $0x57] ss:$0 sm:$0xff] }
 0x42c   : > { %v2533_v40 = vadd.f32 %v2531_v30, %v2520_v47  ;;  %v1770_v38 = vadd.f32 %v1768_v15, %v1757_v62  ;;  %v1769_v12 = vadd.f32 %v1767_v53, %v1756_v28  ;;  %v2570_v17 = vmul.f32 %v3017_v6, %v5021_v8  ;;  %v2961_v53 = vld [vmem:[#allocation8 + $0x1a] ss:$0 sm:$0xff]  ;;  %v5567_v62 = vld [vmem:[#allocation56_spill] sm:$0xff] }
 0x42d   : > { %v5059_v10 = vpop.permute.xlu1 %2614  ;;  %v5061_v9 = vpop.permute.xlu0 %2612  ;;  %v2545_v52 = vadd.f32 %v2543_v31, %v2532_v57  ;;  %v2569_v25 = vmul.f32 %v3017_v6, %v5023_v22  ;;  %v1807_v20 = vmul.f32 %v2958_v33, %v5562_v48  ;;  %v1806_v63 = vmul.f32 %v2958_v33, %v5563_v60  ;;  %v5566_v31 = vld [vmem:[#allocation55_spill] sm:$0xff] }
 0x42e   : > { %v2546_v29 = vadd.f32 %v2544_v58, %v2533_v40  ;;  %v1783_v3 = vadd.f32 %v1781_v54, %v1770_v38  ;;  %v1782_v56 = vadd.f32 %v1780_v27, %v1769_v12  ;;  %v2583_v61 = vmul.f32 %v3018_v5, %v5033_v39  ;;  %v2962_v54 = vld [vmem:[#allocation8 + $0x1b] ss:$0 sm:$0xff] }
 0x42f   : > { %v2558_v46 = vadd.f32 %v2556_v32, %v2545_v52  ;;  %v2582_v11 = vmul.f32 %v3018_v5, %v5035_v36  ;;  %v1820_v22 = vmul.f32 %v2959_v14, %v5564_v16  ;;  %v1819_v15 = vmul.f32 %v2959_v14, %v5565_v59  ;;  %v5568_v32 = vld [vmem:[#allocation57_spill] sm:$0xff]  ;;  %v5569_v38 = vld [vmem:[#allocation58_spill] sm:$0xff]  ;;  %v5570_v52 = vld [vmem:[#allocation59_spill] sm:$0xff] }
 0x430   : > { %v2559_v50 = vadd.f32 %v2557_v51, %v2546_v29  ;;  %v1796_v21 = vadd.f32 %v1794_v35, %v1783_v3  ;;  %v1795_v8 = vadd.f32 %v1793_v45, %v1782_v56  ;;  %v2596_v47 = vmul.f32 %v3019_v42, %v5043_v34  ;;  %v2963_v35 = vld [vmem:[#allocation8 + $0x1c] ss:$0 sm:$0xff]  ;;  %v3023_v3 = vld [vmem:[#allocation8 + $0x58] ss:$0 sm:$0xff] }
 0x431   : > { %v5071_v23 = vpop.permute.xlu1 %2627  ;;  %v5073_v13 = vpop.permute.xlu0 %2625  ;;  %v2571_v2 = vadd.f32 %v2569_v25, %v2558_v46  ;;  %v2595_v0 = vmul.f32 %v3019_v42, %v5045_v55  ;;  %v1833_v36 = vmul.f32 %v2960_v44, %v5566_v31  ;;  %v1832_v28 = vmul.f32 %v2960_v44, %v5567_v62  ;;  %v2995_v59 = vld [vmem:[#allocation8 + $0x3c] ss:$0 sm:$0xff]  ;;  %v2965_v62 = vld [vmem:[#allocation8 + $0x1e] ss:$0 sm:$0xff] }
 0x432   : > { %v2572_v4 = vadd.f32 %v2570_v17, %v2559_v50  ;;  %v1809_v58 = vadd.f32 %v1807_v20, %v1796_v21  ;;  %v1808_v39 = vadd.f32 %v1806_v63, %v1795_v8  ;;  %v2609_v6 = vmul.f32 %v3020_v1, %v5049_v49  ;;  %v5571_v17 = vld [vmem:[#allocation60_spill] sm:$0xff] }
 0x433   : > { %v2584_v27 = vadd.f32 %v2582_v11, %v2571_v2  ;;  %v2608_v33 = vmul.f32 %v3020_v1, %v5051_v41  ;;  %v1846_v55 = vmul.f32 %v2961_v53, %v5568_v32  ;;  %v1845_v12 = vmul.f32 %v2961_v53, %v5569_v38  ;;  %v3024_v11 = vld [vmem:[#allocation8 + $0x59] ss:$0 sm:$0xff]  ;;  %v2964_v1 = vld [vmem:[#allocation8 + $0x1d] ss:$0 sm:$0xff]  ;;  %v5576_v32 = vld [vmem:[#allocation65_spill] sm:$0xff] }
 0x434   : > { %v2585_v7 = vadd.f32 %v2583_v61, %v2572_v4  ;;  %v1822_v51 = vadd.f32 %v1820_v22, %v1809_v58  ;;  %v1821_v34 = vadd.f32 %v1819_v15, %v1808_v39  ;;  %v2622_v5 = vmul.f32 %v3021_v19, %v5059_v10  ;;  %v5572_v10 = vld [vmem:[#allocation61_spill] sm:$0xff]  ;;  %v5577_v38 = vld [vmem:[#allocation66_spill] sm:$0xff] }
 0x435   : > { %v5083_v37 = vpop.permute.xlu1 %2640  ;;  %v5085_v24 = vpop.permute.xlu0 %2638  ;;  %v2597_v45 = vadd.f32 %v2595_v0, %v2584_v27  ;;  %v2621_v14 = vmul.f32 %v3021_v19, %v5061_v9  ;;  %v1859_v41 = vmul.f32 %v2962_v54, %v5570_v52  ;;  %v1858_v25 = vmul.f32 %v2962_v54, %v5571_v17  ;;  %v5573_v9 = vld [vmem:[#allocation62_spill] sm:$0xff] }
 0x436   : > { %v2598_v43 = vadd.f32 %v2596_v47, %v2585_v7  ;;  %v1835_v29 = vadd.f32 %v1833_v36, %v1822_v51  ;;  %v1834_v49 = vadd.f32 %v1832_v28, %v1821_v34  ;;  %v2635_v20 = vmul.f32 %v3022_v26, %v5071_v23  ;;  %v3025_v47 = vld [vmem:[#allocation8 + $0x5a] ss:$0 sm:$0xff]  ;;  %v2996_v0 = vld [vmem:[#allocation8 + $0x3d] ss:$0 sm:$0xff]  ;;  %v3027_v17 = vld [vmem:[#allocation8 + $0x5c] ss:$0 sm:$0xff] }
 0x437   : > { %v2610_v48 = vadd.f32 %v2608_v33, %v2597_v45  ;;  %v2634_v60 = vmul.f32 %v3022_v26, %v5073_v13  ;;  %v1872_v46 = vmul.f32 %v2963_v35, %v5572_v10  ;;  %v1871_v61 = vmul.f32 %v2963_v35, %v5573_v9  ;;  %v3026_v33 = vld [vmem:[#allocation8 + $0x5b] ss:$0 sm:$0xff] }
 0x438   : > { %v2611_v56 = vadd.f32 %v2609_v6, %v2598_v43  ;;  %v1848_v44 = vadd.f32 %v1846_v55, %v1835_v29  ;;  %v1847_v50 = vadd.f32 %v1845_v12, %v1834_v49  ;;  %v2648_v16 = vmul.f32 %v3023_v3, %v5083_v37  ;;  %v5574_v37 = vld [vmem:[#allocation63_spill] sm:$0xff] }
 0x439   : > { %v2654_v30 = vpop.permute.xlu1 %2653  ;;  %v2652_v18 = vpop.permute.xlu0 %2651  ;;  %v2623_v8 = vadd.f32 %v2621_v14, %v2610_v48  ;;  %v2647_v22 = vmul.f32 %v3023_v3, %v5085_v24  ;;  %v1885_v54 = vmul.f32 %v2964_v1, %v5574_v37  ;;  %v5575_v24 = vld [vmem:[#allocation64_spill] sm:$0xff]  ;;  %v1898_v55 = vmul.f32 %v2965_v62, %v5576_v32 }
 0x43a   : > { %v2624_v21 = vadd.f32 %v2622_v5, %v2611_v56  ;;  %v1861_v15 = vadd.f32 %v1859_v41, %v1848_v44  ;;  %v1860_v23 = vadd.f32 %v1858_v25, %v1847_v50  ;;  %v2661_v4 = vmul.f32 %v3024_v11, %v2654_v30  ;;  %v5579_v5 = vld [vmem:[#allocation32_spill] sm:$0xff] }
 0x43b   : > { %v2636_v53 = vadd.f32 %v2634_v60, %v2623_v8  ;;  %v2660_v2 = vmul.f32 %v3024_v11, %v2652_v18  ;;  %v1884_v7 = vmul.f32 %v2964_v1, %v5575_v24  ;;  %v1897_v12 = vmul.f32 %v2965_v62, %v5577_v38  ;;  %v3028_v8 = vld [vmem:[%s5582_s18] ss:$0 sm:$0xff] }
 0x43c   : > { %v2637_v13 = vadd.f32 %v2635_v20, %v2624_v21  ;;  %v1874_v31 = vadd.f32 %v1872_v46, %v1861_v15  ;;  %v1873_v36 = vadd.f32 %v1871_v61, %v1860_v23  ;;  %v5585_v23 = vld [vmem:[#allocation25_spill] sm:$0xff] }
 0x43d   : > { %v2279_v40 = vpop.permute.xlu1 %2278  ;;  %v2277_v57 = vpop.permute.xlu0 %2276  ;;  %v2649_v6 = vadd.f32 %v2647_v22, %v2636_v53 }
 0x43e   : > { %v2286_v28 = vmul.f32 %v2995_v59, %v2279_v40  ;;  %v2285_v19 = vmul.f32 %v2995_v59, %v2277_v57  ;;  %v2650_v27 = vadd.f32 %v2648_v16, %v2637_v13  ;;  %v5578_v57 = vld [vmem:[#allocation31_spill] sm:$0xff]  ;;  %v1887_v52 = vadd.f32 %v1885_v54, %v1874_v31  ;;  %v5586_v13 = vld [vmem:[#allocation26_spill] sm:$0xff] }
 0x43f   : > { %v2662_v35 = vadd.f32 %v2660_v2, %v2649_v6  ;;  %v1886_v41 = vadd.f32 %v1884_v7, %v1873_v36 }
 0x440   : > { %v2663_v26 = vadd.f32 %v2661_v4, %v2650_v27  ;;  %v2288_v45 = vadd.f32 %v2286_v28, %v5578_v57  ;;  %v2287_v14 = vadd.f32 %v2285_v19, %v5579_v5  ;;  %v1900_v20 = vadd.f32 %v1898_v55, %v1887_v52 }
 0x441   : > { %v2667_v63 = vpop.permute.xlu1 %2666  ;;  %v2665_v42 = vpop.permute.xlu0 %2664  ;;  %v1899_v60 = vadd.f32 %v1897_v12, %v1886_v41 }
 0x442   : > { %v2674_v51 = vmul.f32 %v3025_v47, %v2667_v63  ;;  %v2673_v34 = vmul.f32 %v3025_v47, %v2665_v42 }
 0x444   : > { %v2676_v25 = vadd.f32 %v2674_v51, %v2663_v26  ;;  %v2675_v3 = vadd.f32 %v2673_v34, %v2662_v35 }
 0x445   : > { %v2292_v58 = vpop.permute.xlu1 %2291  ;;  %v2290_v39 = vpop.permute.xlu0 %2289 }
 0x446   : > { %v2299_v30 = vmul.f32 %v2996_v0, %v2292_v58  ;;  %v2298_v18 = vmul.f32 %v2996_v0, %v2290_v39 }
 0x448   : > { %v2301_v56 = vadd.f32 %v2299_v30, %v2288_v45  ;;  %v2300_v48 = vadd.f32 %v2298_v18, %v2287_v14 }
 0x449   : > { %v2680_v43 = vpop.permute.xlu1 %2679  ;;  %v2678_v40 = vpop.permute.xlu0 %2677 }
 0x44a   : > { %v2687_v29 = vmul.f32 %v3026_v33, %v2680_v43  ;;  %v2686_v49 = vmul.f32 %v3026_v33, %v2678_v40  ;;  %v2704_v9 = vadd.f32 %v2301_v56, %v1900_v20  ;;  %v2703_v61 = vadd.f32 %v2300_v48, %v1899_v60 }
 0x44c   : > { %v2689_v44 = vadd.f32 %v2687_v29, %v2676_v25  ;;  %v2688_v50 = vadd.f32 %v2686_v49, %v2675_v3 }
 0x44d   : > { %v2693_v63 = vpop.permute.xlu1 %2692  ;;  %v2691_v42 = vpop.permute.xlu0 %2690 }
 0x44e   : > { %v2700_v10 = vmul.f32 %v3027_v17, %v2693_v63  ;;  %v2699_v46 = vmul.f32 %v3027_v17, %v2691_v42 }
 0x450   : > { %v2702_v11 = vadd.f32 %v2700_v10, %v2689_v44  ;;  %v2701_v21 = vadd.f32 %v2699_v46, %v2688_v50 }
 0x452   : > { %v2706_v16 = vadd.f32 %v2704_v9, %v2702_v11  ;;  %v2705_v22 = vadd.f32 %v2703_v61, %v2701_v21 }
 0x454   : > { %v2715_v59 = vadd.f32 %v3028_v8, %v2706_v16  ;;  %v2714_v15 = vadd.f32 %v3028_v8, %v2705_v22 }
 0x456   : > { %v2717_v1 = vadd.f32 %v2715_v59, %v5585_v23  ;;  %v2716_v53 = vadd.f32 %v2714_v15, %v5586_v13 }
 0x458   : > { %v2719_v4 = vmax.f32 %v2717_v1, 0.0  ;;  %v2718_v2 = vmax.f32 %v2716_v53, 0.0 }
 0x45a   : > { %2721 = vst [vmem:[%s271_s22 + $0x8] sm:$0xff] %v2719_v4  ;;  %2720 = vst [vmem:[%s271_s22] sm:$0xff] %v2718_v2 }
 0x45b   : > { %3238 = shalt.err (!%p3235_p1)
}
 0x45c   : > { %s3239_s13 = scalar_lea.hbm %s5132_s24, 256  ;;  %s3243_s11 = scalar_lea.hbm %s5587_s6, 512 }
 0x45d   : > { %p3240_p13 = scmp.ne.s32.totalorder %s5132_s24, %s3239_s13  ;;  %p3244_p4 = scmp.lt.u32.totalorder %s5132_s24, %s5587_s6 }
 0x45e   : > { %p3245_p5 = scmp.lt.u32.totalorder %s3243_s11, %s3239_s13  ;;  %p3247_p11 = scmp.lt.u32.totalorder %s3239_s13, %s5132_s24 }
 0x45f   : > { %p3241_p6 = pnand %p3240_p13, %p5588_p0 }
 0x460   : > { %p3246_p8 = por %p3245_p5, %p3244_p4 }
 0x461   : > { %p3242_p10 = pneg %p3241_p6 }
 0x462   : > { %p3248_p2 = por %p3247_p11, %p3246_p8 }
 0x464   : > { %p3249_p3 = pnand %p3248_p2, %p3242_p10 }
 0x466   : > { %3252 = shalt.err (!%p3249_p3)
}
 0x467   : > { %s3334_s8 = smov 128  }
 0x468   : > { %3046 = dma.vmem_to_hbm [thread:$0]  (%p5588_p0), %s5134_s25, 256, %s5132_s24, %s2723_s26, %s3334_s8, %s3334_s8, %s5358_s23  }
 0x469 PF: > { %s5589_s12 = sld [smem:[#allocation13_spill]]  ;;  %s5590_s3 = sld [smem:[#allocation18_spill]] }
 0x46a   : > { %s5591_s27 = sld [smem:[#allocation16_spill]] }
 0x46f   : > { %s2751_s0 = sand.u32 1, %s5589_s12   ;;  %p5592_p7 = scmp.ne.s32.totalorder %s5590_s3, 0 }
 0x470   : > { %p5593_p9 = scmp.ge.s32.totalorder %s5591_s27, 2  ;;  %s2752_s4 = scalar_lea.sflag [#allocation5], %s2751_s0 }
 0x472   : > { %p3060_p12 = pnand %p5593_p9, %p5592_p7 }
 0x474   : > { %3278 = dma.done.wait (!%p3060_p12), %s2752_s4, 256  }
 0x475   : > { %3280 = vsyncadd (!%p3060_p12), %s2752_s4, 4294967040  ;;  %s5594_s21 = sld [smem:[#allocation19_spill]]  ;;  %s5595_s18 = sld [smem:[#allocation14_spill]] }
 0x476   : > { %s5596_s19 = sld [smem:[#allocation15_spill]]  ;;  %s5597_s20 = sld [smem:[#allocation21_spill]] }
 0x47b   : > { %p19_p1 = scmp.ge.s32.totalorder %s5594_s21, 4  }
 0x47d   :  { %21 = sbr.rel (!%p19_p1) target bundleno = 12 (0xc), region = 93 }
 0x484   :  { %2757 = vsyncpa [#allocation4], 1 }
 0x485   :  { %2759 = vsyncpa [#allocation4 + $0x1], 1 }
 0x486   :  { %2760 = vsyncpa [#allocation7], 1 }
 0x487   :  { %2761 = vsyncpa [#allocation5], 1 }
 0x488   :  { %2763 = vsyncpa [#allocation5 + $0x1], 1 }

</bundles_post_ra>
